<compile_context>
chip_gen: v7x
topology: tpu7x:2x2x1
jax: 0.10.0
libtpu: 0.0.40
codegen_flags: <defaults>
</compile_context>

<pallas_src>
import functools
import math

import jax
import jax.numpy as jnp
from jax.experimental import pallas as pl
from jax.experimental.pallas import tpu as pltpu


def _sine_pe_kernel(mask_ref, tri_h_ref, tri_w_ref, inv_freq_ref, out_ref, *,
                    num_feats, normalize, scale, eps, offset):
    # mask_ref    : (1, H, W) int32               (current batch element)
    # tri_h_ref   : (H, H) f32, lower-triangular (inclusive)  [batch-invariant]
    # tri_w_ref   : (W, W) f32, upper-triangular (inclusive)  [batch-invariant]
    # inv_freq_ref: (num_feats//2, 1, 1) f32, 1 / temperature**(2k/num_feats)
    # out_ref     : (1, 2*num_feats, H, W) f32    (NCHW, W on the lane axis)
    nf2 = num_feats // 2
    not_mask = 1.0 - mask_ref[0].astype(jnp.float32)         # (H, W)
    H, W = not_mask.shape

    # cumsum along H (axis 0) as a lower-triangular matmul on the MXU:
    #   y_embed[h, w] = sum_{h' <= h} not_mask[h', w]
    y_embed = jnp.dot(tri_h_ref[...], not_mask,
                      preferred_element_type=jnp.float32)    # (H, W)
    # cumsum along W (axis 1) as an upper-triangular matmul:
    #   x_embed[h, w] = sum_{w' <= w} not_mask[h, w']
    x_embed = jnp.dot(not_mask, tri_w_ref[...],
                      preferred_element_type=jnp.float32)    # (H, W)

    inv_freq = inv_freq_ref[...]                              # (nf2, 1, 1)

    if normalize:
        # Invert only the (1, W) / (H, 1) denominators (exact divides on a
        # single row / column, `scale` folded in), then fold that factor into
        # the per-frequency scale so the full (nf2, H, W) planes only see a
        # single multiply each.
        inv_y = scale / (y_embed[H - 1:H, :] + eps)           # (1, W)
        inv_x = scale / (x_embed[:, W - 1:W] + eps)           # (H, 1)
        freq_y = inv_y[None, :, :] * inv_freq                 # (nf2, 1, W)
        freq_x = inv_x[None, :, :] * inv_freq                 # (nf2, H, 1)
        args_y = (y_embed + offset)[None, :, :] * freq_y      # (nf2, H, W)
        args_x = (x_embed + offset)[None, :, :] * freq_x      # (nf2, H, W)
    else:
        args_y = y_embed[None, :, :] * inv_freq               # (nf2, H, W)
        args_x = x_embed[None, :, :] * inv_freq               # (nf2, H, W)

    # dim_t[2k] == dim_t[2k+1]  =>  only nf2 unique frequencies.  Evaluate sin
    # and cos once each on half-size tensors, then interleave along the
    # channel (leading) axis: channel 2k = sin, channel 2k+1 = cos.  The
    # reshape only merges leading (non-tiled) dims, so it is layout-free.
    pos_y = jnp.stack([jnp.sin(args_y), jnp.cos(args_y)],
                      axis=1).reshape(num_feats, H, W)
    pos_x = jnp.stack([jnp.sin(args_x), jnp.cos(args_x)],
                      axis=1).reshape(num_feats, H, W)

    # Direct channel-slice stores (no lane-axis concatenate).
    out_ref[0, :num_feats] = pos_y
    out_ref[0, num_feats:] = pos_x


def sine_positional_encoding(mask, *, num_feats, temperature=10000,
                             normalize=False, scale=2 * math.pi,
                             eps=1e-6, offset=0.0):
    """Pallas-backed SinePositionalEncoding.forward.

    mask: [B, H, W] (nonzero = ignored, values in {0, 1}).
    Returns [B, 2*num_feats, H, W] float32 (NCHW, produced directly).
    """
    assert num_feats % 2 == 0, "num_feats must be even (sin/cos pairs)"
    B, H, W = mask.shape
    C = 2 * num_feats
    nf2 = num_feats // 2

    # Batch-invariant constants, built once in XLA and kept VMEM-resident
    # across the batch grid (constant index_map).
    row = jnp.arange(H, dtype=jnp.int32)
    tri_h = (row[None, :] <= row[:, None]).astype(jnp.float32)   # (H, H) lower
    col = jnp.arange(W, dtype=jnp.int32)
    tri_w = (col[:, None] <= col[None, :]).astype(jnp.float32)   # (W, W) upper

    # inv_freq[k] = 1 / temperature**(2k/num_feats) = 1/dim_t[2k] = 1/dim_t[2k+1]
    k = jnp.arange(nf2, dtype=jnp.float32)
    inv_freq = (temperature ** (-2.0 * k / num_feats)).astype(
        jnp.float32).reshape(nf2, 1, 1)

    kernel = functools.partial(
        _sine_pe_kernel, num_feats=num_feats, normalize=normalize,
        scale=float(scale), eps=float(eps), offset=float(offset))

    # NOTE: for very large C*H*W (realistic DETR shapes on v7x's 64 MiB VMEM)
    # a channel-tile grid axis would keep the double-buffered output block
    # small; at these shapes a single per-batch block is the right size.
    return pl.pallas_call(
        kernel,
        out_shape=jax.ShapeDtypeStruct((B, C, H, W), jnp.float32),
        grid_spec=pltpu.PrefetchScalarGridSpec(
            num_scalar_prefetch=0,
            grid=(B,),
            in_specs=[
                pl.BlockSpec((1, H, W), lambda b: (b, 0, 0)),
                pl.BlockSpec((H, H), lambda b: (0, 0)),
                pl.BlockSpec((W, W), lambda b: (0, 0)),
                pl.BlockSpec((nf2, 1, 1), lambda b: (0, 0, 0)),
            ],
            out_specs=pl.BlockSpec((1, C, H, W), lambda b: (b, 0, 0, 0)),
        ),
        compiler_params=pltpu.CompilerParams(
            dimension_semantics=("parallel",)),
    )(mask.astype(jnp.int32), tri_h, tri_w, inv_freq)


def _reference(mask, *, num_feats, temperature, normalize, scale, eps, offset):
    """Pure-JAX port of the PyTorch forward (for verification)."""
    mask = mask.astype(jnp.int32)
    not_mask = 1 - mask
    y_embed = jnp.cumsum(not_mask, axis=1).astype(jnp.float32)
    x_embed = jnp.cumsum(not_mask, axis=2).astype(jnp.float32)
    if normalize:
        y_embed = (y_embed + offset) / (y_embed[:, -1:, :] + eps) * scale
        x_embed = (x_embed + offset) / (x_embed[:, :, -1:] + eps) * scale
    dim_t = jnp.arange(num_feats, dtype=jnp.float32)
    dim_t = temperature ** (2.0 * jnp.floor(dim_t / 2.0) / num_feats)
    pos_x = x_embed[:, :, :, None] / dim_t
    pos_y = y_embed[:, :, :, None] / dim_t
    B, H, W = mask.shape
    pos_x = jnp.stack((jnp.sin(pos_x[..., 0::2]), jnp.cos(pos_x[..., 1::2])),
                      axis=4).reshape(B, H, W, -1)
    pos_y = jnp.stack((jnp.sin(pos_y[..., 0::2]), jnp.cos(pos_y[..., 1::2])),
                      axis=4).reshape(B, H, W, -1)
    pos = jnp.concatenate((pos_y, pos_x), axis=3).transpose(0, 3, 1, 2)
    return pos


if __name__ == "__main__":
    B, H, W = 2, 16, 16
    num_feats = 8           # output has 2*num_feats = 16 channels
    temperature = 10000
    normalize = True
    scale = 2 * math.pi
    eps = 1e-6
    offset = 0.0

    key = jax.random.PRNGKey(0)
    # ByteTensor-like mask: nonzero = ignored position (values in {0, 1}).
    mask = jax.random.bernoulli(key, p=0.3, shape=(B, H, W)).astype(jnp.int32)

    pos = sine_positional_encoding(
        mask, num_feats=num_feats, temperature=temperature,
        normalize=normalize, scale=scale, eps=eps, offset=offset)
    pos = jax.block_until_ready(pos)

    assert pos.shape == (B, 2 * num_feats, H, W), pos.shape

    ref = _reference(mask, num_feats=num_feats, temperature=temperature,
                     normalize=normalize, scale=scale, eps=eps, offset=offset)
    ref = jax.block_until_ready(ref)

    assert jnp.allclose(pos, ref, rtol=1e-3, atol=1e-3), (
        float(jnp.max(jnp.abs(pos - ref))))

    print("KERNEL_OK")
</pallas_src>

<mosaic_0001>
module attributes {stable_mosaic.version = 11 : i64} {
  func.func @_sine_pe_kernel(%arg0: i32, %arg1: memref<1x16x16xi32, #tpu.memory_space<vmem>>, %arg2: memref<16x16xf32, #tpu.memory_space<vmem>>, %arg3: memref<16x16xf32, #tpu.memory_space<vmem>>, %arg4: memref<4x1x1xf32, #tpu.memory_space<vmem>>, %arg5: memref<1x16x16x16xf32, #tpu.memory_space<vmem>>) attributes {dimension_semantics = [#tpu.dimension_semantics<parallel>], iteration_bounds = array<i64: 2>, scalar_prefetch = 0 : i64, scratch_operands = 0 : i64, tpu.core_type = #tpu.core_type<tc>, window_params = [{transform_indices = @transform_0, window_bounds = array<i64: 1, 16, 16>}, {pipeline_mode = #tpu.pipeline_mode<synchronous>, transform_indices = @transform_1, window_bounds = array<i64: 16, 16>}, {pipeline_mode = #tpu.pipeline_mode<synchronous>, transform_indices = @transform_2, window_bounds = array<i64: 16, 16>}, {pipeline_mode = #tpu.pipeline_mode<synchronous>, transform_indices = @transform_3, window_bounds = array<i64: 4, 1, 1>}, {transform_indices = @transform_4, window_bounds = array<i64: 1, 16, 16, 16>}]} {
    %c0 = arith.constant 0 : index
    %c0_0 = arith.constant 0 : index
    %c0_1 = arith.constant 0 : index
    %0 = vector.load %arg1[%c0, %c0_0, %c0_1] : memref<1x16x16xi32, #tpu.memory_space<vmem>>, vector<1x16x16xi32>
    %1 = vector.shape_cast %0 : vector<1x16x16xi32> to vector<16x16xi32>
    %2 = arith.sitofp %1 : vector<16x16xi32> to vector<16x16xf32>
    %cst = arith.constant 1.000000e+00 : f32
    %3 = vector.broadcast %cst : f32 to vector<16x16xf32>
    %4 = arith.subf %3, %2 : vector<16x16xf32>
    %c0_2 = arith.constant 0 : index
    %c0_3 = arith.constant 0 : index
    %5 = vector.load %arg2[%c0_2, %c0_3] : memref<16x16xf32, #tpu.memory_space<vmem>>, vector<16x16xf32>
    %cst_4 = arith.constant dense<0.000000e+00> : vector<16x16xf32>
    %6 = tpu.matmul %5, %4, %cst_4 {dimension_numbers = #tpu.dot_dimension_numbers<[1], [0], [0], [1], [0, 0, 1, 1], [], []>} : vector<16x16xf32>, vector<16x16xf32>, vector<16x16xf32> -> vector<16x16xf32>
    %c0_5 = arith.constant 0 : index
    %c0_6 = arith.constant 0 : index
    %7 = vector.load %arg3[%c0_5, %c0_6] : memref<16x16xf32, #tpu.memory_space<vmem>>, vector<16x16xf32>
    %cst_7 = arith.constant dense<0.000000e+00> : vector<16x16xf32>
    %8 = tpu.matmul %4, %7, %cst_7 {dimension_numbers = #tpu.dot_dimension_numbers<[1], [0], [0], [1], [0, 0, 1, 1], [], []>} : vector<16x16xf32>, vector<16x16xf32>, vector<16x16xf32> -> vector<16x16xf32>
    %c0_8 = arith.constant 0 : index
    %c0_9 = arith.constant 0 : index
    %c0_10 = arith.constant 0 : index
    %9 = vector.load %arg4[%c0_8, %c0_9, %c0_10] : memref<4x1x1xf32, #tpu.memory_space<vmem>>, vector<4x1x1xf32>
    %10 = vector.extract_strided_slice %6 {offsets = [15, 0], sizes = [1, 16], strides = [1, 1]} : vector<16x16xf32> to vector<1x16xf32>
    %cst_11 = arith.constant 9.99999997E-7 : f32
    %11 = vector.broadcast %cst_11 : f32 to vector<1x16xf32>
    %12 = arith.addf %10, %11 : vector<1x16xf32>
    %cst_12 = arith.constant 6.28318548 : f32
    %13 = vector.broadcast %cst_12 : f32 to vector<1x16xf32>
    %14 = arith.divf %13, %12 : vector<1x16xf32>
    %15 = vector.extract_strided_slice %8 {offsets = [0, 15], sizes = [16, 1], strides = [1, 1]} : vector<16x16xf32> to vector<16x1xf32>
    %cst_13 = arith.constant 9.99999997E-7 : f32
    %16 = vector.broadcast %cst_13 : f32 to vector<16x1xf32>
    %17 = arith.addf %15, %16 : vector<16x1xf32>
    %cst_14 = arith.constant 6.28318548 : f32
    %18 = vector.broadcast %cst_14 : f32 to vector<16x1xf32>
    %19 = arith.divf %18, %17 : vector<16x1xf32>
    %20 = vector.shape_cast %14 : vector<1x16xf32> to vector<1x1x16xf32>
    %21 = vector.broadcast %20 : vector<1x1x16xf32> to vector<4x1x16xf32>
    %22 = vector.broadcast %9 : vector<4x1x1xf32> to vector<4x1x16xf32>
    %23 = arith.mulf %21, %22 : vector<4x1x16xf32>
    %24 = vector.shape_cast %19 : vector<16x1xf32> to vector<1x16x1xf32>
    %25 = vector.broadcast %24 : vector<1x16x1xf32> to vector<4x16x1xf32>
    %26 = vector.broadcast %9 : vector<4x1x1xf32> to vector<4x16x1xf32>
    %27 = arith.mulf %25, %26 : vector<4x16x1xf32>
    %cst_15 = arith.constant 0.000000e+00 : f32
    %28 = vector.broadcast %cst_15 : f32 to vector<16x16xf32>
    %29 = arith.addf %6, %28 : vector<16x16xf32>
    %30 = vector.shape_cast %29 : vector<16x16xf32> to vector<1x16x16xf32>
    %31 = vector.broadcast %30 : vector<1x16x16xf32> to vector<4x16x16xf32>
    %32 = vector.broadcast %23 : vector<4x1x16xf32> to vector<4x16x16xf32>
    %33 = arith.mulf %31, %32 : vector<4x16x16xf32>
    %cst_16 = arith.constant 0.000000e+00 : f32
    %34 = vector.broadcast %cst_16 : f32 to vector<16x16xf32>
    %35 = arith.addf %8, %34 : vector<16x16xf32>
    %36 = vector.shape_cast %35 : vector<16x16xf32> to vector<1x16x16xf32>
    %37 = vector.broadcast %36 : vector<1x16x16xf32> to vector<4x16x16xf32>
    %38 = vector.broadcast %27 : vector<4x16x1xf32> to vector<4x16x16xf32>
    %39 = arith.mulf %37, %38 : vector<4x16x16xf32>
    %40 = math.sin %33 : vector<4x16x16xf32>
    %41 = math.cos %33 : vector<4x16x16xf32>
    %42 = vector.shape_cast %40 : vector<4x16x16xf32> to vector<4x1x16x16xf32>
    %43 = vector.shape_cast %41 : vector<4x16x16xf32> to vector<4x1x16x16xf32>
    %44 = tpu.concatenate %42, %43 in 1 : vector<4x1x16x16xf32>, vector<4x1x16x16xf32> -> vector<4x2x16x16xf32>
    %45 = vector.shape_cast %44 : vector<4x2x16x16xf32> to vector<8x16x16xf32>
    %46 = math.sin %39 : vector<4x16x16xf32>
    %47 = math.cos %39 : vector<4x16x16xf32>
    %48 = vector.shape_cast %46 : vector<4x16x16xf32> to vector<4x1x16x16xf32>
    %49 = vector.shape_cast %47 : vector<4x16x16xf32> to vector<4x1x16x16xf32>
    %50 = tpu.concatenate %48, %49 in 1 : vector<4x1x16x16xf32>, vector<4x1x16x16xf32> -> vector<4x2x16x16xf32>
    %51 = vector.shape_cast %50 : vector<4x2x16x16xf32> to vector<8x16x16xf32>
    %c0_17 = arith.constant 0 : index
    %c0_18 = arith.constant 0 : index
    %c0_19 = arith.constant 0 : index
    %c0_20 = arith.constant 0 : index
    %52 = vector.load %arg5[%c0_17, %c0_18, %c0_19, %c0_20] : memref<1x16x16x16xf32, #tpu.memory_space<vmem>>, vector<1x8x16x16xf32>
    %53 = vector.shape_cast %52 : vector<1x8x16x16xf32> to vector<8x16x16xf32>
    %54 = vector.shape_cast %45 : vector<8x16x16xf32> to vector<1x8x16x16xf32>
    tpu.vector_store %arg5[%c0_17, %c0_18, %c0_19, %c0_20], %54 {strides = array<i32>} : memref<1x16x16x16xf32, #tpu.memory_space<vmem>>, vector<1x8x16x16xf32>,
    %c0_21 = arith.constant 0 : index
    %c8 = arith.constant 8 : index
    %c0_22 = arith.constant 0 : index
    %c0_23 = arith.constant 0 : index
    %55 = vector.load %arg5[%c0_21, %c8, %c0_22, %c0_23] : memref<1x16x16x16xf32, #tpu.memory_space<vmem>>, vector<1x8x16x16xf32>
    %56 = vector.shape_cast %55 : vector<1x8x16x16xf32> to vector<8x16x16xf32>
    %57 = vector.shape_cast %51 : vector<8x16x16xf32> to vector<1x8x16x16xf32>
    tpu.vector_store %arg5[%c0_21, %c8, %c0_22, %c0_23], %57 {strides = array<i32>} : memref<1x16x16x16xf32, #tpu.memory_space<vmem>>, vector<1x8x16x16xf32>,
    return
  }
  func.func @transform_0(%arg0: i32) -> (i32, i32, i32) {
    %c0_i32 = arith.constant 0 : i32
    %c0_i32_0 = arith.constant 0 : i32
    %c0_i32_1 = arith.constant 0 : i32
    return %arg0, %c0_i32, %c0_i32_0 : i32, i32, i32
  }
  func.func @transform_1(%arg0: i32) -> (i32, i32) {
    %c0_i32 = arith.constant 0 : i32
    %c0_i32_0 = arith.constant 0 : i32
    %c0_i32_1 = arith.constant 0 : i32
    return %c0_i32, %c0_i32_0 : i32, i32
  }
  func.func @transform_2(%arg0: i32) -> (i32, i32) {
    %c0_i32 = arith.constant 0 : i32
    %c0_i32_0 = arith.constant 0 : i32
    %c0_i32_1 = arith.constant 0 : i32
    return %c0_i32, %c0_i32_0 : i32, i32
  }
  func.func @transform_3(%arg0: i32) -> (i32, i32, i32) {
    %c0_i32 = arith.constant 0 : i32
    %c0_i32_0 = arith.constant 0 : i32
    %c0_i32_1 = arith.constant 0 : i32
    %c0_i32_2 = arith.constant 0 : i32
    return %c0_i32, %c0_i32_0, %c0_i32_1 : i32, i32, i32
  }
  func.func @transform_4(%arg0: i32) -> (i32, i32, i32, i32) {
    %c0_i32 = arith.constant 0 : i32
    %c0_i32_0 = arith.constant 0 : i32
    %c0_i32_1 = arith.constant 0 : i32
    %c0_i32_2 = arith.constant 0 : i32
    return %arg0, %c0_i32, %c0_i32_0, %c0_i32_1 : i32, i32, i32, i32
  }
}

</mosaic_0001>

<bundles_post_ra>
// kernel: tpu_custom_call.1
= control target key start
LH: loop header
LB: loop body
LE: loop exit
PB: predicated region body
PF: predicated region fallthrough
CT: control target
= control target key end

     0   :  { %9 = vsyncpa [#allocation3], 0  ;;  %s6558_s0 = inlined_call_operand.hbm [shape: s32[2,16,16], index: 0, kind: input, shape index: {}]   ;;  %s6559_s1 = inlined_call_operand.hbm [shape: f32[16,16], index: 1, kind: input, shape index: {}]   ;;  %s6560_s2 = inlined_call_operand.hbm [shape: f32[16,16], index: 2, kind: input, shape index: {}]   ;;  %s6561_s3 = inlined_call_operand.vmem [shape: f32[4,1,1], index: 3, kind: input, shape index: {}]   ;;  %s6562_s4 = inlined_call_operand.hbm [shape: f32[2,16,16,16], index: 4, kind: output, shape index: {}]  }
   0x1   :  { %11 = vsyncpa [#allocation3 + $0x1], 0 }
   0x2   :  { %12 = vsyncpa [#allocation6], 0 }
   0x3   :  { %13 = vsyncpa [#allocation4], 0 }
   0x4   :  { %15 = vsyncpa [#allocation4 + $0x1], 0  ;;  %s4650_s15 = smov 0   ;;  %s4652_s16 = smov 0  }
   0x5   :  { %s4654_s17 = smov 0   ;;  %s4656_s18 = smov 0  }
   0x6 LB: > { %s4671_s19 = sadd.s32 4294967295, %s4606_s18   ;;  %s4034_s20 = sadd.s32 4294967294, %s4606_s18   ;;  %s4606_s18 = sphi %s4656_s18, %s6613_s18   ;;  %s4602_s17 = sphi %s4654_s17, %s6612_s17   ;;  %s4598_s16 = sphi %s4652_s16, %s6611_s16   ;;  %s4594_s15 = sphi %s4650_s15, %s6610_s15  }
   0x7   : > { %p41_p0 = scmp.ne.s32.totalorder %s4598_s16, %s4594_s15  ;;  %p6563_p1 = scmp.eq.s32.totalorder %s4671_s19, 0 }
   0x8   : > { %p134_p3 = scmp.eq.s32.totalorder %s4034_s20, 1  ;;  %p4035_p5 = scmp.ge.s32.totalorder %s4606_s18, 1 }
   0x9   : > { %p4680_p4 = por %p6563_p1, %p41_p0  ;;  %p141_p7 = scmp.lt.s32.totalorder %s4606_s18, 3 }
   0xa   : > { %p4685_p6 = por %p134_p3, %p41_p0  ;;  %s4608_s24 = smov [#allocation5]  }
   0xb   : > { %s6566_s21 = scalar_select %p4680_p4, 1, 0 }
   0xc   : > { %s6567_s22 = scalar_select %p4685_p6, 1, 0 }
   0xd   : > { %p4690_p8 = pnand %p4035_p5, %p141_p7  ;;  %s153_s25 = sshll.u32 %s4608_s24, 4  ;;  %s4694_s25 = int_to_ptr.vmem [resolvable:$true] %s153_s25 }
   0xe   : > { %s4609_s27 = smov [#allocation7]   ;;  %s4450_s5 = scalar_lea.hbm %s6559_s1, 256 }
   0xf   : > { %p4308_p9 = pneg %p4690_p8  ;;  %s166_s28 = sshll.u32 %s4609_s27, 4  ;;  %s4705_s28 = int_to_ptr.vmem [resolvable:$true] %s166_s28 }
  0x10   : > { %p4451_p12 = scmp.ne.s32.totalorder %s6559_s1, %s4450_s5  ;;  %p4457_p5 = scmp.lt.u32.totalorder %s4450_s5, %s6559_s1 }
  0x11   : > { %p4701_p11 = pnand %p4308_p9, %p6563_p1 }
  0x13   : > { %p4452_p13 = pneg %p4701_p11 }
  0x15   : > { %p4453_p0 = pnand %p4452_p13, %p4451_p12 }
  0x17   : > { %p4454_p3 = pneg %p4453_p0 }
  0x19   : > { %p4459_p7 = pnand %p4457_p5, %p4454_p3 }
  0x1b   : > { %4462 = shalt.err (!%p4459_p7)
}
  0x1c   : > { %s4463_s10 = scalar_lea.vmem %s4694_s25, 256  ;;  %p4471_p2 = scmp.lt.s32.totalorder %s4694_s25, %s4694_s25 }
  0x1d   : > { %p4464_p9 = scmp.ne.s32.totalorder %s4694_s25, %s4463_s10  ;;  %p4472_p12 = scmp.lt.s32.totalorder %s4463_s10, %s4463_s10 }
  0x1f   : > { %p4466_p10 = pnand %p4464_p9, %p4452_p13  ;;  %p4473_p0 = por %p4472_p12, %p4471_p2 }
  0x21   : > { %p4467_p1 = pneg %p4466_p10 }
  0x23   : > { %p4474_p6 = pnand %p4473_p0, %p4467_p1 }
  0x25   : > { %4477 = shalt.err (!%p4474_p6)
}
  0x26   : > { %s4610_s11 = smov 128   ;;  %s4611_s12 = smov 8  }
  0x27   : > { %4311 = dma.hbm_to_vmem [thread:$0]  (!%p4701_p11), %s6559_s1, 256, %s4694_s25, [#allocation6], %s4610_s11, %s4610_s11, %s4611_s12  }
  0x28   : > { %s4478_s27 = scalar_lea.hbm %s6560_s2, 256 }
  0x29   : > { %p4479_p1 = scmp.ne.s32.totalorder %s6560_s2, %s4478_s27  ;;  %p4485_p10 = scmp.lt.u32.totalorder %s4478_s27, %s6560_s2 }
  0x2b   : > { %p4481_p2 = pnand %p4479_p1, %p4452_p13 }
  0x2d   : > { %p4482_p6 = pneg %p4481_p2 }
  0x2f   : > { %p4487_p3 = pnand %p4485_p10, %p4482_p6 }
  0x31   : > { %4490 = shalt.err (!%p4487_p3)
}
  0x32   : > { %s4491_s25 = scalar_lea.vmem %s4705_s28, 256  ;;  %p4499_p12 = scmp.lt.s32.totalorder %s4705_s28, %s4705_s28 }
  0x33   : > { %p4492_p5 = scmp.ne.s32.totalorder %s4705_s28, %s4491_s25  ;;  %p4500_p0 = scmp.lt.s32.totalorder %s4491_s25, %s4491_s25 }
  0x35   : > { %p4494_p7 = pnand %p4492_p5, %p4452_p13  ;;  %p4501_p1 = por %p4500_p0, %p4499_p12 }
  0x37   : > { %p4495_p9 = pneg %p4494_p7 }
  0x39   : > { %p4502_p2 = pnand %p4501_p1, %p4495_p9 }
  0x3b   : > { %4505 = shalt.err (!%p4502_p2)
}
  0x3c   : > { %4314 = dma.hbm_to_vmem [thread:$0]  (!%p4701_p11), %s6560_s2, 256, %s4705_s28, [#allocation6], %s4610_s11, %s4610_s11, %s4611_s12  }
  0x3d   : > { %s4766_s26 = sadd.s32 1, %s4606_s18   ;;  %s28_s9 = sadd.s32 1, %s4602_s17 }
  0x3e   : > { %s25_s10 = ssub.s32 %s4606_s18, %s4766_s26  ;;  %p35_p13 = scmp.ne.s32.totalorder %s4602_s17, %s4598_s16 }
  0x3f   : > { %p26_p6 = scmp.eq.s32.totalorder %s25_s10, 0  ;;  %p36_p10 = scmp.eq.s32.totalorder %s4606_s18, 0 }
  0x40   : > { %p6570_p3 = scmp.eq.s32.totalorder %s4671_s19, 1  ;;  %p4325_p7 = scmp.lt.s32.totalorder %s4606_s18, 2 }
  0x41   : > { %s4782_s14 = scalar_select %p26_p6, %s4602_s17, %s28_s9  }
  0x42   : > { %p4776_p5 = por %p6570_p3, %p35_p13  ;;  %p37_p9 = por %p36_p10, %p35_p13 }
  0x43   : > { %s183_s20 = sand.u32 1, %s4602_s17   ;;  %s4200_s28 = sshll.u32 %s4606_s18, 8 }
  0x44   : > { %s6571_s13 = scalar_select %p4776_p5, 1, 0 }
  0x45   : > { %s4039_s24 = sshll.u32 %s183_s20, 4  ;;  %s4789_s30 = scalar_lea.hbm %s6558_s0, %s4200_s28 }
  0x46   : > { %s187_s5 = scalar_lea.vmem [#allocation2], %s4039_s24  ;;  %p4793_p11 = pnand %p4325_p7, %p37_p9 }
  0x47   : > { %s194_s6 = sshll.u32 %s187_s5, 4  ;;  %s4797_s7 = scalar_lea.sflag [#allocation3], %s183_s20  ;;  %s4791_s6 = int_to_ptr.vmem [resolvable:$true] %s194_s6 }
  0x48   : > { %s4506_s8 = scalar_lea.hbm %s4789_s30, 256  ;;  %p4508_p0 = pneg %p4793_p11 }
  0x49   : > { %p4507_p12 = scmp.ne.s32.totalorder %s4789_s30, %s4506_s8  ;;  %s4511_s24 = scalar_lea.hbm %s6558_s0, 512 }
  0x4a   : > { %p4512_p13 = scmp.lt.u32.totalorder %s4789_s30, %s6558_s0  ;;  %p4513_p6 = scmp.lt.u32.totalorder %s4511_s24, %s4506_s8 }
  0x4b   : > { %p4509_p1 = pnand %p4508_p0, %p4507_p12  ;;  %p4515_p3 = scmp.lt.u32.totalorder %s4506_s8, %s4789_s30 }
  0x4c   : > { %p4514_p10 = por %p4513_p6, %p4512_p13 }
  0x4d   : > { %p4510_p2 = pneg %p4509_p1 }
  0x4e   : > { %p4516_p7 = por %p4515_p3, %p4514_p10 }
  0x50   : > { %p4517_p9 = pnand %p4516_p7, %p4510_p2 }
  0x52   : > { %4520 = shalt.err (!%p4517_p9)
}
  0x53   : > { %s4521_s20 = scalar_lea.vmem %s4791_s6, 256  ;;  %s4612_s29 = smov [#allocation2]  }
  0x54   : > { %p4522_p12 = scmp.ne.s32.totalorder %s4791_s6, %s4521_s20  ;;  %s4526_s5 = sshll.u32 %s4612_s29, 4  ;;  %s4527_s5 = int_to_ptr.vmem [resolvable:$false] %s4526_s5 }
  0x55   : > { %s4528_s9 = scalar_lea.vmem %s4527_s5, 512  ;;  %p4529_p4 = scmp.lt.s32.totalorder %s4791_s6, %s4527_s5 }
  0x56   : > { %p4524_p1 = pnand %p4522_p12, %p4508_p0  ;;  %p4530_p13 = scmp.lt.s32.totalorder %s4528_s9, %s4521_s20 }
  0x58   : > { %p4525_p5 = pneg %p4524_p1  ;;  %p4531_p6 = por %p4530_p13, %p4529_p4 }
  0x5a   : > { %p4532_p10 = pnand %p4531_p6, %p4525_p5 }
  0x5c   : > { %4535 = shalt.err (!%p4532_p10)
}
  0x5d   : > { %4318 = dma.hbm_to_vmem [thread:$0]  (!%p4793_p11), %s4789_s30, 256, %s4791_s6, %s4797_s7, %s4610_s11, %s4610_s11, %s4611_s12  }
  0x5e   : > { %206 = sbr.rel (%p4690_p8) target bundleno = 827 (0x33b), region = 36  ;;  %s4831_s8 = sand.u32 (!%p4690_p8), 1, %s4598_s16  }
  0x5f   : > { %s4043_s10 = sshll.u32 (!%p4690_p8), %s4831_s8, 4  ;;  %s209_s24 = scalar_lea.sflag (!%p4690_p8), [#allocation3], %s4831_s8 }
  0x60   : > { %s212_s28 = scalar_lea.vmem (!%p4690_p8), [#allocation2], %s4043_s10  ;;  %p6573_p4 = scmp.ne.s32.totalorder (!%p4690_p8), %s6566_s21, 0 }
  0x65   : > { %4581 = dma.done.wait (%p6573_p4), %s209_s24, 256  }
  0x66   : > { %4583 = vsyncadd (%p6573_p4), %s209_s24, 4294967040  ;;  %p6574_p5 = scmp.eq.s32.totalorder %s4671_s19, 0 }
  0x68   : > { %4585 = dma.done.wait (%p6574_p5), [#allocation6], 512   ;;  %p6575_p11 = pmov %p6574_p5 }
  0x69   : > { %v436_v0 = vlaneseq  ;;  %v4613_v1 = vmov 0   ;;  %v335_v4 = vld [vmem:[#allocation7] sm:$0xff]  ;;  %v336_v5 = vld [vmem:[#allocation7 + $0x8] sm:$0xff]  ;;  %vm253_vm0 = vcmask 130048   ;;  %v251_v10 = vld [vmem:[#allocation5] sm:$0xff]  ;;  %s4614_s27 = smov 15  }
  0x6a   : > { %4587 = vsyncadd (%p6575_p11), [#allocation6], 4294966784  ;;  %4377 = vset.pattern.permute.xlu1 %v4613_v1  ;;  %4376 = vset.pattern.permute.xlu0 %v4613_v1  ;;  %v245_v6 = vld [vmem:[%s212_s28] sm:$0xff]  ;;  %v4228_v7 = vpack.c.bf16 %v336_v5, %v335_v4  ;;  %v246_v9 = vld [vmem:[%s212_s28 + $0x8] sm:$0xff]  ;;  %v4615_v24 = vmov 15   ;;  %s4046_s20 = sshll.u32 %s4831_s8, 8 }
  0x6b   : > { %v4843_v2 = vshrl.u32 %v436_v0, 7  ;;  %v247_v8 = vcvt.s32.f32 %v245_v6  ;;  %v248_v11 = vcvt.s32.f32 %v246_v9  ;;  %4214 = vmatprep.mubr.msk.f32.mxu0 %vm253_vm0, %v251_v10  ;;  %v420_v12 = vld [vmem:[%s6561_s3 + $0x2] sm:$0x1]  ;;  %v418_v13 = vld [vmem:[%s6561_s3] sm:$0x1]  ;;  %v252_v23 = vld [vmem:[#allocation5 + $0x8] sm:$0xff] }
  0x6c   : > { %v421_v14 = vld [vmem:[%s6561_s3 + $0x3] sm:$0x1]  ;;  %4229 = vmatprep.subr.bf16.mxu1 %v4228_v7  ;;  %v419_v18 = vld [vmem:[%s6561_s3 + $0x1] sm:$0x1]  ;;  %s5200_s29 = scalar_lea.vmem [#allocation8], %s4046_s20  ;;  %s4201_s5 = sshll.u32 %s4671_s19, 12 }
  0x6d   : > { %v4846_v3 = vsub.s32 0, %v4843_v2  ;;  %v249_v15 = vsub.f32 1.0, %v247_v8  ;;  %4231 = vmatpush3.bf16.msra.mxu1 %v4228_v7  ;;  %v250_v19 = vsub.f32 1.0, %v248_v11  ;;  %v511_v49 = vsub.s32 7, %v4843_v2  ;;  %s3942_s9 = sshll.u32 %s5200_s29, 4  ;;  %s6507_s19 = scalar_lea.hbm %s6562_s4, %s4201_s5  ;;  %s6509_s9 = int_to_ptr.vmem [resolvable:$true] %s3942_s9 }
  0x6e   : > { %s3929_s28 = scalar_lea.sflag [#allocation4], %s4831_s8  ;;  %s4536_s21 = scalar_lea.vmem %s6509_s9, 4096 }
  0x6f   : > { %v482_v16 = vrot.slane %v420_v12, %v4846_v3  ;;  %v474_v17 = vrot.slane %v418_v13, %v4846_v3  ;;  %4221 = vmatprep.mubr.msk.f32.mxu1 %vm253_vm0, %v249_v15  ;;  %v486_v20 = vrot.slane %v421_v14, %v4846_v3  ;;  %v4224_v21 = vpack.c.bf16 %v250_v19, %v249_v15  ;;  %p4537_p8 = scmp.ne.s32.totalorder %s6509_s9, %s4536_s21  ;;  %p6607_p0 = scmp.ne.s32.totalorder %s6571_s13, 0 }
  0x70   : > { %v478_v22 = vrot.slane %v419_v18, %v4846_v3  ;;  %4222 = vmatmul.mubr.msk.f32.vlgmr.msra.gmra.mrb[0].mxu1 %vm253_vm0, %v250_v19  ;;  %s4622_s23 = smov [#allocation8]  }
  0x71   : > { %491 = vrot.lane.b32.xlu1 %v482_v16, %s4614_s27  ;;  %487 = vrot.lane.b32.xlu0 %v474_v17, %s4614_s27  ;;  %p4538_p2 = pnand %p4537_p8, %p6607_p0  ;;  %s4540_s11 = sshll.u32 %s4622_s23, 4  ;;  %s4541_s11 = int_to_ptr.vmem [resolvable:$false] %s4540_s11 }
  0x72   : > { %4225 = vmatprep.subr.bf16.mxu0 %v4224_v21  ;;  %s4542_s12 = scalar_lea.vmem %s4541_s11, 8192  ;;  %p4543_p7 = scmp.lt.s32.totalorder %s6509_s9, %s4541_s11 }
  0x73   : > { %4227 = vmatpush3.bf16.msra.mxu0 %v4224_v21  ;;  %p4539_p3 = pneg %p4538_p2  ;;  %p4544_p9 = scmp.lt.s32.totalorder %s4542_s12, %s4536_s21 }
  0x75   : > { %493 = vrot.lane.b32.xlu1 %v486_v20, %s4614_s27  ;;  %489 = vrot.lane.b32.xlu0 %v478_v22, %s4614_s27  ;;  %p4545_p12 = por %p4544_p9, %p4543_p7 }
  0x76   : > { %4215 = vmatmul.mubr.msk.f32.vlgmr.msra.gmra.mrb[0].mxu0 %vm253_vm0, %v252_v23 }
  0x77   : > { %p4546_p1 = pnand %p4545_p12, %p4539_p3 }
  0x79   : > { %442 = vperm.xlu1 %4377, %v419_v18   ;;  %433 = vperm.xlu0 %4376, %v418_v13  }
  0x7d   : > { %451 = vperm.xlu1 %4377, %v420_v12   ;;  %460 = vperm.xlu0 %4376, %v421_v14  }
  0x81   : > { %4379 = vset.pattern.permute.xlu1 %v4615_v24  ;;  %4378 = vset.pattern.permute.xlu0 %v4615_v24 }
  0xe3   : > { %v492_v25 = vpop.permute.xlu1 %491  ;;  %v488_v31 = vpop.permute.xlu0 %487 }
  0xe7   : > { %v494_v30 = vpop.permute.xlu1 %493  ;;  %v490_v36 = vpop.permute.xlu0 %489 }
  0xf8   : > { %v443_v35 = vpop.permute.xlu1 %442  ;;  %v434_v41 = vpop.permute.xlu0 %433 }
  0xf9   : > { %v448_v45 = vrot.slane %v443_v35, %v4846_v3  ;;  %v439_v46 = vrot.slane %v434_v41, %v4846_v3  ;;  %v4616_v41 = vmov 683565275  }
  0xfc   : > { %v452_v40 = vpop.permute.xlu1 %451  ;;  %v461_v56 = vpop.permute.xlu0 %460 }
  0xfd   : > { %v457_v47 = vrot.slane %v452_v40, %v4846_v3  ;;  %v466_v62 = vrot.slane %v461_v56, %v4846_v3  ;;  %v4621_v56 = vmov 1326507024  }
 0x143   : > { %v4868_v26 = vpop.f32.mrb[0].mxu1 }
 0x144   : > { %v426_v27 = vadd.f32 1e-06, %v4868_v26  ;;  %v4871_v28 = vpop.f32.mrb[1].mxu1 }
 0x145   : > { %v425_v29 = vadd.f32 1e-06, %v4871_v28 }
 0x146   : > { %4380 = vrcp.f32 %v426_v27 }
 0x147   : > { %4382 = vrcp.f32 %v425_v29 }
 0x149   : > { %v4874_v32 = vpop.f32.mrb[0].mxu0 }
 0x14a   : > { %v422_v33 = vadd.f32 1e-06, %v4874_v32  ;;  %v4877_v34 = vpop.f32.mrb[1].mxu0 }
 0x14c   : > { %4384 = vrcp.f32 %v422_v33 }
 0x150   : > { %v4381_v37 = vpop.eup %4380 }
 0x151   : > { %v4383_v38 = vpop.eup %4382  ;;  %v430_v39 = vmul.f32 6.2831855, %v4381_v37 }
 0x152   : > { %v428_v42 = vmul.f32 6.2831855, %v4383_v38 }
 0x153   : > { %v500_v43 = vmul.f32 %v488_v31, %v430_v39  ;;  %v502_v44 = vmul.f32 %v490_v36, %v430_v39  ;;  %v504_v52 = vmul.f32 %v492_v25, %v430_v39  ;;  %v506_v17 = vmul.f32 %v494_v30, %v430_v39 }
 0x154   : > { %v503_v51 = vmul.f32 %v492_v25, %v428_v42  ;;  %v499_v60 = vmul.f32 %v488_v31, %v428_v42  ;;  %v505_v61 = vmul.f32 %v494_v30, %v428_v42  ;;  %v501_v7 = vmul.f32 %v490_v36, %v428_v42 }
 0x155   : > { %552 = vperm.xlu1 %4379, %v502_v44   ;;  %542 = vperm.xlu0 %4378, %v500_v43   ;;  %v4617_v43 = vmov 2475754826   ;;  %v4618_v44 = vmov 2131351028  }
 0x156   : > { %v4385_v48 = vpop.eup %4384 }
 0x157   : > { %v424_v50 = vmul.f32 6.2831855, %v4385_v48  ;;  %v4620_v48 = vmov 920167782  }
 0x159   : > { %v468_v53 = vmul.f32 %v448_v45, %v424_v50  ;;  %v467_v54 = vmul.f32 %v439_v46, %v424_v50  ;;  %v469_v55 = vmul.f32 %v457_v47, %v424_v50  ;;  %562 = vperm.xlu1 %4379, %v504_v52   ;;  %557 = vperm.xlu0 %4378, %v503_v51   ;;  %v4619_v46 = vmov 2102212464  }
 0x15a   : > { %v470_v10 = vmul.f32 %v466_v62, %v424_v50 }
 0x15b   : > { %v516_v57 = vrot.slane %v468_v53, %v511_v49  ;;  %v512_v58 = vrot.slane %v467_v54, %v511_v49  ;;  %v520_v59 = vrot.slane %v469_v55, %v511_v49 }
 0x15c   : > { %v4911_v20 = vrot.slane %v470_v10, %v511_v49 }
 0x15d   : > { %v4885_v63 = vmul.f32 %v4874_v32, %v516_v57  ;;  %v4888_v0 = vmul.f32 %v4874_v32, %v512_v58  ;;  %v4891_v1 = vmul.f32 %v4874_v32, %v520_v59  ;;  %567 = vperm.xlu0 %4378, %v505_v61   ;;  %537 = vperm.xlu1 %4379, %v499_v60  }
 0x15e   : > { %v4894_v2 = vmul.f32 %v512_v58, %v4877_v34  ;;  %v4897_v4 = vmul.f32 %v516_v57, %v4877_v34  ;;  %v4900_v5 = vmul.f32 %v520_v59, %v4877_v34  ;;  %v4915_v29 = vmul.f32 %v4874_v32, %v4911_v20 }
 0x15f   : > { %v895_v3 = vand.u32 2147483647, %v4885_v63  ;;  %v898_v6 = vand.u32 2139095040, %v4885_v63  ;;  %v687_v8 = vand.u32 2147483647, %v4888_v0  ;;  %v690_v9 = vand.u32 2139095040, %v4888_v0 }
 0x160   : > { %v1106_v15 = vand.u32 2139095040, %v4891_v1  ;;  %v1103_v35 = vand.u32 2147483647, %v4891_v1  ;;  %vm897_vm14 = vcmp.lt.s32.totalorder %v4885_v63, 0 }
 0x161   : > { %v899_v11 = vshrl.u32 %v898_v6, 23  ;;  %547 = vperm.xlu1 %4379, %v501_v7   ;;  %v902_v12 = vand.u32 8388607, %v895_v3  ;;  %v691_v13 = vshrl.u32 %v690_v9, 23  ;;  %v694_v14 = vand.u32 8388607, %v687_v8 }
 0x162   : > { %v1107_v19 = vshrl.u32 %v1106_v15, 23  ;;  %vm5016_vm15 = vcmp.le.f32.partialorder %v895_v3, 0.7853982 }
 0x163   : > { %v4063_v16 = vadd.s32 4294967169, %v899_v11  ;;  %v4055_v18 = vadd.s32 4294967169, %v691_v13  ;;  %v903_v22 = vor.u32 8388608, %v902_v12  ;;  %v695_v23 = vor.u32 8388608, %v694_v14 }
 0x164   : > { %v4071_v25 = vadd.s32 4294967169, %v1107_v19 }
 0x165   : > { %v905_v21 = vadd.s32 1, %v4063_v16  ;;  %572 = vperm.xlu1 %4379, %v506_v17   ;;  %v697_v24 = vadd.s32 1, %v4055_v18  ;;  %v4918_v36 = vshll.u32 %v903_v22, 8  ;;  %v4920_v38 = vshll.u32 %v695_v23, 8 }
 0x166   : > { %v4922_v39 = vadd.s32 1, %v4071_v25 }
 0x167   : > { %vm906_vm1 = vcmp.gt.s32.totalorder %v905_v21, 0  ;;  %vm698_vm2 = vcmp.gt.s32.totalorder %v697_v24, 0 }
 0x168   : > { %v907_v27 = vsel %vm906_vm1, %v905_v21, 0  ;;  %v699_v30 = vsel %vm698_vm2, %v697_v24, 0  ;;  %vm1114_vm7 = vcmp.gt.s32.totalorder %v4922_v39, 0 }
 0x169   : > { %v908_v31 = vshrl.u32 %v907_v27, 5  ;;  %v909_v33 = vand.u32 31, %v907_v27  ;;  %v701_v37 = vand.u32 31, %v699_v30  ;;  %v4929_v50 = vshrl.u32 %v699_v30, 5 }
 0x16b   : > { %v910_v40 = vsub.s32 32, %v909_v33  ;;  %v912_v42 = vshll.u32 %v4616_v41, %v909_v33  ;;  %v915_v32 = vshll.u32 %v4617_v43, %v909_v33  ;;  %v918_v45 = vshll.u32 %v4618_v44, %v909_v33 }
 0x16c   : > { %v921_v47 = vshll.u32 %v4619_v46, %v909_v33  ;;  %v924_v49 = vshll.u32 %v4620_v48, %v909_v33  ;;  %vm927_vm3 = vcmp.lt.s32.totalorder %v908_v31, 1  ;;  %vm928_vm4 = vcmp.lt.s32.totalorder %v908_v31, 2 }
 0x16d   : > { %v911_v51 = vshrl.u32 %v4616_v41, %v910_v40  ;;  %v913_v52 = vshrl.u32 %v4617_v43, %v910_v40  ;;  %v916_v53 = vshrl.u32 %v4618_v44, %v910_v40  ;;  %v919_v54 = vshrl.u32 %v4619_v46, %v910_v40 }
 0x16e   : > { %v922_v55 = vshrl.u32 %v4620_v48, %v910_v40  ;;  %v925_v57 = vshrl.u32 %v4621_v56, %v910_v40  ;;  %vm930_vm5 = vcmp.lt.s32.totalorder %v908_v31, 4  ;;  %v702_v61 = vsub.s32 32, %v701_v37 }
 0x16f   : > { %v914_v58 = vor.u32 %v913_v52, %v912_v42  ;;  %v917_v59 = vor.u32 %v916_v53, %v915_v32  ;;  %v920_v60 = vor.u32 %v919_v54, %v918_v45  ;;  %vm929_vm6 = vcmp.lt.s32.totalorder %v908_v31, 3 }
 0x170   : > { %v923_v62 = vor.u32 %v922_v55, %v921_v47  ;;  %v926_v6 = vor.u32 %v925_v57, %v924_v49  ;;  %v704_v7 = vshll.u32 %v4616_v41, %v701_v37  ;;  %v707_v16 = vshll.u32 %v4617_v43, %v701_v37 }
 0x171   : > { %v931_v9 = vsel %vm927_vm3, %v911_v51, %v914_v58  ;;  %v932_v10 = vsel %vm930_vm5, %v920_v60, 2102212464  ;;  %v935_v11 = vsel %vm927_vm3, %v914_v58, %v917_v59  ;;  %v939_v12 = vsel %vm927_vm3, %v917_v59, %v920_v60 }
 0x172   : > { %v933_v13 = vsel %vm929_vm6, %v917_v59, %v932_v10  ;;  %v936_v14 = vsel %vm930_vm5, %v923_v62, 920167782  ;;  %v940_v15 = vsel %vm930_vm5, %v926_v6, 1326507024  ;;  %v703_v19 = vshrl.u32 %v4616_v41, %v702_v61 }
 0x173   : > { %v937_v17 = vsel %vm929_vm6, %v920_v60, %v936_v14  ;;  %v941_v18 = vsel %vm929_vm6, %v923_v62, %v940_v15  ;;  %v705_v21 = vshrl.u32 %v4617_v43, %v702_v61  ;;  %v934_v22 = vsel %vm928_vm4, %v931_v9, %v933_v13 }
 0x174   : > { %v938_v23 = vsel %vm928_vm4, %v935_v11, %v937_v17  ;;  %v942_v24 = vsel %vm928_vm4, %v939_v12, %v941_v18  ;;  %v708_v25 = vshrl.u32 %v4618_v44, %v702_v61  ;;  %v710_v45 = vshll.u32 %v4618_v44, %v701_v37 }
 0x175   : > { %v4950_v27 = vmul.u32.u64.low %v4918_v36, %v942_v24  ;;  %v4951_v33 = vmul.u32.u64.high %v4918_v36, %v942_v24, %v4950_v27  ;;  %v4954_v30 = vmul.u32.u64.low %v4918_v36, %v938_v23  ;;  %v4955_v40 = vmul.u32.u64.high %v4918_v36, %v938_v23, %v4954_v30 }
 0x176   : > { %v706_v42 = vor.u32 %v705_v21, %v704_v7  ;;  %v709_v32 = vor.u32 %v708_v25, %v707_v16  ;;  %v711_v47 = vshrl.u32 %v4619_v46, %v702_v61  ;;  %v713_v49 = vshll.u32 %v4619_v46, %v701_v37 }
 0x177   : > { %v714_v31 = vshrl.u32 %v4620_v48, %v702_v61  ;;  %v716_v51 = vshll.u32 %v4620_v48, %v701_v37  ;;  %v717_v52 = vshrl.u32 %v4621_v56, %v702_v61  ;;  %v950_v53 = vmul.u32 %v4918_v36, %v934_v22 }
 0x178   : > { %v712_v54 = vor.u32 %v711_v47, %v710_v45  ;;  %vm719_vm8 = vcmp.lt.s32.totalorder %v4929_v50, 1  ;;  %vm720_vm9 = vcmp.lt.s32.totalorder %v4929_v50, 2  ;;  %vm952_vm10 = vc.u32 %v4951_v33, %v4954_v30 }
 0x179   : > { %v953_v55 = vadd.s32 1, %v4955_v40  ;;  %v715_v57 = vor.u32 %v714_v31, %v713_v49  ;;  %vm721_vm11 = vcmp.lt.s32.totalorder %v4929_v50, 3  ;;  %v718_v58 = vor.u32 %v717_v52, %v716_v51 }
 0x17a   : > { %vm722_vm12 = vcmp.lt.s32.totalorder %v4929_v50, 4  ;;  %v723_v37 = vsel %vm719_vm8, %v703_v19, %v706_v42  ;;  %v727_v59 = vsel %vm719_vm8, %v706_v42, %v709_v32  ;;  %v731_v62 = vsel %vm719_vm8, %v709_v32, %v712_v54 }
 0x17b   : > { %v954_v60 = vsel %vm952_vm10, %v953_v55, %v4955_v40  ;;  %v724_v36 = vsel %vm722_vm12, %v712_v54, 2102212464  ;;  %v728_v61 = vsel %vm722_vm12, %v715_v57, 920167782  ;;  %v732_v10 = vsel %vm722_vm12, %v718_v58, 1326507024 }
 0x17c   : > { %v955_v6 = vadd.s32 %v954_v60, %v950_v53  ;;  %v725_v7 = vsel %vm721_vm11, %v709_v32, %v724_v36  ;;  %v729_v9 = vsel %vm721_vm11, %v712_v54, %v728_v61  ;;  %v733_v13 = vsel %vm721_vm11, %v715_v57, %v732_v10 }
 0x17d   : > { %v726_v11 = vsel %vm720_vm9, %v723_v37, %v725_v7  ;;  %v730_v12 = vsel %vm720_vm9, %v727_v59, %v729_v9  ;;  %v1115_v14 = vsel %vm1114_vm7, %v4922_v39, 0  ;;  %v734_v16 = vsel %vm720_vm9, %v731_v62, %v733_v13 }
 0x17e   : > { %v956_v15 = vadd.s32 536870912, %v955_v6  ;;  %v4981_v17 = vmul.u32.u64.low %v4920_v38, %v730_v12  ;;  %v4982_v18 = vmul.u32.u64.high %v4920_v38, %v730_v12, %v4981_v17  ;;  %v1110_v22 = vand.u32 8388607, %v1103_v35 }
 0x17f   : > { %v4986_v19 = vmul.u32.u64.low %v4920_v38, %v734_v16  ;;  %v4987_v21 = vmul.u32.u64.high %v4920_v38, %v734_v16, %v4986_v19  ;;  %v1117_v24 = vand.u32 31, %v1115_v14  ;;  %v742_v39 = vmul.u32 %v4920_v38, %v726_v11 }
 0x180   : > { %v957_v23 = vshrl.u32 %v956_v15, 30  ;;  %v1314_v25 = vand.u32 2139095040, %v4915_v29  ;;  %v745_v27 = vadd.s32 1, %v4982_v18  ;;  %v1111_v40 = vor.u32 8388608, %v1110_v22 }
 0x181   : > { %vm744_vm13 = vc.u32 %v4987_v21, %v4981_v17  ;;  %v1311_v42 = vand.u32 2147483647, %v4915_v29  ;;  %v1118_v47 = vsub.s32 32, %v1117_v24  ;;  %v4999_v52 = vshrl.u32 %v1115_v14, 5 }
 0x182   : > { %v958_v50 = vshll.u32 %v957_v23, 30  ;;  %v746_v45 = vsel %vm744_vm13, %v745_v27, %v4982_v18  ;;  %v1315_v31 = vshrl.u32 %v1314_v25, 23  ;;  %v5001_v53 = vshll.u32 %v1111_v40, 8 }
 0x183   : > { %v747_v49 = vadd.s32 %v746_v45, %v742_v39  ;;  %v5005_v54 = vand.u32 8388607, %v1311_v42  ;;  %v951_v55 = vadd.s32 %v4954_v30, %v4951_v33  ;;  %v1126_v58 = vshll.u32 %v4618_v44, %v1117_v24 }
 0x184   : > { %v959_v32 = vsub.s32 %v955_v6, %v958_v50  ;;  %v1127_v37 = vshrl.u32 %v4619_v46, %v1118_v47  ;;  %v1120_v60 = vshll.u32 %v4616_v41, %v1117_v24  ;;  %v1121_v36 = vshrl.u32 %v4617_v43, %v1118_v47 }
 0x185   : > { %v748_v38 = vadd.s32 536870912, %v747_v49  ;;  %v4079_v61 = vadd.s32 4294967169, %v1315_v31  ;;  %v1123_v33 = vshll.u32 %v4617_v43, %v1117_v24  ;;  %v1124_v30 = vshrl.u32 %v4618_v44, %v1118_v47 }
 0x186   : > { %v961_v51 = vsub.s32 0, %v959_v32  ;;  %v1129_v7 = vshll.u32 %v4619_v46, %v1117_v24  ;;  %v1130_v10 = vshrl.u32 %v4620_v48, %v1118_v47  ;;  %vm1135_vm1 = vcmp.lt.s32.totalorder %v4999_v52, 1 }
 0x187   : > { %v5010_v59 = vshrl.u32 %v748_v38, 30  ;;  %vm1138_vm2 = vcmp.lt.s32.totalorder %v4999_v52, 4  ;;  %v981_v3 = vsub.s32 4, %v957_v23  ;;  %v1119_v12 = vshrl.u32 %v4616_v41, %v1118_v47 }
 0x188   : > { %v4064_v57 = vmin.u32 %v961_v51, %v959_v32  ;;  %v1128_v13 = vor.u32 %v1127_v37, %v1126_v58  ;;  %v1122_v15 = vor.u32 %v1121_v36, %v1120_v60  ;;  %v1132_v16 = vshll.u32 %v4620_v48, %v1117_v24 }
 0x189   : > { %v750_v9 = vshll.u32 %v5010_v59, 30  ;;  %v1133_v18 = vshrl.u32 %v4621_v56, %v1118_v47  ;;  %v1125_v19 = vor.u32 %v1124_v30, %v1123_v33  ;;  %v1131_v22 = vor.u32 %v1130_v10, %v1129_v7 }
 0x18a   : > { %v963_v6 = vclz %v4064_v57  ;;  %v1140_v39 = vsel %vm1138_vm2, %v1128_v13, 2102212464  ;;  %vm1136_vm4 = vcmp.lt.s32.totalorder %v4999_v52, 2  ;;  %vm1137_vm5 = vcmp.lt.s32.totalorder %v4999_v52, 3 }
 0x18b   : > { %v5028_v14 = vsub.s32 %v747_v49, %v750_v9  ;;  %v982_v24 = vsel %vm897_vm14, %v981_v3, %v957_v23  ;;  %vm689_vm6 = vcmp.lt.s32.totalorder %v4888_v0, 0  ;;  %v1134_v49 = vor.u32 %v1133_v18, %v1132_v16 }
 0x18c   : > { %v4065_v11 = vadd.s32 4294967294, %v963_v6  ;;  %v1139_v31 = vsel %vm1135_vm1, %v1119_v12, %v1122_v15  ;;  %v1141_v51 = vsel %vm1137_vm5, %v1125_v19, %v1140_v39  ;;  %v1144_v58 = vsel %vm1138_vm2, %v1131_v22, 920167782 }
 0x18d   : > { %v753_v50 = vsub.s32 0, %v5028_v14  ;;  %v984_v23 = vsel %vm5016_vm15, 0, %v982_v24  ;;  %v743_v37 = vadd.s32 %v4981_v17, %v4987_v21  ;;  %v773_v36 = vsub.s32 4, %v5010_v59 }
 0x18e   : > { %vm4066_vm3 = vcmp.lt.s32.totalorder %v4065_v11, 0  ;;  %vm5056_vm7 = vcmp.le.f32.partialorder %v687_v8, 0.7853982  ;;  %v1145_v30 = vsel %vm1137_vm5, %v1128_v13, %v1144_v58  ;;  %v1147_v7 = vsel %vm1135_vm1, %v1125_v19, %v1128_v13 }
 0x18f   : > { %v966_v25 = vsel %vm4066_vm3, 0, %v4065_v11  ;;  %v4056_v47 = vmin.u32 %v753_v50, %v5028_v14  ;;  %v1142_v17 = vsel %vm1136_vm4, %v1139_v31, %v1141_v51  ;;  %v1148_v10 = vsel %vm1138_vm2, %v1134_v49, 1326507024 }
 0x190   : > { %v967_v27 = vsub.s32 32, %v966_v25  ;;  %v968_v40 = vshll.u32 %v959_v32, %v966_v25  ;;  %v971_v45 = vsub.s32 4294967266, %v966_v25  ;;  %v1143_v32 = vsel %vm1135_vm1, %v1122_v15, %v1125_v19 }
 0x191   : > { %v755_v60 = vclz %v4056_v47  ;;  %v1146_v21 = vsel %vm1136_vm4, %v1143_v32, %v1145_v30  ;;  %v1149_v3 = vsel %vm1137_vm5, %v1131_v22, %v1148_v10  ;;  %v1321_v12 = vadd.s32 1, %v4079_v61 }
 0x192   : > { %v969_v38 = vshrl.u32 %v951_v55, %v967_v27  ;;  %v972_v57 = vadd.s32 127, %v971_v45  ;;  %v1150_v13 = vsel %vm1136_vm4, %v1147_v7, %v1149_v3  ;;  %v774_v52 = vsel %vm689_vm6, %v773_v36, %v5010_v59 }
 0x193   : > { %v4057_v9 = vadd.s32 4294967294, %v755_v60  ;;  %v5075_v15 = vmul.u32.u64.low %v5001_v53, %v1146_v21  ;;  %v5076_v16 = vmul.u32.u64.high %v5001_v53, %v1146_v21, %v5075_v15  ;;  %vm1322_vm9 = vcmp.gt.s32.totalorder %v1321_v12, 0 }
 0x194   : > { %v970_v6 = vor.u32 %v969_v38, %v968_v40  ;;  %v973_v33 = vshll.u32 %v972_v57, 23  ;;  %v5080_v39 = vmul.u32.u64.low %v5001_v53, %v1150_v13  ;;  %v5081_v25 = vmul.u32.u64.high %v5001_v53, %v1150_v13, %v5080_v39 }
 0x195   : > { %vm4058_vm8 = vcmp.lt.s32.totalorder %v4057_v9, 0  ;;  %v1158_v40 = vmul.u32 %v5001_v53, %v1142_v17  ;;  %v1323_v45 = vsel %vm1322_vm9, %v1321_v12, 0  ;;  %v988_v24 = vadd.s32 3, %v984_v23 }
 0x196   : > { %v974_v8 = vor.u32 4788187, %v973_v33  ;;  %v977_v11 = vcvt.s32.f32 %v970_v6  ;;  %v758_v19 = vsel %vm4058_vm8, 0, %v4057_v9  ;;  %v1161_v31 = vadd.s32 1, %v5076_v16 }
 0x197   : > { %v759_v50 = vsub.s32 32, %v758_v19  ;;  %v760_v27 = vshll.u32 %v5028_v14, %v758_v19  ;;  %v763_v22 = vsub.s32 4294967266, %v758_v19  ;;  %vm1160_vm10 = vc.u32 %v5081_v25, %v5075_v15 }
 0x198   : > { %v975_v18 = vand.u32 2147483647, %v974_v8  ;;  %v1319_v14 = vor.u32 8388608, %v5005_v54  ;;  %v1325_v38 = vand.u32 31, %v1323_v45  ;;  %v776_v59 = vsel %vm5056_vm7, 0, %v774_v52 }
 0x199   : > { %v761_v47 = vshrl.u32 %v743_v37, %v759_v50  ;;  %v764_v49 = vadd.s32 127, %v763_v22  ;;  %v1162_v53 = vsel %vm1160_vm10, %v1161_v31, %v5076_v16  ;;  %v5097_v37 = vand.u32 3, %v984_v23 }
 0x19a   : > { %v978_v61 = vmul.f32 %v977_v11, %v975_v18  ;;  %v1163_v60 = vadd.s32 %v1162_v53, %v1158_v40  ;;  %v1326_v36 = vsub.s32 32, %v1325_v38  ;;  %v5102_v54 = vand.u32 3, %v988_v24 }
 0x19b   : > { %v762_v57 = vor.u32 %v761_v47, %v760_v27  ;;  %v765_v32 = vshll.u32 %v764_v49, 23  ;;  %v780_v7 = vadd.s32 3, %v776_v59  ;;  %v5104_v17 = vshrl.u32 %v1323_v45, 5 }
 0x19c   : > { %v979_v51 = vxor.u32 2147483648, %v978_v61  ;;  %v1164_v9 = vadd.s32 536870912, %v1163_v60  ;;  %v1328_v23 = vshll.u32 %v4616_v41, %v1325_v38  ;;  %v1331_v10 = vshll.u32 %v4617_v43, %v1325_v38 }
 0x19d   : > { %v766_v33 = vor.u32 4788187, %v765_v32  ;;  %v769_v30 = vcvt.s32.f32 %v762_v57  ;;  %v1329_v62 = vshrl.u32 %v4617_v43, %v1326_v36  ;;  %v1332_v11 = vshrl.u32 %v4618_v44, %v1326_v36 }
 0x19e   : > { %v980_v58 = vsel %vm897_vm14, %v979_v51, %v978_v61  ;;  %v5108_v8 = vshrl.u32 %v1164_v9, 30  ;;  %v1337_v3 = vshll.u32 %v4619_v46, %v1325_v38  ;;  %vm991_vm11 = vcmp.eq.s32.totalorder %v5102_v54, 0 }
 0x19f   : > { %v983_v6 = vsel %vm5016_vm15, %v4885_v63, %v980_v58  ;;  %v767_v21 = vand.u32 2147483647, %v766_v33  ;;  %vm1819_vm12 = vcmp.eq.s32.totalorder %v5097_v37, 0  ;;  %vm1822_vm13 = vcmp.eq.s32.totalorder %v5097_v37, 2 }
 0x1a0   : > { %4386 = vcosq.f32 %v983_v6  ;;  %v1338_v13 = vshrl.u32 %v4620_v48, %v1326_v36  ;;  %vm990_vm14 = vcmp.lt.s32.totalorder %v5102_v54, 2  ;;  %vm994_vm15 = vcmp.eq.s32.totalorder %v5102_v54, 2 }
 0x1a1   : > { %4388 = vsinq.f32 %v983_v6  ;;  %v770_v12 = vmul.f32 %v769_v30, %v767_v21  ;;  %vm1818_vm1 = vcmp.lt.s32.totalorder %v5097_v37, 2  ;;  %v1166_v16 = vshll.u32 %v5108_v8, 30 }
 0x1a2   : > { %v1334_v18 = vshll.u32 %v4618_v44, %v1325_v38  ;;  %v1335_v19 = vshrl.u32 %v4619_v46, %v1326_v36  ;;  %vm987_vm2 = vweird.f32 %v4885_v63  ;;  %v5124_v50 = vand.u32 3, %v780_v7 }
 0x1a3   : > { %v771_v39 = vxor.u32 2147483648, %v770_v12  ;;  %v5126_v27 = vand.u32 3, %v776_v59  ;;  %vm1343_vm3 = vcmp.lt.s32.totalorder %v5104_v17, 1  ;;  %v5129_v22 = vsub.s32 %v1163_v60, %v1166_v16 }
 0x1a4   : > { %v1330_v61 = vor.u32 %v1329_v62, %v1328_v23  ;;  %v1333_v52 = vor.u32 %v1332_v11, %v1331_v10  ;;  %v1339_v40 = vor.u32 %v1338_v13, %v1337_v3  ;;  %v1340_v24 = vshll.u32 %v4620_v48, %v1325_v38 }
 0x1a5   : > { %v772_v45 = vsel %vm689_vm6, %v771_v39, %v770_v12  ;;  %v1341_v47 = vshrl.u32 %v4621_v56, %v1326_v36  ;;  %vm1346_vm4 = vcmp.lt.s32.totalorder %v5104_v17, 4  ;;  %v1169_v31 = vsub.s32 0, %v5129_v22 }
 0x1a6   : > { %v775_v49 = vsel %vm5056_vm7, %v4888_v0, %v772_v45  ;;  %v1327_v51 = vshrl.u32 %v4616_v41, %v1326_v36  ;;  %v1336_v57 = vor.u32 %v1335_v19, %v1334_v18  ;;  %v1159_v32 = vadd.s32 %v5075_v15, %v5081_v25 }
 0x1a7   : > { %4390 = vcosq.f32 %v775_v49  ;;  %vm1345_vm5 = vcmp.lt.s32.totalorder %v5104_v17, 3  ;;  %v5144_v38 = vshll.u32 %v1319_v14, 8  ;;  %v4072_v53 = vmin.u32 %v1169_v31, %v5129_v22 }
 0x1a8   : > { %4392 = vsinq.f32 %v775_v49  ;;  %v1348_v55 = vsel %vm1346_vm4, %v1336_v57, 2102212464  ;;  %v1352_v58 = vsel %vm1346_vm4, %v1339_v40, 920167782  ;;  %vm1105_vm7 = vcmp.lt.s32.totalorder %v4891_v1, 0 }
 0x1a9   : > { %v1342_v15 = vor.u32 %v1341_v47, %v1340_v24  ;;  %vm1344_vm8 = vcmp.lt.s32.totalorder %v5104_v17, 2  ;;  %v1351_v25 = vsel %vm1343_vm3, %v1330_v61, %v1333_v52  ;;  %vm1613_vm9 = vcmp.eq.s32.totalorder %v5126_v27, 0 }
 0x1aa   : > { %v4387_v59 = vpop.eup %4386  ;;  %v1171_v6 = vclz %v4072_v53  ;;  %v1189_v33 = vsub.s32 4, %v5108_v8  ;;  %v1347_v30 = vsel %vm1343_vm3, %v1327_v51, %v1330_v61  ;;  %vm782_vm10 = vcmp.lt.s32.totalorder %v5124_v50, 2 }
 0x1ab   : > { %v4389_v60 = vpop.eup %4388  ;;  %v995_v36 = vxor.u32 2147483648, %v4387_v59  ;;  %vm1612_vm6 = vcmp.lt.s32.totalorder %v5126_v27, 2  ;;  %v1349_v21 = vsel %vm1345_vm5, %v1333_v52, %v1348_v55  ;;  %v1353_v23 = vsel %vm1345_vm5, %v1336_v57, %v1352_v58 }
 0x1ac   : > { %v992_v14 = vxor.u32 2147483648, %v4389_v60  ;;  %v4073_v3 = vadd.s32 4294967294, %v1171_v6  ;;  %v1354_v12 = vsel %vm1344_vm8, %v1351_v25, %v1353_v23  ;;  %v1355_v18 = vsel %vm1343_vm3, %v1333_v52, %v1336_v57 }
 0x1ad   : > { %v996_v7 = vsel %vm994_vm15, %v995_v36, %v4389_v60  ;;  %v1824_v9 = vsel %vm1822_vm13, %v995_v36, %v4389_v60  ;;  %vm779_vm15 = vweird.f32 %v4888_v0  ;;  %vm5178_vm13 = vcmp.le.f32.partialorder %v1103_v35, 0.7853982 }
 0x1ae   : > { %v993_v10 = vsel %vm991_vm11, %v4387_v59, %v992_v14  ;;  %v1821_v62 = vsel %vm1819_vm12, %v4387_v59, %v992_v14  ;;  %v1356_v19 = vsel %vm1346_vm4, %v1342_v15, 1326507024  ;;  %vm4074_vm11 = vcmp.lt.s32.totalorder %v4073_v3, 0 }
 0x1af   : > { %v997_v13 = vsel %vm990_vm14, %v993_v10, %v996_v7  ;;  %v1825_v16 = vsel %vm1818_vm1, %v1821_v62, %v1824_v9  ;;  %v1357_v54 = vsel %vm1345_vm5, %v1339_v40, %v1356_v19  ;;  %v1174_v37 = vsel %vm4074_vm11, 0, %v4073_v3 }
 0x1b0   : > { %v998_v35 = vsel %vm987_vm2, nan, %v997_v13  ;;  %v1826_v39 = vsel %vm987_vm2, nan, %v1825_v16  ;;  %v1358_v61 = vsel %vm1344_vm8, %v1355_v18, %v1357_v54  ;;  %v1175_v45 = vsub.s32 32, %v1174_v37 }
 0x1b1   : > { %3900 = vst.msk [vmem:[%s5200_s29 + $0x28] sm:$0xff] %vm253_vm0, %v998_v35  ;;  %3902 = vst.msk [vmem:[%s5200_s29 + $0x38] sm:$0xff] %vm253_vm0, %v1826_v39  ;;  %v5209_v63 = vmul.u32.u64.low %v5144_v38, %v1354_v12  ;;  %v5210_v52 = vmul.u32.u64.high %v5144_v38, %v1354_v12, %v5209_v63  ;;  %v1176_v40 = vshll.u32 %v5129_v22, %v1174_v37  ;;  %v1179_v24 = vsub.s32 4294967266, %v1174_v37  ;;  %v4391_v49 = vpop.eup %4390 }
 0x1b2   : > { %v1350_v47 = vsel %vm1344_vm8, %v1347_v30, %v1349_v21  ;;  %vm783_vm12 = vcmp.eq.s32.totalorder %v5124_v50, 0  ;;  %vm786_vm14 = vcmp.eq.s32.totalorder %v5124_v50, 2  ;;  %v4393_v57 = vpop.eup %4392  ;;  %v787_v59 = vxor.u32 2147483648, %v4391_v49 }
 0x1b3   : > { %v5219_v31 = vmul.u32.u64.low %v5144_v38, %v1358_v61  ;;  %v5220_v51 = vmul.u32.u64.high %v5144_v38, %v1358_v61, %v5219_v31  ;;  %v1177_v53 = vshrl.u32 %v1159_v32, %v1175_v45  ;;  %v1180_v55 = vadd.s32 127, %v1179_v24 }
 0x1b4   : > { %v1190_v22 = vsel %vm1105_vm7, %v1189_v33, %v5108_v8  ;;  %v784_v58 = vxor.u32 2147483648, %v4393_v57  ;;  %v1366_v17 = vmul.u32 %v5144_v38, %v1350_v47  ;;  %v1369_v60 = vadd.s32 1, %v5210_v52 }
 0x1b5   : > { %v586_v36 = vand.u32 2139095040, %v4894_v2  ;;  %v788_v15 = vsel %vm786_vm14, %v787_v59, %v4393_v57  ;;  %vm6582_vm1 = vcmp.eq.s32.totalorder %v5126_v27, 2  ;;  %v1178_v14 = vor.u32 %v1177_v53, %v1176_v40 }
 0x1b6   : > { %v1618_v25 = vsel %vm6582_vm1, %v787_v59, %v4393_v57  ;;  %v1181_v32 = vshll.u32 %v1180_v55, 23  ;;  %v785_v6 = vsel %vm783_vm12, %v4391_v49, %v784_v58  ;;  %v1615_v8 = vsel %vm1613_vm9, %v4391_v49, %v784_v58 }
 0x1b7   : > { %v1192_v38 = vsel %vm5178_vm13, 0, %v1190_v22  ;;  %vm1368_vm2 = vc.u32 %v5220_v51, %v5209_v63  ;;  %v789_v33 = vsel %vm782_vm10, %v785_v6, %v788_v15  ;;  %v1619_v30 = vsel %vm1612_vm6, %v1615_v8, %v1618_v25 }
 0x1b8   : > { %v1182_v7 = vor.u32 4788187, %v1181_v32  ;;  %v1185_v9 = vcvt.s32.f32 %v1178_v14  ;;  %v790_v21 = vsel %vm779_vm15, nan, %v789_v33  ;;  %v1620_v23 = vsel %vm779_vm15, nan, %v1619_v30 }
 0x1b9   : > { %v1370_v10 = vsel %vm1368_vm2, %v1369_v60, %v5210_v52  ;;  %v587_v62 = vshrl.u32 %v586_v36, 23  ;;  %3896 = vst.msk [vmem:[%s5200_s29 + $0x8] sm:$0xff] %vm253_vm0, %v790_v21  ;;  %3898 = vst.msk [vmem:[%s5200_s29 + $0x18] sm:$0xff] %vm253_vm0, %v1620_v23  ;;  %v583_v27 = vand.u32 2147483647, %v4894_v2  ;;  %v794_v13 = vand.u32 2139095040, %v4897_v4 }
 0x1ba   : > { %v1183_v50 = vand.u32 2147483647, %v1182_v7  ;;  %v1371_v3 = vadd.s32 %v1370_v10, %v1366_v17  ;;  %v1196_v18 = vadd.s32 3, %v1192_v38  ;;  %v5255_v37 = vand.u32 3, %v1192_v38 }
 0x1bb   : > { %v4051_v12 = vadd.s32 4294967169, %v587_v62  ;;  %v590_v54 = vand.u32 8388607, %v583_v27  ;;  %v791_v61 = vand.u32 2147483647, %v4897_v4  ;;  %v795_v52 = vshrl.u32 %v794_v13, 23 }
 0x1bc   : > { %v1186_v16 = vmul.f32 %v1185_v9, %v1183_v50  ;;  %v1372_v19 = vadd.s32 536870912, %v1371_v3  ;;  %v5260_v40 = vand.u32 3, %v1196_v18  ;;  %vm1313_vm4 = vcmp.lt.s32.totalorder %v4915_v29, 0 }
 0x1bd   : > { %v593_v35 = vadd.s32 1, %v4051_v12  ;;  %v591_v59 = vor.u32 8388608, %v590_v54  ;;  %v4059_v55 = vadd.s32 4294967169, %v795_v52  ;;  %v5270_v22 = vand.u32 8388607, %v791_v61 }
 0x1be   : > { %v1187_v0 = vxor.u32 2147483648, %v1186_v16  ;;  %v1373_v39 = vshrl.u32 %v1372_v19, 30  ;;  %vm1202_vm5 = vcmp.eq.s32.totalorder %v5260_v40, 2  ;;  %vm2028_vm6 = vcmp.eq.s32.totalorder %v5255_v37, 2 }
 0x1bf   : > { %vm594_vm3 = vcmp.gt.s32.totalorder %v593_v35, 0  ;;  %v5277_v17 = vmul.f32 %v4911_v20, %v4877_v34  ;;  %vm2025_vm8 = vcmp.eq.s32.totalorder %v5255_v37, 0  ;;  %v1367_v36 = vadd.s32 %v5209_v63, %v5220_v51 }
 0x1c0   : > { %v1188_v45 = vsel %vm1105_vm7, %v1187_v0, %v1186_v16  ;;  %v1374_v24 = vshll.u32 %v1373_v39, 30  ;;  %v595_v47 = vsel %vm594_vm3, %v593_v35, 0  ;;  %v1397_v58 = vsub.s32 4, %v1373_v39 }
 0x1c1   : > { %v1191_v49 = vsel %vm5178_vm13, %v4891_v1, %v1188_v45  ;;  %v597_v31 = vand.u32 31, %v595_v47  ;;  %vm1199_vm7 = vcmp.eq.s32.totalorder %v5260_v40, 0  ;;  %vm1198_vm9 = vcmp.lt.s32.totalorder %v5260_v40, 2 }
 0x1c2   : > { %4394 = vcosq.f32 %v1191_v49  ;;  %v5266_v57 = vsub.s32 %v1371_v3, %v1374_v24  ;;  %vm2024_vm10 = vcmp.lt.s32.totalorder %v5255_v37, 2  ;;  %v5290_v20 = vshrl.u32 %v595_v47, 5 }
 0x1c3   : > { %4396 = vsinq.f32 %v1191_v49  ;;  %v598_v53 = vsub.s32 32, %v597_v31  ;;  %v600_v60 = vshll.u32 %v4616_v41, %v597_v31  ;;  %v603_v25 = vshll.u32 %v4617_v43, %v597_v31 }
 0x1c4   : > { %v1377_v11 = vsub.s32 0, %v5266_v57  ;;  %v606_v32 = vshll.u32 %v4618_v44, %v597_v31  ;;  %v5293_v6 = vshll.u32 %v591_v59, 8  ;;  %vm1195_vm15 = vweird.f32 %v4891_v1 }
 0x1c5   : > { %v601_v15 = vshrl.u32 %v4617_v43, %v598_v53  ;;  %v604_v14 = vshrl.u32 %v4618_v44, %v598_v53  ;;  %v607_v63 = vshrl.u32 %v4619_v46, %v598_v53  ;;  %v799_v51 = vor.u32 8388608, %v5270_v22 }
 0x1c6   : > { %v4080_v34 = vmin.u32 %v1377_v11, %v5266_v57  ;;  %v801_v8 = vadd.s32 1, %v4059_v55  ;;  %v999_v38 = vand.u32 2147483647, %v4900_v5  ;;  %v1398_v30 = vsel %vm1313_vm4, %v1397_v58, %v1373_v39 }
 0x1c7   : > { %v599_v7 = vshrl.u32 %v4616_v41, %v598_v53  ;;  %v602_v9 = vor.u32 %v601_v15, %v600_v60  ;;  %v605_v21 = vor.u32 %v604_v14, %v603_v25  ;;  %v609_v23 = vshll.u32 %v4619_v46, %v597_v31 }
 0x1c8   : > { %v1379_v33 = vclz %v4080_v34  ;;  %v610_v10 = vshrl.u32 %v4620_v48, %v598_v53  ;;  %v612_v62 = vshll.u32 %v4620_v48, %v597_v31  ;;  %vm5307_vm13 = vcmp.le.f32.partialorder %v1311_v42, 0.7853982 }
 0x1c9   : > { %v608_v12 = vor.u32 %v607_v63, %v606_v32  ;;  %v613_v13 = vshrl.u32 %v4621_v56, %v598_v53  ;;  %vm615_vm11 = vcmp.lt.s32.totalorder %v5290_v20, 1  ;;  %vm616_vm12 = vcmp.lt.s32.totalorder %v5290_v20, 2 }
 0x1ca   : > { %v4081_v3 = vadd.s32 4294967294, %v1379_v33  ;;  %v611_v16 = vor.u32 %v610_v10, %v609_v23  ;;  %vm617_vm14 = vcmp.lt.s32.totalorder %v5290_v20, 3  ;;  %vm618_vm1 = vcmp.lt.s32.totalorder %v5290_v20, 4 }
 0x1cb   : > { %v614_v19 = vor.u32 %v613_v13, %v612_v62  ;;  %v619_v42 = vsel %vm615_vm11, %v599_v7, %v602_v9  ;;  %v620_v35 = vsel %vm618_vm1, %v608_v12, 2102212464  ;;  %v623_v52 = vsel %vm615_vm11, %v602_v9, %v605_v21 }
 0x1cc   : > { %v4395_v18 = vpop.eup %4394  ;;  %vm4082_vm2 = vcmp.lt.s32.totalorder %v4081_v3, 0  ;;  %v624_v45 = vsel %vm618_vm1, %v611_v16, 920167782  ;;  %v621_v55 = vsel %vm617_vm14, %v605_v21, %v620_v35  ;;  %v627_v32 = vsel %vm615_vm11, %v605_v21, %v608_v12 }
 0x1cd   : > { %v4397_v0 = vpop.eup %4396  ;;  %v1203_v39 = vxor.u32 2147483648, %v4395_v18  ;;  %v1382_v54 = vsel %vm4082_vm2, 0, %v4081_v3  ;;  %v625_v11 = vsel %vm617_vm14, %v608_v12, %v624_v45  ;;  %v1400_v37 = vsel %vm5307_vm13, 0, %v1398_v30 }
 0x1ce   : > { %v1200_v24 = vxor.u32 2147483648, %v4397_v0  ;;  %v1383_v47 = vsub.s32 32, %v1382_v54  ;;  %v1384_v49 = vshll.u32 %v5266_v57, %v1382_v54  ;;  %v1387_v31 = vsub.s32 4294967266, %v1382_v54 }
 0x1cf   : > { %v1204_v59 = vsel %vm1202_vm5, %v1203_v39, %v4397_v0  ;;  %v2030_v53 = vsel %vm2028_vm6, %v1203_v39, %v4397_v0  ;;  %v626_v34 = vsel %vm616_vm12, %v623_v52, %v625_v11  ;;  %v628_v40 = vsel %vm618_vm1, %v614_v19, 1326507024 }
 0x1d0   : > { %v1201_v58 = vsel %vm1199_vm7, %v4395_v18, %v1200_v24  ;;  %v2027_v57 = vsel %vm2025_vm8, %v4395_v18, %v1200_v24  ;;  %v1385_v60 = vshrl.u32 %v1367_v36, %v1383_v47  ;;  %v1388_v15 = vadd.s32 127, %v1387_v31 }
 0x1d1   : > { %v1205_v25 = vsel %vm1198_vm9, %v1201_v58, %v1204_v59  ;;  %v2031_v14 = vsel %vm2024_vm10, %v2027_v57, %v2030_v53  ;;  %v5358_v9 = vmul.u32.u64.low %v5293_v6, %v626_v34  ;;  %v5359_v21 = vmul.u32.u64.high %v5293_v6, %v626_v34, %v5358_v9 }
 0x1d2   : > { %v1206_v63 = vsel %vm1195_vm15, nan, %v1205_v25  ;;  %v2032_v33 = vsel %vm1195_vm15, nan, %v2031_v14  ;;  %v1386_v36 = vor.u32 %v1385_v60, %v1384_v49  ;;  %v1389_v7 = vshll.u32 %v1388_v15, 23 }
 0x1d3   : > { %3904 = vst.msk [vmem:[%s5200_s29 + $0x48] sm:$0xff] %vm253_vm0, %v1206_v63  ;;  %3906 = vst.msk [vmem:[%s5200_s29 + $0x58] sm:$0xff] %vm253_vm0, %v2032_v33  ;;  %v629_v10 = vsel %vm617_vm14, %v611_v16, %v628_v40  ;;  %vm802_vm3 = vcmp.gt.s32.totalorder %v801_v8, 0  ;;  %v622_v62 = vsel %vm616_vm12, %v619_v42, %v621_v55  ;;  %v1002_v12 = vand.u32 2139095040, %v4900_v5 }
 0x1d4   : > { %v1390_v23 = vor.u32 4788187, %v1389_v7  ;;  %v1393_v1 = vcvt.s32.f32 %v1386_v36  ;;  %v630_v30 = vsel %vm616_vm12, %v627_v32, %v629_v10  ;;  %v803_v3 = vsel %vm802_vm3, %v801_v8, 0 }
 0x1d5   : > { %v5370_v18 = vmul.u32.u64.low %v5293_v6, %v630_v30  ;;  %v5371_v19 = vmul.u32.u64.high %v5293_v6, %v630_v30, %v5370_v18  ;;  %v5373_v35 = vshrl.u32 %v803_v3, 5  ;;  %v1404_v0 = vadd.s32 3, %v1400_v37 }
 0x1d6   : > { %v1391_v13 = vand.u32 2147483647, %v1390_v23  ;;  %v641_v16 = vadd.s32 1, %v5359_v21  ;;  %v805_v39 = vand.u32 31, %v803_v3  ;;  %v5378_v42 = vshll.u32 %v799_v51, 8 }
 0x1d7   : > { %v638_v8 = vmul.u32 %v5293_v6, %v622_v62  ;;  %vm823_vm5 = vcmp.lt.s32.totalorder %v5373_v35, 1  ;;  %v1003_v54 = vshrl.u32 %v1002_v12, 23  ;;  %vm825_vm6 = vcmp.lt.s32.totalorder %v5373_v35, 3 }
 0x1d8   : > { %v1394_v20 = vmul.f32 %v1393_v1, %v1391_v13  ;;  %v806_v52 = vsub.s32 32, %v805_v39  ;;  %v808_v45 = vshll.u32 %v4616_v41, %v805_v39  ;;  %v811_v24 = vshll.u32 %v4617_v43, %v805_v39 }
 0x1d9   : > { %vm640_vm7 = vc.u32 %v5371_v19, %v5358_v9  ;;  %v814_v22 = vshll.u32 %v4618_v44, %v805_v39  ;;  %v817_v51 = vshll.u32 %v4619_v46, %v805_v39  ;;  %v820_v25 = vshll.u32 %v4620_v48, %v805_v39 }
 0x1da   : > { %v1395_v47 = vxor.u32 2147483648, %v1394_v20  ;;  %v642_v6 = vsel %vm640_vm7, %v641_v16, %v5359_v21  ;;  %v807_v49 = vshrl.u32 %v4616_v41, %v806_v52  ;;  %v809_v31 = vshrl.u32 %v4617_v43, %v806_v52 }
 0x1db   : > { %v812_v59 = vshrl.u32 %v4618_v44, %v806_v52  ;;  %v643_v55 = vadd.s32 %v642_v6, %v638_v8  ;;  %v815_v11 = vshrl.u32 %v4619_v46, %v806_v52  ;;  %v818_v58 = vshrl.u32 %v4620_v48, %v806_v52 }
 0x1dc   : > { %v1396_v53 = vsel %vm1313_vm4, %v1395_v47, %v1394_v20  ;;  %v810_v60 = vor.u32 %v809_v31, %v808_v45  ;;  %v821_v63 = vshrl.u32 %v4621_v56, %v806_v52  ;;  %vm824_vm4 = vcmp.lt.s32.totalorder %v5373_v35, 2 }
 0x1dd   : > { %v1399_v57 = vsel %vm5307_vm13, %v4915_v29, %v1396_v53  ;;  %v813_v15 = vor.u32 %v812_v59, %v811_v24  ;;  %v644_v14 = vadd.s32 536870912, %v643_v55  ;;  %v816_v34 = vor.u32 %v815_v11, %v814_v22 }
 0x1de   : > { %4398 = vcosq.f32 %v1399_v57  ;;  %v819_v32 = vor.u32 %v818_v58, %v817_v51  ;;  %vm826_vm8 = vcmp.lt.s32.totalorder %v5373_v35, 4  ;;  %v1405_v40 = vand.u32 3, %v1404_v0 }
 0x1df   : > { %4400 = vsinq.f32 %v1399_v57  ;;  %v645_v33 = vshrl.u32 %v644_v14, 30  ;;  %v828_v36 = vsel %vm826_vm8, %v816_v34, 2102212464  ;;  %v831_v50 = vsel %vm823_vm5, %v810_v60, %v813_v15 }
 0x1e0   : > { %v832_v7 = vsel %vm826_vm8, %v819_v32, 920167782  ;;  %v2229_v21 = vand.u32 3, %v1400_v37  ;;  %v822_v23 = vor.u32 %v821_v63, %v820_v25  ;;  %v827_v62 = vsel %vm823_vm5, %v807_v49, %v810_v60 }
 0x1e1   : > { %v833_v1 = vsel %vm825_vm6, %v816_v34, %v832_v7  ;;  %v646_v10 = vshll.u32 %v645_v33, 30  ;;  %v835_v3 = vsel %vm823_vm5, %v813_v15, %v816_v34  ;;  %vm1403_vm9 = vweird.f32 %v4915_v29 }
 0x1e2   : > { %v834_v30 = vsel %vm824_vm4, %v831_v50, %v833_v1  ;;  %v829_v12 = vsel %vm825_vm6, %v813_v15, %v828_v36  ;;  %v836_v37 = vsel %vm826_vm8, %v822_v23, 1326507024  ;;  %v669_v16 = vsub.s32 4, %v645_v33 }
 0x1e3   : > { %v5418_v13 = vmul.u32.u64.low %v5378_v42, %v834_v30  ;;  %v5419_v18 = vmul.u32.u64.high %v5378_v42, %v834_v30, %v5418_v13  ;;  %v5422_v0 = vsub.s32 %v643_v55, %v646_v10  ;;  %v837_v39 = vsel %vm825_vm6, %v819_v32, %v836_v37 }
 0x1e4   : > { %v4067_v20 = vadd.s32 4294967169, %v1003_v54  ;;  %vm2230_vm10 = vcmp.lt.s32.totalorder %v2229_v21, 2  ;;  %vm5428_vm15 = vcmp.le.f32.partialorder %v583_v27, 0.7853982  ;;  %vm585_vm13 = vcmp.lt.s32.totalorder %v4894_v2, 0 }
 0x1e5   : > { %v838_v52 = vsel %vm824_vm4, %v835_v3, %v837_v39  ;;  %vm2231_vm11 = vcmp.eq.s32.totalorder %v2229_v21, 0  ;;  %v649_v45 = vsub.s32 0, %v5422_v0  ;;  %vm2234_vm12 = vcmp.eq.s32.totalorder %v2229_v21, 2 }
 0x1e6   : > { %v5437_v24 = vmul.u32.u64.low %v5378_v42, %v838_v52  ;;  %v5438_v47 = vmul.u32.u64.high %v5378_v42, %v838_v52, %v5437_v24  ;;  %v830_v54 = vsel %vm824_vm4, %v827_v62, %v829_v12  ;;  %v1006_v27 = vand.u32 8388607, %v999_v38 }
 0x1e7   : > { %v1009_v22 = vadd.s32 1, %v4067_v20  ;;  %vm1406_vm14 = vcmp.lt.s32.totalorder %v1405_v40, 2  ;;  %vm1410_vm1 = vcmp.eq.s32.totalorder %v1405_v40, 2  ;;  %v4052_v6 = vmin.u32 %v649_v45, %v5422_v0 }
 0x1e8   : > { %v4399_v51 = vpop.eup %4398  ;;  %v670_v49 = vsel %vm585_vm13, %v669_v16, %v645_v33  ;;  %vm1407_vm2 = vcmp.eq.s32.totalorder %v1405_v40, 0  ;;  %v639_v53 = vadd.s32 %v5358_v9, %v5371_v19  ;;  %v849_v35 = vadd.s32 1, %v5419_v18 }
 0x1e9   : > { %v4401_v31 = vpop.eup %4400  ;;  %v1411_v59 = vxor.u32 2147483648, %v4399_v51  ;;  %v651_v11 = vclz %v4052_v6  ;;  %v846_v58 = vmul.u32 %v5378_v42, %v830_v54  ;;  %vm1010_vm3 = vcmp.gt.s32.totalorder %v1009_v22, 0 }
 0x1ea   : > { %v1408_v55 = vxor.u32 2147483648, %v4401_v31  ;;  %v5454_v15 = vsel %vm5428_vm15, 0, %v670_v49  ;;  %v1007_v25 = vor.u32 8388608, %v1006_v27  ;;  %vm848_vm5 = vc.u32 %v5438_v47, %v5418_v13 }
 0x1eb   : > { %v1412_v57 = vsel %vm1410_vm1, %v1411_v59, %v4401_v31  ;;  %v2236_v60 = vsel %vm2234_vm12, %v1411_v59, %v4401_v31  ;;  %v4053_v19 = vadd.s32 4294967294, %v651_v11  ;;  %v850_v32 = vsel %vm848_vm5, %v849_v35, %v5419_v18 }
 0x1ec   : > { %v1409_v14 = vsel %vm1407_vm2, %v4399_v51, %v1408_v55  ;;  %v2233_v9 = vsel %vm2231_vm11, %v4399_v51, %v1408_v55  ;;  %v1011_v63 = vsel %vm1010_vm3, %v1009_v22, 0  ;;  %v851_v50 = vadd.s32 %v850_v32, %v846_v58 }
 0x1ed   : > { %v1413_v42 = vsel %vm1406_vm14, %v1409_v14, %v1412_v57  ;;  %v2237_v34 = vsel %vm2230_vm10, %v2233_v9, %v2236_v60  ;;  %vm4054_vm6 = vcmp.lt.s32.totalorder %v4053_v19, 0  ;;  %v5471_v40 = vadd.s32 3, %v5454_v15 }
 0x1ee   : > { %v1414_v33 = vsel %vm1403_vm9, nan, %v1413_v42  ;;  %v2238_v36 = vsel %vm1403_vm9, nan, %v2237_v34  ;;  %v654_v7 = vsel %vm4054_vm6, 0, %v4053_v19  ;;  %v1013_v21 = vand.u32 31, %v1011_v63 }
 0x1ef   : > { %3908 = vst.msk [vmem:[%s5200_s29 + $0x68] sm:$0xff] %vm253_vm0, %v1414_v33  ;;  %3910 = vst.msk [vmem:[%s5200_s29 + $0x78] sm:$0xff] %vm253_vm0, %v2238_v36  ;;  %v655_v23 = vsub.s32 32, %v654_v7  ;;  %v656_v1 = vshll.u32 %v5422_v0, %v654_v7  ;;  %v659_v10 = vsub.s32 4294967266, %v654_v7  ;;  %v852_v62 = vadd.s32 536870912, %v851_v50 }
 0x1f0   : > { %vm793_vm7 = vcmp.lt.s32.totalorder %v4897_v4, 0  ;;  %v1014_v29 = vsub.s32 32, %v1013_v21  ;;  %v5475_v30 = vshll.u32 %v1007_v25, 8  ;;  %v1207_v3 = vand.u32 2147483647, %v5277_v17 }
 0x1f1   : > { %v1210_v12 = vand.u32 2139095040, %v5277_v17  ;;  %v657_v37 = vshrl.u32 %v639_v53, %v655_v23  ;;  %v660_v18 = vadd.s32 127, %v659_v10  ;;  %v853_v16 = vshrl.u32 %v852_v62, 30 }
 0x1f2   : > { %v1016_v39 = vshll.u32 %v4616_v41, %v1013_v21  ;;  %v1017_v20 = vshrl.u32 %v4617_v43, %v1014_v29  ;;  %v1019_v0 = vshll.u32 %v4617_v43, %v1013_v21  ;;  %v1020_v52 = vshrl.u32 %v4618_v44, %v1014_v29 }
 0x1f3   : > { %v1025_v45 = vshll.u32 %v4619_v46, %v1013_v21  ;;  %v658_v24 = vor.u32 %v657_v37, %v656_v1  ;;  %v661_v54 = vshll.u32 %v660_v18, 23  ;;  %v854_v27 = vshll.u32 %v853_v16, 30 }
 0x1f4   : > { %v1012_v22 = vshrl.u32 %v1011_v63, 5  ;;  %vm5486_vm4 = vcmp.le.f32.partialorder %v791_v61, 0.7853982  ;;  %v877_v6 = vsub.s32 4, %v853_v16  ;;  %v1022_v49 = vshll.u32 %v4618_v44, %v1013_v21 }
 0x1f5   : > { %v1023_v31 = vshrl.u32 %v4619_v46, %v1014_v29  ;;  %v1026_v59 = vshrl.u32 %v4620_v48, %v1014_v29  ;;  %v662_v53 = vor.u32 4788187, %v661_v54  ;;  %v665_v35 = vcvt.s32.f32 %v658_v24 }
 0x1f6   : > { %v855_v55 = vsub.s32 %v851_v50, %v854_v27  ;;  %v1018_v11 = vor.u32 %v1017_v20, %v1016_v39  ;;  %v1021_v58 = vor.u32 %v1020_v52, %v1019_v0  ;;  %v1028_v60 = vshll.u32 %v4620_v48, %v1013_v21 }
 0x1f7   : > { %v1027_v57 = vor.u32 %v1026_v59, %v1025_v45  ;;  %v1029_v61 = vshrl.u32 %v4621_v56, %v1014_v29  ;;  %v663_v25 = vand.u32 2147483647, %v662_v53  ;;  %v1015_v9 = vshrl.u32 %v4616_v41, %v1014_v29 }
 0x1f8   : > { %v857_v14 = vsub.s32 0, %v855_v55  ;;  %vm1031_vm8 = vcmp.lt.s32.totalorder %v1012_v22, 1  ;;  %v847_v19 = vadd.s32 %v5418_v13, %v5438_v47  ;;  %v1024_v42 = vor.u32 %v1023_v31, %v1022_v49 }
 0x1f9   : > { %v1030_v34 = vor.u32 %v1029_v61, %v1028_v60  ;;  %vm1034_vm9 = vcmp.lt.s32.totalorder %v1012_v22, 4  ;;  %v666_v32 = vmul.f32 %v665_v35, %v663_v25  ;;  %v878_v33 = vsel %vm793_vm7, %v877_v6, %v853_v16 }
 0x1fa   : > { %v4060_v63 = vmin.u32 %v857_v14, %v855_v55  ;;  %vm1033_vm10 = vcmp.lt.s32.totalorder %v1012_v22, 3  ;;  %vm1032_vm11 = vcmp.lt.s32.totalorder %v1012_v22, 2  ;;  %v1036_v36 = vsel %vm1034_vm9, %v1024_v42, 2102212464 }
 0x1fb   : > { %v1039_v50 = vsel %vm1031_vm8, %v1018_v11, %v1021_v58  ;;  %v1040_v7 = vsel %vm1034_vm9, %v1027_v57, 920167782  ;;  %v667_v21 = vxor.u32 2147483648, %v666_v32  ;;  %v1035_v13 = vsel %vm1031_vm8, %v1015_v9, %v1018_v11 }
 0x1fc   : > { %v859_v23 = vclz %v4060_v63  ;;  %v1211_v47 = vshrl.u32 %v1210_v12, 23  ;;  %v1037_v1 = vsel %vm1033_vm10, %v1021_v58, %v1036_v36  ;;  %v1041_v10 = vsel %vm1033_vm10, %v1024_v42, %v1040_v7 }
 0x1fd   : > { %v1043_v62 = vsel %vm1031_vm8, %v1021_v58, %v1024_v42  ;;  %v1044_v29 = vsel %vm1034_vm9, %v1030_v34, 1326507024  ;;  %v668_v37 = vsel %vm585_vm13, %v667_v21, %v666_v32  ;;  %v880_v16 = vsel %vm5486_vm4, 0, %v878_v33 }
 0x1fe   : > { %v4061_v18 = vadd.s32 4294967294, %v859_v23  ;;  %v1042_v39 = vsel %vm1032_vm11, %v1039_v50, %v1041_v10  ;;  %v671_v12 = vsel %vm5428_vm15, %v4894_v2, %v668_v37  ;;  %v1045_v20 = vsel %vm1033_vm10, %v1027_v57, %v1044_v29 }
 0x1ff   : > { %v5518_v0 = vmul.u32.u64.low %v5475_v30, %v1042_v39  ;;  %v5519_v52 = vmul.u32.u64.high %v5475_v30, %v1042_v39, %v5518_v0  ;;  %4402 = vcosq.f32 %v671_v12  ;;  %v1038_v45 = vsel %vm1032_vm11, %v1035_v13, %v1037_v1 }
 0x200   : > { %vm4062_vm12 = vcmp.lt.s32.totalorder %v4061_v18, 0  ;;  %v1046_v24 = vsel %vm1032_vm11, %v1043_v62, %v1045_v20  ;;  %4404 = vsinq.f32 %v671_v12  ;;  %v4075_v59 = vadd.s32 4294967169, %v1211_v47 }
 0x201   : > { %v862_v54 = vsel %vm4062_vm12, 0, %v4061_v18  ;;  %v5524_v27 = vmul.u32.u64.low %v5475_v30, %v1046_v24  ;;  %v5525_v6 = vmul.u32.u64.high %v5475_v30, %v1046_v24, %v5524_v27  ;;  %v1054_v53 = vmul.u32 %v5475_v30, %v1038_v45 }
 0x202   : > { %v863_v8 = vsub.s32 32, %v862_v54  ;;  %v864_v49 = vshll.u32 %v855_v55, %v862_v54  ;;  %v867_v31 = vsub.s32 4294967266, %v862_v54  ;;  %v1057_v35 = vadd.s32 1, %v5519_v52 }
 0x203   : > { %v1214_v11 = vand.u32 8388607, %v1207_v3  ;;  %v677_v22 = vand.u32 3, %v5471_v40  ;;  %v1217_v60 = vadd.s32 1, %v4075_v59  ;;  %v884_v61 = vadd.s32 3, %v880_v16 }
 0x204   : > { %v865_v58 = vshrl.u32 %v847_v19, %v863_v8  ;;  %v868_v57 = vadd.s32 127, %v867_v31  ;;  %vm1056_vm15 = vc.u32 %v5525_v6, %v5518_v0  ;;  %vm675_vm14 = vweird.f32 %v4894_v2 }
 0x205   : > { %v1058_v55 = vsel %vm1056_vm15, %v1057_v35, %v5519_v52  ;;  %vm1218_vm13 = vcmp.gt.s32.totalorder %v1217_v60, 0  ;;  %v1215_v9 = vor.u32 8388608, %v1214_v11  ;;  %vm678_vm1 = vcmp.lt.s32.totalorder %v677_v22, 2 }
 0x206   : > { %v866_v25 = vor.u32 %v865_v58, %v864_v49  ;;  %v869_v14 = vshll.u32 %v868_v57, 23  ;;  %v1059_v30 = vadd.s32 %v1058_v55, %v1054_v53  ;;  %v1219_v42 = vsel %vm1218_vm13, %v1217_v60, 0 }
 0x207   : > { %v1221_v40 = vand.u32 31, %v1219_v42  ;;  %vm679_vm2 = vcmp.eq.s32.totalorder %v677_v22, 0  ;;  %vm682_vm3 = vcmp.eq.s32.totalorder %v677_v22, 2  ;;  %v5536_v63 = vand.u32 3, %v5454_v15 }
 0x208   : > { %v870_v34 = vor.u32 4788187, %v869_v14  ;;  %v873_v32 = vcvt.s32.f32 %v866_v25  ;;  %v1060_v19 = vadd.s32 536870912, %v1059_v30  ;;  %v5540_v50 = vand.u32 3, %v884_v61 }
 0x209   : > { %v5538_v33 = vpop.eup %4402  ;;  %v1222_v7 = vsub.s32 32, %v1221_v40  ;;  %v5542_v21 = vand.u32 3, %v880_v16  ;;  %v5548_v47 = vadd.s32 %v5518_v0, %v5525_v6  ;;  %v5552_v10 = vshll.u32 %v1215_v9, 8 }
 0x20a   : > { %v871_v36 = vand.u32 2147483647, %v870_v34  ;;  %v5544_v23 = vpop.eup %4404  ;;  %v683_v13 = vxor.u32 2147483648, %v5538_v33  ;;  %v5550_v1 = vshrl.u32 %v1060_v19, 30  ;;  %v1224_v29 = vshll.u32 %v4616_v41, %v1221_v40 }
 0x20b   : > { %v680_v15 = vxor.u32 2147483648, %v5544_v23  ;;  %v1225_v37 = vshrl.u32 %v4617_v43, %v1222_v7  ;;  %v1227_v39 = vshll.u32 %v4617_v43, %v1221_v40  ;;  %v1228_v12 = vshrl.u32 %v4618_v44, %v1222_v7 }
 0x20c   : > { %v874_v62 = vmul.f32 %v873_v32, %v871_v36  ;;  %v684_v18 = vsel %vm682_vm3, %v683_v13, %v5544_v23  ;;  %v1062_v16 = vshll.u32 %v5550_v1, 30  ;;  %vm1510_vm5 = vcmp.eq.s32.totalorder %v5536_v63, 0 }
 0x20d   : > { %v681_v20 = vsel %vm679_vm2, %v5538_v33, %v680_v15  ;;  %v1230_v52 = vshll.u32 %v4618_v44, %v1221_v40  ;;  %v1231_v45 = vshrl.u32 %v4619_v46, %v1222_v7  ;;  %v1220_v27 = vshrl.u32 %v1219_v42, 5 }
 0x20e   : > { %v875_v0 = vxor.u32 2147483648, %v874_v62  ;;  %v685_v24 = vsel %vm678_vm1, %v681_v20, %v684_v18  ;;  %v5570_v54 = vsub.s32 %v1059_v30, %v1062_v16  ;;  %v1233_v6 = vshll.u32 %v4619_v46, %v1221_v40 }
 0x20f   : > { %v686_v8 = vsel %vm675_vm14, nan, %v685_v24  ;;  %v1223_v31 = vshrl.u32 %v4616_v41, %v1222_v7  ;;  %v1226_v59 = vor.u32 %v1225_v37, %v1224_v29  ;;  %vm1509_vm6 = vcmp.lt.s32.totalorder %v5536_v63, 2 }
 0x210   : > { %v876_v49 = vsel %vm793_vm7, %v875_v0, %v874_v62  ;;  %v1065_v35 = vsub.s32 0, %v5570_v54  ;;  %v1229_v11 = vor.u32 %v1228_v12, %v1227_v39  ;;  %v1234_v22 = vshrl.u32 %v4620_v48, %v1222_v7  ;;  %3895 = vst.msk [vmem:[%s5200_s29] sm:$0xff] %vm253_vm0, %v686_v8 }
 0x211   : > { %v879_v53 = vsel %vm5486_vm4, %v4897_v4, %v876_v49  ;;  %v1232_v58 = vor.u32 %v1231_v45, %v1230_v52  ;;  %v1236_v57 = vshll.u32 %v4620_v48, %v1221_v40  ;;  %v1237_v60 = vshrl.u32 %v4621_v56, %v1222_v7 }
 0x212   : > { %4406 = vcosq.f32 %v879_v53  ;;  %vm1001_vm7 = vcmp.lt.s32.totalorder %v4900_v5, 0  ;;  %v4068_v61 = vmin.u32 %v1065_v35, %v5570_v54  ;;  %v1235_v51 = vor.u32 %v1234_v22, %v1233_v6 }
 0x213   : > { %4408 = vsinq.f32 %v879_v53  ;;  %vm1239_vm4 = vcmp.lt.s32.totalorder %v1220_v27, 1  ;;  %vm890_vm8 = vcmp.eq.s32.totalorder %v5540_v50, 2  ;;  %v1238_v25 = vor.u32 %v1237_v60, %v1236_v57  ;;  %v543_v57 = vpop.permute.xlu0 %542 }
 0x214   : > { %vm1241_vm9 = vcmp.lt.s32.totalorder %v1220_v27, 3  ;;  %vm1242_vm10 = vcmp.lt.s32.totalorder %v1220_v27, 4  ;;  %vm1513_vm11 = vcmp.eq.s32.totalorder %v5536_v63, 2  ;;  %vm887_vm12 = vcmp.eq.s32.totalorder %v5540_v50, 0 }
 0x215   : > { %v1067_v14 = vclz %v4068_v61  ;;  %vm1240_vm15 = vcmp.lt.s32.totalorder %v1220_v27, 2  ;;  %vm1716_vm13 = vcmp.eq.s32.totalorder %v5542_v21, 0  ;;  %vm1719_vm1 = vcmp.eq.s32.totalorder %v5542_v21, 2 }
 0x216   : > { %v1243_v55 = vsel %vm1239_vm4, %v1223_v31, %v1226_v59  ;;  %v1244_v30 = vsel %vm1242_vm10, %v1232_v58, 2102212464  ;;  %v1247_v9 = vsel %vm1239_vm4, %v1226_v59, %v1229_v11  ;;  %v1248_v42 = vsel %vm1242_vm10, %v1235_v51, 920167782 }
 0x217   : > { %vm5602_vm3 = vcmp.le.f32.partialorder %v999_v38, 0.7853982  ;;  %v4069_v32 = vadd.s32 4294967294, %v1067_v14  ;;  %v1245_v40 = vsel %vm1241_vm9, %v1229_v11, %v1244_v30  ;;  %v1249_v19 = vsel %vm1241_vm9, %v1232_v58, %v1248_v42 }
 0x218   : > { %v1251_v36 = vsel %vm1239_vm4, %v1229_v11, %v1232_v58  ;;  %v1085_v7 = vsub.s32 4, %v5550_v1  ;;  %v1250_v62 = vsel %vm1240_vm15, %v1247_v9, %v1249_v19  ;;  %v1252_v29 = vsel %vm1242_vm10, %v1238_v25, 1326507024  ;;  %v553_v11 = vpop.permute.xlu1 %552 }
 0x219   : > { %v1512_v38 = vsel %vm1510_vm5, %v5538_v33, %v680_v15  ;;  %vm4070_vm2 = vcmp.lt.s32.totalorder %v4069_v32, 0  ;;  %v1253_v37 = vsel %vm1241_vm9, %v1235_v51, %v1252_v29  ;;  %v1246_v12 = vsel %vm1240_vm15, %v1243_v55, %v1245_v40 }
 0x21a   : > { %v5617_v18 = vmul.u32.u64.low %v5552_v10, %v1250_v62  ;;  %v5618_v16 = vmul.u32.u64.high %v5552_v10, %v1250_v62, %v5617_v18  ;;  %v1070_v39 = vsel %vm4070_vm2, 0, %v4069_v32  ;;  %v1254_v20 = vsel %vm1240_vm15, %v1251_v36, %v1253_v37 }
 0x21b   : > { %v1515_v15 = vsel %vm1513_vm11, %v683_v13, %v5544_v23  ;;  %v1071_v0 = vsub.s32 32, %v1070_v39  ;;  %v1072_v52 = vshll.u32 %v5570_v54, %v1070_v39  ;;  %v1075_v45 = vsub.s32 4294967266, %v1070_v39 }
 0x21c   : > { %v1516_v24 = vsel %vm1509_vm6, %v1512_v38, %v1515_v15  ;;  %v4407_v6 = vpop.eup %4406  ;;  %v1086_v27 = vsel %vm1001_vm7, %v1085_v7, %v5550_v1  ;;  %v5635_v8 = vmul.u32.u64.low %v5552_v10, %v1254_v20  ;;  %v5636_v49 = vmul.u32.u64.high %v5552_v10, %v1254_v20, %v5635_v8 }
 0x21d   : > { %v1517_v33 = vsel %vm675_vm14, nan, %v1516_v24  ;;  %v4409_v23 = vpop.eup %4408  ;;  %v891_v13 = vxor.u32 2147483648, %v4407_v6  ;;  %v1073_v54 = vshrl.u32 %v5548_v47, %v1071_v0  ;;  %v1076_v31 = vadd.s32 127, %v1075_v45 }
 0x21e   : > { %v1265_v63 = vadd.s32 1, %v5618_v16  ;;  %3897 = vst.msk [vmem:[%s5200_s29 + $0x10] sm:$0xff] %vm253_vm0, %v1517_v33  ;;  %vm886_vm5 = vcmp.lt.s32.totalorder %v5540_v50, 2  ;;  %v888_v59 = vxor.u32 2147483648, %v4409_v23  ;;  %v1262_v1 = vmul.u32 %v5552_v10, %v1246_v12 }
 0x21f   : > { %vm1715_vm6 = vcmp.lt.s32.totalorder %v5542_v21, 2  ;;  %v892_v2 = vsel %vm890_vm8, %v891_v13, %v4409_v23  ;;  %v1074_v53 = vor.u32 %v1073_v54, %v1072_v52  ;;  %v1077_v35 = vshll.u32 %v1076_v31, 23 }
 0x220   : > { %v1721_v47 = vsel %vm1719_vm1, %v891_v13, %v4409_v23  ;;  %v889_v22 = vsel %vm887_vm12, %v4407_v6, %v888_v59  ;;  %v1088_v58 = vsel %vm5602_vm3, 0, %v1086_v27  ;;  %vm1264_vm14 = vc.u32 %v5636_v49, %v5617_v18  ;;  %v563_v13 = vpop.permute.xlu1 %562 }
 0x221   : > { %v1718_v10 = vsel %vm1716_vm13, %v4407_v6, %v888_v59  ;;  %v893_v60 = vsel %vm886_vm5, %v889_v22, %v892_v2  ;;  %v1078_v61 = vor.u32 4788187, %v1077_v35  ;;  %v1081_v51 = vcvt.s32.f32 %v1074_v53 }
 0x222   : > { %v1266_v25 = vsel %vm1264_vm14, %v1265_v63, %v5618_v16  ;;  %vm6591_vm4 = vweird.f32 %v4897_v4  ;;  %v1722_v55 = vsel %vm1715_vm6, %v1718_v10, %v1721_v47  ;;  %v5665_v30 = vmul.f32 %v4868_v26, %v553_v11 }
 0x223   : > { %v894_v50 = vsel %vm6591_vm4, nan, %v893_v60  ;;  %v1267_v14 = vadd.s32 %v1266_v25, %v1262_v1  ;;  %v1079_v9 = vand.u32 2147483647, %v1078_v61  ;;  %vm6592_vm8 = vmmov %vm6591_vm4  ;;  %v5672_v32 = vmul.f32 %v4868_v26, %v543_v57 }
 0x224   : > { %v1723_v42 = vsel %vm6592_vm8, nan, %v1722_v55  ;;  %3899 = vst.msk [vmem:[%s5200_s29 + $0x20] sm:$0xff] %vm253_vm0, %v894_v50  ;;  %v2554_v19 = vand.u32 2139095040, %v5665_v30  ;;  %v1092_v21 = vadd.s32 3, %v1088_v58  ;;  %v2551_v62 = vand.u32 2147483647, %v5665_v30 }
 0x225   : > { %v1268_v40 = vadd.s32 536870912, %v1267_v14  ;;  %3901 = vst.msk [vmem:[%s5200_s29 + $0x30] sm:$0xff] %vm253_vm0, %v1723_v42  ;;  %v1082_v36 = vmul.f32 %v1081_v51, %v1079_v9  ;;  %v2346_v4 = vand.u32 2139095040, %v5672_v32  ;;  %v5690_v6 = vand.u32 3, %v1088_v58 }
 0x226   : > { %v2555_v29 = vshrl.u32 %v2554_v19, 23  ;;  %v5681_v12 = vand.u32 3, %v1092_v21  ;;  %v2558_v52 = vand.u32 8388607, %v2551_v62  ;;  %vm5696_vm9 = vcmp.le.f32.partialorder %v1207_v3, 0.7853982 }
 0x227   : > { %v1269_v7 = vshrl.u32 %v1268_v40, 30  ;;  %v1083_v38 = vxor.u32 2147483648, %v1082_v36  ;;  %v2347_v20 = vshrl.u32 %v2346_v4, 23  ;;  %v2343_v33 = vand.u32 2147483647, %v5672_v32 }
 0x228   : > { %v4127_v16 = vadd.s32 4294967169, %v2555_v29  ;;  %vm1095_vm11 = vcmp.eq.s32.totalorder %v5681_v12, 0  ;;  %vm1098_vm12 = vcmp.eq.s32.totalorder %v5681_v12, 2  ;;  %v2559_v31 = vor.u32 8388608, %v2558_v52 }
 0x229   : > { %v1270_v37 = vshll.u32 %v1269_v7, 30  ;;  %v1084_v39 = vsel %vm1001_vm7, %v1083_v38, %v1082_v36  ;;  %v1293_v24 = vsub.s32 4, %v1269_v7  ;;  %v4119_v27 = vadd.s32 4294967169, %v2347_v20 }
 0x22a   : > { %v1087_v15 = vsel %vm5602_vm3, %v4900_v5, %v1084_v39  ;;  %v2561_v45 = vadd.s32 1, %v4127_v16  ;;  %vm1209_vm7 = vcmp.lt.s32.totalorder %v5277_v17, 0  ;;  %vm1094_vm15 = vcmp.lt.s32.totalorder %v5681_v12, 2 }
 0x22b   : > { %v5686_v0 = vsub.s32 %v1267_v14, %v1270_v37  ;;  %4410 = vcosq.f32 %v1087_v15  ;;  %v2353_v23 = vadd.s32 1, %v4119_v27  ;;  %v1294_v3 = vsel %vm1209_vm7, %v1293_v24, %v1269_v7 }
 0x22c   : > { %4412 = vsinq.f32 %v1087_v15  ;;  %vm2562_vm10 = vcmp.gt.s32.totalorder %v2561_v45, 0  ;;  %vm1921_vm13 = vcmp.lt.s32.totalorder %v5690_v6, 2  ;;  %vm1922_vm1 = vcmp.eq.s32.totalorder %v5690_v6, 0 }
 0x22d   : > { %v1273_v8 = vsub.s32 0, %v5686_v0  ;;  %v2563_v63 = vsel %vm2562_vm10, %v2561_v45, 0  ;;  %vm2354_vm2 = vcmp.gt.s32.totalorder %v2353_v23, 0  ;;  %vm1091_vm3 = vweird.f32 %v4900_v5 }
 0x22e   : > { %v1263_v59 = vadd.s32 %v5617_v18, %v5636_v49  ;;  %vm1925_vm5 = vcmp.eq.s32.totalorder %v5690_v6, 2  ;;  %v5714_v2 = vmul.f32 %v4868_v26, %v563_v13  ;;  %v5716_v53 = vshrl.u32 %v2563_v63, 5 }
 0x22f   : > { %v4076_v54 = vmin.u32 %v1273_v8, %v5686_v0  ;;  %v2565_v35 = vand.u32 31, %v2563_v63  ;;  %v5720_v47 = vand.u32 8388607, %v2343_v33  ;;  %v5722_v11 = vsel %vm2354_vm2, %v2353_v23, 0 }
 0x230   : > { %v5726_v58 = vsel %vm5696_vm9, 0, %v1294_v3  ;;  %v5728_v18 = vshll.u32 %v2559_v31, 8  ;;  %v5731_v49 = vand.u32 31, %v5722_v11  ;;  %vm2583_vm14 = vcmp.lt.s32.totalorder %v5716_v53, 1 }
 0x231   : > { %v1275_v1 = vclz %v4076_v54  ;;  %v2566_v10 = vsub.s32 32, %v2565_v35  ;;  %v2568_v57 = vshll.u32 %v4616_v41, %v2565_v35  ;;  %v2571_v60 = vshll.u32 %v4617_v43, %v2565_v35 }
 0x232   : > { %v2574_v61 = vshll.u32 %v4618_v44, %v2565_v35  ;;  %v2577_v51 = vshll.u32 %v4619_v46, %v2565_v35  ;;  %v2580_v25 = vshll.u32 %v4620_v48, %v2565_v35  ;;  %vm2584_vm4 = vcmp.lt.s32.totalorder %v5716_v53, 2 }
 0x233   : > { %v4077_v22 = vadd.s32 4294967294, %v1275_v1  ;;  %v2567_v55 = vshrl.u32 %v4616_v41, %v2566_v10  ;;  %v2569_v9 = vshrl.u32 %v4617_v43, %v2566_v10  ;;  %v2572_v42 = vshrl.u32 %v4618_v44, %v2566_v10 }
 0x234   : > { %v2575_v37 = vshrl.u32 %v4619_v46, %v2566_v10  ;;  %v2578_v24 = vshrl.u32 %v4620_v48, %v2566_v10  ;;  %v2581_v63 = vshrl.u32 %v4621_v56, %v2566_v10  ;;  %vm2585_vm8 = vcmp.lt.s32.totalorder %v5716_v53, 3 }
 0x235   : > { %vm4078_vm6 = vcmp.lt.s32.totalorder %v4077_v22, 0  ;;  %v4411_v50 = vpop.eup %4410  ;;  %v2570_v38 = vor.u32 %v2569_v9, %v2568_v57  ;;  %v2573_v4 = vor.u32 %v2572_v42, %v2571_v60  ;;  %vm2586_vm10 = vcmp.lt.s32.totalorder %v5716_v53, 4 }
 0x236   : > { %v1278_v14 = vsel %vm4078_vm6, 0, %v4077_v22  ;;  %v4413_v40 = vpop.eup %4412  ;;  %v1099_v19 = vxor.u32 2147483648, %v4411_v50  ;;  %v2576_v45 = vor.u32 %v2575_v37, %v2574_v61  ;;  %v2579_v3 = vor.u32 %v2578_v24, %v2577_v51 }
 0x237   : > { %v1279_v36 = vsub.s32 32, %v1278_v14  ;;  %v1280_v21 = vshll.u32 %v5686_v0, %v1278_v14  ;;  %v1283_v7 = vsub.s32 4294967266, %v1278_v14  ;;  %v1096_v29 = vxor.u32 2147483648, %v4413_v40 }
 0x238   : > { %v1100_v16 = vsel %vm1098_vm12, %v1099_v19, %v4413_v40  ;;  %v1927_v15 = vsel %vm1925_vm5, %v1099_v19, %v4413_v40  ;;  %v2582_v12 = vor.u32 %v2581_v63, %v2580_v25  ;;  %v2587_v5 = vsel %vm2583_vm14, %v2567_v55, %v2570_v38 }
 0x239   : > { %v1281_v39 = vshrl.u32 %v1263_v59, %v1279_v36  ;;  %v1284_v20 = vadd.s32 127, %v1283_v7  ;;  %v1097_v52 = vsel %vm1095_vm11, %v4411_v50, %v1096_v29  ;;  %v1924_v0 = vsel %vm1922_vm1, %v4411_v50, %v1096_v29 }
 0x23a   : > { %v1101_v27 = vsel %vm1094_vm15, %v1097_v52, %v1100_v16  ;;  %v1928_v13 = vsel %vm1921_vm13, %v1924_v0, %v1927_v15  ;;  %v2591_v6 = vsel %vm2583_vm14, %v2570_v38, %v2573_v4  ;;  %v2588_v22 = vsel %vm2586_vm10, %v2576_v45, 2102212464 }
 0x23b   : > { %v1282_v8 = vor.u32 %v1281_v39, %v1280_v21  ;;  %v1285_v23 = vshll.u32 %v1284_v20, 23  ;;  %v1102_v54 = vsel %vm1091_vm3, nan, %v1101_v27  ;;  %v1929_v31 = vsel %vm1091_vm3, nan, %v1928_v13 }
 0x23c   : > { %3903 = vst.msk [vmem:[%s5200_s29 + $0x40] sm:$0xff] %vm253_vm0, %v1102_v54  ;;  %3905 = vst.msk [vmem:[%s5200_s29 + $0x50] sm:$0xff] %vm253_vm0, %v1929_v31  ;;  %v2592_v10 = vsel %vm2586_vm10, %v2579_v3, 920167782  ;;  %v2595_v57 = vsel %vm2583_vm14, %v2573_v4, %v2576_v45  ;;  %v2589_v60 = vsel %vm2585_vm8, %v2573_v4, %v2588_v22  ;;  %v2596_v51 = vsel %vm2586_vm10, %v2582_v12, 1326507024 }
 0x23d   : > { %v1286_v59 = vor.u32 4788187, %v1285_v23  ;;  %v1289_v1 = vcvt.s32.f32 %v1282_v8  ;;  %v2593_v61 = vsel %vm2585_vm8, %v2576_v45, %v2592_v10  ;;  %v5780_v25 = vsub.s32 32, %v5731_v49 }
 0x23e   : > { %v2590_v14 = vsel %vm2584_vm4, %v2587_v5, %v2589_v60  ;;  %v2594_v55 = vsel %vm2584_vm4, %v2591_v6, %v2593_v61  ;;  %v2597_v9 = vsel %vm2585_vm8, %v2579_v3, %v2596_v51  ;;  %v2351_v36 = vor.u32 8388608, %v5720_v47 }
 0x23f   : > { %v1287_v35 = vand.u32 2147483647, %v1286_v59  ;;  %v2598_v42 = vsel %vm2584_vm4, %v2595_v57, %v2597_v9  ;;  %v5791_v40 = vmul.u32.u64.low %v5728_v18, %v2594_v55  ;;  %v5792_v19 = vmul.u32.u64.high %v5728_v18, %v2594_v55, %v5791_v40 }
 0x240   : > { %v1300_v7 = vadd.s32 3, %v5726_v58  ;;  %v5798_v29 = vmul.u32.u64.low %v5728_v18, %v2598_v42  ;;  %v5799_v38 = vmul.u32.u64.high %v5728_v18, %v2598_v42, %v5798_v29  ;;  %v2606_v4 = vmul.u32 %v5728_v18, %v2590_v14 }
 0x241   : > { %v1290_v50 = vmul.f32 %v1289_v1, %v1287_v35  ;;  %v5803_v37 = vshrl.u32 %v5722_v11, 5  ;;  %v2361_v53 = vshrl.u32 %v4617_v43, %v5780_v25  ;;  %v2364_v16 = vshrl.u32 %v4618_v44, %v5780_v25 }
 0x242   : > { %v2360_v39 = vshll.u32 %v4616_v41, %v5731_v49  ;;  %v2363_v20 = vshll.u32 %v4617_v43, %v5731_v49  ;;  %v2367_v18 = vshrl.u32 %v4619_v46, %v5780_v25  ;;  %v2609_v15 = vadd.s32 1, %v5792_v19 }
 0x243   : > { %v1291_v21 = vxor.u32 2147483648, %v1290_v50  ;;  %v2366_v52 = vshll.u32 %v4618_v44, %v5731_v49  ;;  %v2369_v0 = vshll.u32 %v4619_v46, %v5731_v49  ;;  %v2370_v34 = vshrl.u32 %v4620_v48, %v5780_v25 }
 0x244   : > { %v2362_v45 = vor.u32 %v2361_v53, %v2360_v39  ;;  %v2365_v24 = vor.u32 %v2364_v16, %v2363_v20  ;;  %v2372_v13 = vshll.u32 %v4620_v48, %v5731_v49  ;;  %v2373_v54 = vshrl.u32 %v4621_v56, %v5780_v25 }
 0x245   : > { %v1292_v47 = vsel %vm1209_vm7, %v1291_v21, %v1290_v50  ;;  %vm2608_vm7 = vc.u32 %v5799_v38, %v5791_v40  ;;  %v2368_v8 = vor.u32 %v2367_v18, %v2366_v52  ;;  %v2762_v31 = vand.u32 2139095040, %v5714_v2 }
 0x246   : > { %v1295_v11 = vsel %vm5696_vm9, %v5277_v17, %v1292_v47  ;;  %v2610_v27 = vsel %vm2608_vm7, %v2609_v15, %v5792_v19  ;;  %v1301_v3 = vand.u32 3, %v1300_v7  ;;  %v2126_v63 = vand.u32 3, %v5726_v58 }
 0x247   : > { %4414 = vcosq.f32 %v1295_v11  ;;  %v2611_v23 = vadd.s32 %v2610_v27, %v2606_v4  ;;  %v2371_v59 = vor.u32 %v2370_v34, %v2369_v0  ;;  %vm2375_vm9 = vcmp.lt.s32.totalorder %v5803_v37, 1 }
 0x248   : > { %4416 = vsinq.f32 %v1295_v11  ;;  %v2374_v12 = vor.u32 %v2373_v54, %v2372_v13  ;;  %vm2378_vm11 = vcmp.lt.s32.totalorder %v5803_v37, 4  ;;  %v2383_v5 = vsel %vm2375_vm9, %v2362_v45, %v2365_v24 }
 0x249   : > { %v2612_v1 = vadd.s32 536870912, %v2611_v23  ;;  %vm1299_vm12 = vweird.f32 %v5277_v17  ;;  %vm2376_vm15 = vcmp.lt.s32.totalorder %v5803_v37, 2  ;;  %vm2377_vm13 = vcmp.lt.s32.totalorder %v5803_v37, 3 }
 0x24a   : > { %v2384_v49 = vsel %vm2378_vm11, %v2371_v59, 920167782  ;;  %v2387_v58 = vsel %vm2375_vm9, %v2365_v24, %v2368_v8  ;;  %v2388_v22 = vsel %vm2378_vm11, %v2374_v12, 1326507024  ;;  %v2763_v10 = vshrl.u32 %v2762_v31, 23  ;;  %v558_v12 = vpop.permute.xlu0 %557 }
 0x24b   : > { %v2613_v6 = vshrl.u32 %v2612_v1, 30  ;;  %v2385_v35 = vsel %vm2377_vm13, %v2368_v8, %v2384_v49  ;;  %vm2127_vm1 = vcmp.lt.s32.totalorder %v2126_v63, 2  ;;  %v2389_v60 = vsel %vm2377_vm13, %v2371_v59, %v2388_v22 }
 0x24c   : > { %v2386_v57 = vsel %vm2376_vm15, %v2383_v5, %v2385_v35  ;;  %v2391_v61 = vshll.u32 %v2351_v36, 8  ;;  %vm2131_vm2 = vcmp.eq.s32.totalorder %v2126_v63, 2  ;;  %v2380_v50 = vsel %vm2378_vm11, %v2368_v8, 2102212464 }
 0x24d   : > { %v2614_v51 = vshll.u32 %v2613_v6, 30  ;;  %v2390_v14 = vsel %vm2376_vm15, %v2387_v58, %v2389_v60  ;;  %vm1306_vm3 = vcmp.eq.s32.totalorder %v1301_v3, 2  ;;  %v2359_v36 = vshrl.u32 %v4616_v41, %v5780_v25 }
 0x24e   : > { %v5859_v55 = vmul.u32.u64.low %v2391_v61, %v2390_v14  ;;  %v5860_v9 = vmul.u32.u64.high %v2391_v61, %v2390_v14, %v5859_v55  ;;  %v5862_v42 = vmul.u32.u64.low %v2391_v61, %v2386_v57  ;;  %v5863_v19 = vmul.u32.u64.high %v2391_v61, %v2386_v57, %v5862_v42 }
 0x24f   : > { %v5866_v7 = vsub.s32 %v2611_v23, %v2614_v51  ;;  %v4135_v29 = vadd.s32 4294967169, %v2763_v10  ;;  %vm1302_vm5 = vcmp.lt.s32.totalorder %v1301_v3, 2  ;;  %vm1303_vm6 = vcmp.eq.s32.totalorder %v1301_v3, 0 }
 0x250   : > { %vm2128_vm14 = vcmp.eq.s32.totalorder %v2126_v63, 0  ;;  %v2379_v39 = vsel %vm2375_vm9, %v2359_v36, %v2362_v45  ;;  %v2381_v20 = vsel %vm2377_vm13, %v2365_v24, %v2380_v50  ;;  %v2637_v11 = vsub.s32 4, %v2613_v6 }
 0x251   : > { %v4415_v21 = vpop.eup %4414  ;;  %v2617_v47 = vsub.s32 0, %v5866_v7  ;;  %v2759_v15 = vand.u32 2147483647, %v5714_v2  ;;  %v2769_v8 = vadd.s32 1, %v4135_v29  ;;  %v2382_v24 = vsel %vm2376_vm15, %v2379_v39, %v2381_v20 }
 0x252   : > { %v4417_v4 = vpop.eup %4416  ;;  %v1307_v53 = vxor.u32 2147483648, %v4415_v21  ;;  %vm2400_vm4 = vc.u32 %v5860_v9, %v5862_v42  ;;  %vm2553_vm8 = vcmp.lt.s32.totalorder %v5665_v30, 0  ;;  %v2401_v31 = vadd.s32 1, %v5863_v19 }
 0x253   : > { %v1304_v16 = vxor.u32 2147483648, %v4417_v4  ;;  %v4128_v27 = vmin.u32 %v2617_v47, %v5866_v7  ;;  %v2766_v37 = vand.u32 8388607, %v2759_v15  ;;  %v2638_v17 = vsel %vm2553_vm8, %v2637_v11, %v2613_v6 }
 0x254   : > { %v1308_v18 = vsel %vm1306_vm3, %v1307_v53, %v4417_v4  ;;  %v2133_v25 = vsel %vm2131_vm2, %v1307_v53, %v4417_v4  ;;  %v2398_v63 = vmul.u32 %v2391_v61, %v2382_v24  ;;  %vm2770_vm10 = vcmp.gt.s32.totalorder %v2769_v8, 0 }
 0x255   : > { %v1305_v52 = vsel %vm1303_vm6, %v4415_v21, %v1304_v16  ;;  %v2130_v0 = vsel %vm2128_vm14, %v4415_v21, %v1304_v16  ;;  %v2619_v54 = vclz %v4128_v27  ;;  %v2402_v59 = vsel %vm2400_vm4, %v2401_v31, %v5863_v19 }
 0x256   : > { %v1309_v34 = vsel %vm1302_vm5, %v1305_v52, %v1308_v18  ;;  %v2134_v45 = vsel %vm2127_vm1, %v2130_v0, %v2133_v25  ;;  %v2771_v1 = vsel %vm2770_vm10, %v2769_v8, 0  ;;  %vm5901_vm7 = vcmp.le.f32.partialorder %v2551_v62, 0.7853982 }
 0x257   : > { %v1310_v23 = vsel %vm1299_vm12, nan, %v1309_v34  ;;  %v2135_v13 = vsel %vm1299_vm12, nan, %v2134_v45  ;;  %v4129_v3 = vadd.s32 4294967294, %v2619_v54  ;;  %v2403_v49 = vadd.s32 %v2402_v59, %v2398_v63 }
 0x258   : > { %3907 = vst.msk [vmem:[%s5200_s29 + $0x60] sm:$0xff] %vm253_vm0, %v1310_v23  ;;  %3909 = vst.msk [vmem:[%s5200_s29 + $0x70] sm:$0xff] %vm253_vm0, %v2135_v13  ;;  %v2773_v58 = vand.u32 31, %v2771_v1  ;;  %v2607_v35 = vadd.s32 %v5791_v40, %v5799_v38  ;;  %v2640_v6 = vsel %vm5901_vm7, 0, %v2638_v17  ;;  %v2767_v10 = vor.u32 8388608, %v2766_v37 }
 0x259   : > { %vm4130_vm9 = vcmp.lt.s32.totalorder %v4129_v3, 0  ;;  %v2404_v61 = vadd.s32 536870912, %v2403_v49  ;;  %v5910_v51 = vmul.f32 %v558_v12, %v4871_v28  ;;  %vm2345_vm11 = vcmp.lt.s32.totalorder %v5672_v32, 0 }
 0x25a   : > { %v2622_v22 = vsel %vm4130_vm9, 0, %v4129_v3  ;;  %v2774_v62 = vsub.s32 32, %v2773_v58  ;;  %v5914_v40 = vadd.s32 3, %v2640_v6  ;;  %v5916_v38 = vand.u32 3, %v2640_v6 }
 0x25b   : > { %v2623_v57 = vsub.s32 32, %v2622_v22  ;;  %v2627_v60 = vsub.s32 4294967266, %v2622_v22  ;;  %v2624_v50 = vshll.u32 %v5866_v7, %v2622_v22  ;;  %v2405_v19 = vshrl.u32 %v2404_v61, 30 }
 0x25c   : > { %v5920_v21 = vadd.s32 %v5862_v42, %v5860_v9  ;;  %v5922_v36 = vshll.u32 %v2767_v10, 8  ;;  %vm5926_vm12 = vcmp.le.f32.partialorder %v2343_v33, 0.7853982  ;;  %v2658_v16 = vand.u32 2139095040, %v5910_v51 }
 0x25d   : > { %v2625_v14 = vshrl.u32 %v2607_v35, %v2623_v57  ;;  %v2628_v55 = vadd.s32 127, %v2627_v60  ;;  %v2406_v7 = vshll.u32 %v2405_v19, 30  ;;  %v5931_v47 = vshrl.u32 %v2771_v1, 5 }
 0x25e   : > { %v2777_v39 = vshrl.u32 %v4617_v43, %v2774_v62  ;;  %v2780_v9 = vshrl.u32 %v4618_v44, %v2774_v62  ;;  %v2786_v42 = vshrl.u32 %v4620_v48, %v2774_v62  ;;  %v2429_v25 = vsub.s32 4, %v2405_v19 }
 0x25f   : > { %v2626_v29 = vor.u32 %v2625_v14, %v2624_v50  ;;  %v2629_v4 = vshll.u32 %v2628_v55, 23  ;;  %v5936_v18 = vsub.s32 %v2403_v49, %v2406_v7  ;;  %v2783_v33 = vshrl.u32 %v4619_v46, %v2774_v62 }
 0x260   : > { %v2776_v11 = vshll.u32 %v4616_v41, %v2773_v58  ;;  %v2779_v52 = vshll.u32 %v4617_v43, %v2773_v58  ;;  %v2785_v0 = vshll.u32 %v4619_v46, %v2773_v58  ;;  %v2789_v27 = vshrl.u32 %v4621_v56, %v2774_v62 }
 0x261   : > { %v2630_v20 = vor.u32 4788187, %v2629_v4  ;;  %v2633_v34 = vcvt.s32.f32 %v2626_v29  ;;  %v2409_v45 = vsub.s32 0, %v5936_v18  ;;  %v2782_v24 = vshll.u32 %v4618_v44, %v2773_v58 }
 0x262   : > { %v2778_v23 = vor.u32 %v2777_v39, %v2776_v11  ;;  %v2781_v13 = vor.u32 %v2780_v9, %v2779_v52  ;;  %v2787_v54 = vor.u32 %v2786_v42, %v2785_v0  ;;  %v2788_v31 = vshll.u32 %v4620_v48, %v2773_v58 }
 0x263   : > { %v2631_v8 = vand.u32 2147483647, %v2630_v20  ;;  %v4120_v3 = vmin.u32 %v2409_v45, %v5936_v18  ;;  %v2430_v17 = vsel %vm2345_vm11, %v2429_v25, %v2405_v19  ;;  %v2784_v63 = vor.u32 %v2783_v33, %v2782_v24 }
 0x264   : > { %v2775_v59 = vshrl.u32 %v4616_v41, %v2774_v62  ;;  %v2790_v1 = vor.u32 %v2789_v27, %v2788_v31  ;;  %v2655_v12 = vand.u32 2147483647, %v5910_v51  ;;  %v2659_v49 = vshrl.u32 %v2658_v16, 23 }
 0x265   : > { %v2634_v37 = vmul.f32 %v2633_v34, %v2631_v8  ;;  %v2411_v22 = vclz %v4120_v3  ;;  %vm2791_vm15 = vcmp.lt.s32.totalorder %v5931_v47, 1  ;;  %vm2794_vm13 = vcmp.lt.s32.totalorder %v5931_v47, 4 }
 0x266   : > { %v2432_v58 = vsel %vm5926_vm12, 0, %v2430_v17  ;;  %vm2793_vm1 = vcmp.lt.s32.totalorder %v5931_v47, 3  ;;  %v2799_v6 = vsel %vm2791_vm15, %v2778_v23, %v2781_v13  ;;  %v2800_v10 = vsel %vm2794_vm13, %v2787_v54, 920167782 }
 0x267   : > { %v2635_v35 = vxor.u32 2147483648, %v2634_v37  ;;  %v4121_v60 = vadd.s32 4294967294, %v2411_v22  ;;  %vm2792_vm2 = vcmp.lt.s32.totalorder %v5931_v47, 2  ;;  %v2801_v61 = vsel %vm2793_vm1, %v2784_v63, %v2800_v10 }
 0x268   : > { %v2795_v50 = vsel %vm2791_vm15, %v2775_v59, %v2778_v23  ;;  %v2796_v14 = vsel %vm2794_vm13, %v2784_v63, 2102212464  ;;  %v2803_v55 = vsel %vm2791_vm15, %v2781_v13, %v2784_v63  ;;  %v2802_v19 = vsel %vm2792_vm2, %v2799_v6, %v2801_v61 }
 0x269   : > { %v2636_v57 = vsel %vm2553_vm8, %v2635_v35, %v2634_v37  ;;  %vm4122_vm3 = vcmp.lt.s32.totalorder %v4121_v60, 0  ;;  %v2804_v29 = vsel %vm2794_vm13, %v2790_v1, 1326507024  ;;  %v4131_v5 = vadd.s32 4294967169, %v2659_v49  ;;  %v568_v1 = vpop.permute.xlu0 %567 }
 0x26a   : > { %v2639_v62 = vsel %vm5901_vm7, %v5665_v30, %v2636_v57  ;;  %v2414_v4 = vsel %vm4122_vm3, 0, %v4121_v60  ;;  %v2805_v7 = vsel %vm2793_vm1, %v2787_v54, %v2804_v29  ;;  %v2797_v9 = vsel %vm2793_vm1, %v2781_v13, %v2796_v14 }
 0x26b   : > { %4418 = vcosq.f32 %v2639_v62  ;;  %v2415_v16 = vsub.s32 32, %v2414_v4  ;;  %v2419_v39 = vsub.s32 4294967266, %v2414_v4  ;;  %v2806_v42 = vsel %vm2792_vm2, %v2803_v55, %v2805_v7 }
 0x26c   : > { %4420 = vsinq.f32 %v2639_v62  ;;  %v5979_v20 = vmul.u32.u64.low %v5922_v36, %v2806_v42  ;;  %v5980_v25 = vmul.u32.u64.high %v5922_v36, %v2806_v42, %v5979_v20  ;;  %v2416_v52 = vshll.u32 %v5936_v18, %v2414_v4 }
 0x26d   : > { %v5983_v33 = vmul.u32.u64.low %v5922_v36, %v2802_v19  ;;  %v5984_v11 = vmul.u32.u64.high %v5922_v36, %v2802_v19, %v5983_v33  ;;  %v2417_v0 = vshrl.u32 %v5920_v21, %v2415_v16  ;;  %v2420_v27 = vadd.s32 127, %v2419_v39 }
 0x26e   : > { %v2665_v8 = vadd.s32 1, %v4131_v5  ;;  %v2645_v34 = vand.u32 3, %v5914_v40  ;;  %v2798_v45 = vsel %vm2792_vm2, %v2795_v50, %v2797_v9  ;;  %vm3474_vm5 = vcmp.lt.s32.totalorder %v5916_v38, 2 }
 0x26f   : > { %vm3475_vm6 = vcmp.eq.s32.totalorder %v5916_v38, 0  ;;  %v2418_v24 = vor.u32 %v2417_v0, %v2416_v52  ;;  %v2421_v23 = vshll.u32 %v2420_v27, 23  ;;  %vm2643_vm4 = vweird.f32 %v5665_v30 }
 0x270   : > { %vm2666_vm14 = vcmp.gt.s32.totalorder %v2665_v8, 0  ;;  %v2436_v13 = vadd.s32 3, %v2432_v58  ;;  %vm2816_vm8 = vc.u32 %v5980_v25, %v5983_v33  ;;  %v2817_v21 = vadd.s32 1, %v5984_v11 }
 0x271   : > { %v2667_v18 = vsel %vm2666_vm14, %v2665_v8, 0  ;;  %v2422_v40 = vor.u32 4788187, %v2421_v23  ;;  %v2814_v47 = vmul.u32 %v5922_v36, %v2798_v45  ;;  %v6001_v54 = vand.u32 8388607, %v2655_v12 }
 0x272   : > { %v2669_v31 = vand.u32 31, %v2667_v18  ;;  %vm2646_vm10 = vcmp.lt.s32.totalorder %v2645_v34, 2  ;;  %vm2647_vm7 = vcmp.eq.s32.totalorder %v2645_v34, 0  ;;  %vm2650_vm9 = vcmp.eq.s32.totalorder %v2645_v34, 2 }
 0x273   : > { %v2818_v37 = vsel %vm2816_vm8, %v2817_v21, %v5984_v11  ;;  %vm3478_vm15 = vcmp.eq.s32.totalorder %v5916_v38, 2  ;;  %v2423_v17 = vand.u32 2147483647, %v2422_v40  ;;  %v2425_v63 = vcvt.s32.f32 %v2418_v24 }
 0x274   : > { %v2819_v59 = vadd.s32 %v2818_v37, %v2814_v47  ;;  %v6005_v36 = vand.u32 3, %v2436_v13  ;;  %v6007_v22 = vand.u32 3, %v2432_v58  ;;  %v2670_v6 = vsub.s32 32, %v2669_v31 }
 0x275   : > { %v4419_v3 = vpop.eup %4418  ;;  %v2426_v57 = vmul.f32 %v2425_v63, %v2423_v17  ;;  %v2663_v61 = vor.u32 8388608, %v6001_v54  ;;  %v2672_v14 = vshll.u32 %v4616_v41, %v2669_v31  ;;  %v6013_v55 = vmul.f32 %v568_v1, %v4871_v28 }
 0x276   : > { %v4421_v49 = vpop.eup %4420  ;;  %v2651_v35 = vxor.u32 2147483648, %v4419_v3  ;;  %v2820_v60 = vadd.s32 536870912, %v2819_v59  ;;  %v2673_v16 = vshrl.u32 %v4617_v43, %v2670_v6  ;;  %v2676_v39 = vshrl.u32 %v4618_v44, %v2670_v6 }
 0x277   : > { %v2648_v10 = vxor.u32 2147483648, %v4421_v49  ;;  %v2427_v29 = vxor.u32 2147483648, %v2426_v57  ;;  %v2675_v52 = vshll.u32 %v4617_v43, %v2669_v31  ;;  %v2679_v0 = vshrl.u32 %v4619_v46, %v2670_v6 }
 0x278   : > { %v2652_v62 = vsel %vm2650_vm9, %v2651_v35, %v4421_v49  ;;  %v3480_v50 = vsel %vm3478_vm15, %v2651_v35, %v4421_v49  ;;  %v2821_v4 = vshrl.u32 %v2820_v60, 30  ;;  %v2682_v27 = vshrl.u32 %v4620_v48, %v2670_v6 }
 0x279   : > { %v2649_v19 = vsel %vm2647_vm7, %v4419_v3, %v2648_v10  ;;  %v3477_v58 = vsel %vm3475_vm6, %v4419_v3, %v2648_v10  ;;  %v2428_v20 = vsel %vm2345_vm11, %v2427_v29, %v2426_v57  ;;  %v2681_v8 = vshll.u32 %v4619_v46, %v2669_v31 }
 0x27a   : > { %v2653_v7 = vsel %vm2646_vm10, %v2649_v19, %v2652_v62  ;;  %v3481_v5 = vsel %vm3474_vm5, %v3477_v58, %v3480_v50  ;;  %v2822_v11 = vshll.u32 %v2821_v4, 30  ;;  %v2431_v38 = vsel %vm5926_vm12, %v5672_v32, %v2428_v20 }
 0x27b   : > { %v2654_v9 = vsel %vm2643_vm4, nan, %v2653_v7  ;;  %v3482_v42 = vsel %vm2643_vm4, nan, %v3481_v5  ;;  %4422 = vcosq.f32 %v2431_v38  ;;  %v2685_v34 = vshrl.u32 %v4621_v56, %v2670_v6 }
 0x27c   : > { %4184 = vst.msk [vmem:[%s5200_s29 + $0xa8] sm:$0xff] %vm253_vm0, %v2654_v9  ;;  %4186 = vst.msk [vmem:[%s5200_s29 + $0xb8] sm:$0xff] %vm253_vm0, %v3482_v42  ;;  %v6039_v30 = vsub.s32 %v2819_v59, %v2822_v11  ;;  %4424 = vsinq.f32 %v2431_v38  ;;  %v6043_v45 = vshrl.u32 %v2667_v18, 5  ;;  %v2674_v24 = vor.u32 %v2673_v16, %v2672_v14 }
 0x27d   : > { %v2678_v53 = vshll.u32 %v4618_v44, %v2669_v31  ;;  %v2677_v13 = vor.u32 %v2676_v39, %v2675_v52  ;;  %v2683_v21 = vor.u32 %v2682_v27, %v2681_v8  ;;  %v2684_v40 = vshll.u32 %v4620_v48, %v2669_v31 }
 0x27e   : > { %v2825_v23 = vsub.s32 0, %v6039_v30  ;;  %vm2761_vm11 = vcmp.lt.s32.totalorder %v5714_v2, 0  ;;  %v2845_v47 = vsub.s32 4, %v2821_v4  ;;  %vm2442_vm12 = vcmp.eq.s32.totalorder %v6005_v36, 2 }
 0x27f   : > { %v2680_v54 = vor.u32 %v2679_v0, %v2678_v53  ;;  %vm3272_vm13 = vcmp.eq.s32.totalorder %v6007_v22, 2  ;;  %v2686_v37 = vor.u32 %v2685_v34, %v2684_v40  ;;  %vm2439_vm1 = vcmp.eq.s32.totalorder %v6005_v36, 0 }
 0x280   : > { %v4136_v18 = vmin.u32 %v2825_v23, %v6039_v30  ;;  %vm3269_vm2 = vcmp.eq.s32.totalorder %v6007_v22, 0  ;;  %v2815_v3 = vadd.s32 %v5983_v33, %v5980_v25  ;;  %vm2687_vm3 = vcmp.lt.s32.totalorder %v6043_v45, 1 }
 0x281   : > { %vm2690_vm5 = vcmp.lt.s32.totalorder %v6043_v45, 4  ;;  %v6058_v31 = vshll.u32 %v2663_v61, 8  ;;  %vm2438_vm6 = vcmp.lt.s32.totalorder %v6005_v36, 2  ;;  %vm3268_vm14 = vcmp.lt.s32.totalorder %v6007_v22, 2 }
 0x282   : > { %v2827_v17 = vclz %v4136_v18  ;;  %v2695_v63 = vsel %vm2687_vm3, %v2674_v24, %v2677_v13  ;;  %v2696_v59 = vsel %vm2690_vm5, %v2683_v21, 920167782  ;;  %v2866_v1 = vand.u32 2139095040, %v6013_v55 }
 0x283   : > { %vm2435_vm4 = vweird.f32 %v5672_v32  ;;  %v2846_v25 = vsel %vm2761_vm11, %v2845_v47, %v2821_v4  ;;  %v2671_v33 = vshrl.u32 %v4616_v41, %v2670_v6  ;;  %vm2689_vm8 = vcmp.lt.s32.totalorder %v6043_v45, 3  ;;  %v538_v32 = vpop.permute.xlu1 %537 }
 0x284   : > { %v2699_v49 = vsel %vm2687_vm3, %v2677_v13, %v2680_v54  ;;  %v4137_v35 = vadd.s32 4294967294, %v2827_v17  ;;  %vm2688_vm10 = vcmp.lt.s32.totalorder %v6043_v45, 2  ;;  %v2697_v10 = vsel %vm2689_vm8, %v2680_v54, %v2696_v59 }
 0x285   : > { %v2700_v57 = vsel %vm2690_vm5, %v2686_v37, 1326507024  ;;  %v2691_v60 = vsel %vm2687_vm3, %v2671_v33, %v2674_v24  ;;  %v2692_v6 = vsel %vm2690_vm5, %v2680_v54, 2102212464  ;;  %v2698_v61 = vsel %vm2688_vm10, %v2695_v63, %v2697_v10  ;;  %v4423_v50 = vpop.eup %4422 }
 0x286   : > { %v2701_v62 = vsel %vm2689_vm8, %v2683_v21, %v2700_v57  ;;  %vm4138_vm7 = vcmp.lt.s32.totalorder %v4137_v35, 0  ;;  %v6090_v19 = vmul.u32.u64.low %v6058_v31, %v2698_v61  ;;  %v6091_v58 = vmul.u32.u64.high %v6058_v31, %v2698_v61, %v6090_v19  ;;  %v4425_v29 = vpop.eup %4424 }
 0x287   : > { %v2702_v14 = vsel %vm2688_vm10, %v2699_v49, %v2701_v62  ;;  %v2443_v4 = vxor.u32 2147483648, %v4423_v50  ;;  %v2830_v7 = vsel %vm4138_vm7, 0, %v4137_v35  ;;  %v2440_v39 = vxor.u32 2147483648, %v4425_v29 }
 0x288   : > { %v6095_v5 = vmul.u32.u64.low %v6058_v31, %v2702_v14  ;;  %v6096_v16 = vmul.u32.u64.high %v6058_v31, %v2702_v14, %v6095_v5  ;;  %v2831_v9 = vsub.s32 32, %v2830_v7  ;;  %v2835_v42 = vsub.s32 4294967266, %v2830_v7 }
 0x289   : > { %v2693_v20 = vsel %vm2689_vm8, %v2677_v13, %v2692_v6  ;;  %v2444_v11 = vsel %vm2442_vm12, %v2443_v4, %v4425_v29  ;;  %v3274_v38 = vsel %vm3272_vm13, %v2443_v4, %v4425_v29  ;;  %v2832_v52 = vshll.u32 %v6039_v30, %v2830_v7 }
 0x28a   : > { %v2867_v0 = vshrl.u32 %v2866_v1, 23  ;;  %v2441_v27 = vsel %vm2439_vm1, %v4423_v50, %v2440_v39  ;;  %v3271_v8 = vsel %vm3269_vm2, %v4423_v50, %v2440_v39  ;;  %v2833_v34 = vshrl.u32 %v2815_v3, %v2831_v9 }
 0x28b   : > { %v2836_v24 = vadd.s32 127, %v2835_v42  ;;  %v2445_v53 = vsel %vm2438_vm6, %v2441_v27, %v2444_v11  ;;  %v3275_v23 = vsel %vm3268_vm14, %v3271_v8, %v3274_v38  ;;  %v2694_v13 = vsel %vm2688_vm10, %v2691_v60, %v2693_v20 }
 0x28c   : > { %vm2712_vm9 = vc.u32 %v6096_v16, %v6090_v19  ;;  %v2446_v30 = vsel %vm2435_vm4, nan, %v2445_v53  ;;  %v3276_v21 = vsel %vm2435_vm4, nan, %v3275_v23  ;;  %v2834_v40 = vor.u32 %v2833_v34, %v2832_v52 }
 0x28d   : > { %v2837_v47 = vshll.u32 %v2836_v24, 23  ;;  %4180 = vst.msk [vmem:[%s5200_s29 + $0x88] sm:$0xff] %vm253_vm0, %v2446_v30  ;;  %4182 = vst.msk [vmem:[%s5200_s29 + $0x98] sm:$0xff] %vm253_vm0, %v3276_v21  ;;  %v2713_v36 = vadd.s32 1, %v6091_v58  ;;  %v4139_v22 = vadd.s32 4294967169, %v2867_v0  ;;  %v2710_v18 = vmul.u32 %v6058_v31, %v2694_v13 }
 0x28e   : > { %vm6128_vm15 = vcmp.le.f32.partialorder %v2759_v15, 0.7853982  ;;  %v2863_v17 = vand.u32 2147483647, %v6013_v55  ;;  %v2841_v1 = vcvt.s32.f32 %v2834_v40  ;;  %v6138_v15 = vmul.f32 %v538_v32, %v4871_v28 }
 0x28f   : > { %v2838_v54 = vor.u32 4788187, %v2837_v47  ;;  %v2848_v37 = vsel %vm6128_vm15, 0, %v2846_v25  ;;  %v2714_v3 = vsel %vm2712_vm9, %v2713_v36, %v6091_v58  ;;  %v2873_v63 = vadd.s32 1, %v4139_v22 }
 0x290   : > { %v2715_v33 = vadd.s32 %v2714_v3, %v2710_v18  ;;  %v2852_v35 = vadd.s32 3, %v2848_v37  ;;  %v2870_v57 = vand.u32 8388607, %v2863_v17  ;;  %v2242_v62 = vand.u32 2139095040, %v6138_v15 }
 0x291   : > { %v2839_v59 = vand.u32 2147483647, %v2838_v54  ;;  %vm2874_vm12 = vcmp.gt.s32.totalorder %v2873_v63, 0  ;;  %v6149_v58 = vand.u32 3, %v2848_v37  ;;  %v2711_v30 = vadd.s32 %v6090_v19, %v6096_v16 }
 0x292   : > { %v2716_v10 = vadd.s32 536870912, %v2715_v33  ;;  %v2875_v31 = vsel %vm2874_vm12, %v2873_v63, 0  ;;  %v6147_v14 = vand.u32 3, %v2852_v35  ;;  %v2871_v7 = vor.u32 8388608, %v2870_v57 }
 0x293   : > { %v2842_v49 = vmul.f32 %v2841_v1, %v2839_v59  ;;  %v2877_v25 = vand.u32 31, %v2875_v31  ;;  %v6161_v11 = vshrl.u32 %v2875_v31, 5  ;;  %v2243_v52 = vshrl.u32 %v2242_v62, 23 }
 0x294   : > { %v6142_v6 = vshrl.u32 %v2716_v10, 30  ;;  %vm3684_vm13 = vcmp.eq.s32.totalorder %v6149_v58, 2  ;;  %vm2855_vm1 = vcmp.eq.s32.totalorder %v6147_v14, 0  ;;  %vm3681_vm2 = vcmp.eq.s32.totalorder %v6149_v58, 0 }
 0x295   : > { %v2843_v60 = vxor.u32 2147483648, %v2842_v49  ;;  %v2878_v61 = vsub.s32 32, %v2877_v25  ;;  %v2880_v42 = vshll.u32 %v4616_v41, %v2877_v25  ;;  %v2883_v38 = vshll.u32 %v4617_v43, %v2877_v25 }
 0x296   : > { %v2718_v29 = vshll.u32 %v6142_v6, 30  ;;  %v2886_v8 = vshll.u32 %v4618_v44, %v2877_v25  ;;  %v2889_v34 = vshll.u32 %v4619_v46, %v2877_v25  ;;  %v2892_v23 = vshll.u32 %v4620_v48, %v2877_v25 }
 0x297   : > { %v2844_v50 = vsel %vm2761_vm11, %v2843_v60, %v2842_v49  ;;  %v2881_v5 = vshrl.u32 %v4617_v43, %v2878_v61  ;;  %v2884_v39 = vshrl.u32 %v4618_v44, %v2878_v61  ;;  %v2887_v20 = vshrl.u32 %v4619_v46, %v2878_v61 }
 0x298   : > { %v2847_v4 = vsel %vm6128_vm15, %v5714_v2, %v2844_v50  ;;  %v6157_v9 = vsub.s32 %v2715_v33, %v2718_v29  ;;  %v2890_v53 = vshrl.u32 %v4620_v48, %v2878_v61  ;;  %v2893_v13 = vshrl.u32 %v4621_v56, %v2878_v61 }
 0x299   : > { %4426 = vcosq.f32 %v2847_v4  ;;  %v2882_v27 = vor.u32 %v2881_v5, %v2880_v42  ;;  %v2885_v24 = vor.u32 %v2884_v39, %v2883_v38  ;;  %vm2858_vm11 = vcmp.eq.s32.totalorder %v6147_v14, 2 }
 0x29a   : > { %4428 = vsinq.f32 %v2847_v4  ;;  %v2721_v0 = vsub.s32 0, %v6157_v9  ;;  %v2888_v40 = vor.u32 %v2887_v20, %v2886_v8  ;;  %v2891_v47 = vor.u32 %v2890_v53, %v2889_v34 }
 0x29b   : > { %v2894_v36 = vor.u32 %v2893_v13, %v2892_v23  ;;  %v6177_v22 = vshll.u32 %v2871_v7, 8  ;;  %v2239_v45 = vand.u32 2147483647, %v6138_v15  ;;  %vm2854_vm3 = vcmp.lt.s32.totalorder %v6147_v14, 2 }
 0x29c   : > { %v4132_v21 = vmin.u32 %v2721_v0, %v6157_v9  ;;  %vm3680_vm5 = vcmp.lt.s32.totalorder %v6149_v58, 2  ;;  %v2741_v19 = vsub.s32 4, %v6142_v6  ;;  %vm2895_vm6 = vcmp.lt.s32.totalorder %v6161_v11, 1 }
 0x29d   : > { %v4115_v16 = vadd.s32 4294967169, %v2243_v52  ;;  %vm2851_vm14 = vweird.f32 %v5714_v2  ;;  %v2879_v18 = vshrl.u32 %v4616_v41, %v2878_v61  ;;  %vm2897_vm4 = vcmp.lt.s32.totalorder %v6161_v11, 3 }
 0x29e   : > { %v2723_v54 = vclz %v4132_v21  ;;  %vm2898_vm8 = vcmp.lt.s32.totalorder %v6161_v11, 4  ;;  %v2903_v32 = vsel %vm2895_vm6, %v2882_v27, %v2885_v24  ;;  %v2907_v59 = vsel %vm2895_vm6, %v2885_v24, %v2888_v40 }
 0x29f   : > { %v2900_v3 = vsel %vm2898_vm8, %v2888_v40, 2102212464  ;;  %v2904_v63 = vsel %vm2898_vm8, %v2891_v47, 920167782  ;;  %vm2896_vm10 = vcmp.lt.s32.totalorder %v6161_v11, 2  ;;  %v2899_v1 = vsel %vm2895_vm6, %v2879_v18, %v2882_v27 }
 0x2a0   : > { %v4133_v37 = vadd.s32 4294967294, %v2723_v54  ;;  %v2905_v33 = vsel %vm2897_vm4, %v2888_v40, %v2904_v63  ;;  %v2908_v49 = vsel %vm2898_vm8, %v2894_v36, 1326507024  ;;  %v2901_v10 = vsel %vm2897_vm4, %v2885_v24, %v2900_v3  ;;  %v548_v40 = vpop.permute.xlu1 %547 }
 0x2a1   : > { %v2909_v31 = vsel %vm2897_vm4, %v2891_v47, %v2908_v49  ;;  %v2249_v57 = vadd.s32 1, %v4115_v16  ;;  %v2906_v62 = vsel %vm2896_vm10, %v2903_v32, %v2905_v33  ;;  %vm2657_vm9 = vcmp.lt.s32.totalorder %v5910_v51, 0 }
 0x2a2   : > { %vm4134_vm7 = vcmp.lt.s32.totalorder %v4133_v37, 0  ;;  %v2910_v50 = vsel %vm2896_vm10, %v2907_v59, %v2909_v31  ;;  %v6211_v24 = vmul.u32.u64.low %v6177_v22, %v2906_v62  ;;  %v6212_v53 = vmul.u32.u64.high %v6177_v22, %v2906_v62, %v6211_v24 }
 0x2a3   : > { %v4427_v35 = vpop.eup %4426  ;;  %v2726_v61 = vsel %vm4134_vm7, 0, %v4133_v37  ;;  %v6199_v20 = vmul.u32.u64.low %v6177_v22, %v2910_v50  ;;  %v6200_v38 = vmul.u32.u64.high %v6177_v22, %v2910_v50, %v6199_v20  ;;  %v2902_v14 = vsel %vm2896_vm10, %v2899_v1, %v2901_v10 }
 0x2a4   : > { %v4429_v25 = vpop.eup %4428  ;;  %v2859_v60 = vxor.u32 2147483648, %v4427_v35  ;;  %v2727_v4 = vsub.s32 32, %v2726_v61  ;;  %v2728_v7 = vshll.u32 %v6157_v9, %v2726_v61  ;;  %v2731_v5 = vsub.s32 4294967266, %v2726_v61 }
 0x2a5   : > { %v2856_v29 = vxor.u32 2147483648, %v4429_v25  ;;  %v2246_v58 = vand.u32 8388607, %v2239_v45  ;;  %vm2250_vm15 = vcmp.gt.s32.totalorder %v2249_v57, 0  ;;  %v2742_v2 = vsel %vm2657_vm9, %v2741_v19, %v6142_v6 }
 0x2a6   : > { %v2860_v39 = vsel %vm2858_vm11, %v2859_v60, %v4429_v25  ;;  %v3686_v42 = vsel %vm3684_vm13, %v2859_v60, %v4429_v25  ;;  %v2729_v9 = vshrl.u32 %v2711_v30, %v2727_v4  ;;  %v2732_v27 = vadd.s32 127, %v2731_v5 }
 0x2a7   : > { %v2857_v52 = vsel %vm2855_vm1, %v4427_v35, %v2856_v29  ;;  %v3683_v0 = vsel %vm3681_vm2, %v4427_v35, %v2856_v29  ;;  %vm2920_vm12 = vc.u32 %v6200_v38, %v6211_v24  ;;  %v2251_v36 = vsel %vm2250_vm15, %v2249_v57, 0 }
 0x2a8   : > { %v2861_v8 = vsel %vm2854_vm3, %v2857_v52, %v2860_v39  ;;  %v3687_v34 = vsel %vm3680_vm5, %v3683_v0, %v3686_v42  ;;  %v2730_v21 = vor.u32 %v2729_v9, %v2728_v7  ;;  %v2733_v30 = vshll.u32 %v2732_v27, 23 }
 0x2a9   : > { %v2862_v23 = vsel %vm2851_vm14, nan, %v2861_v8  ;;  %v3688_v13 = vsel %vm2851_vm14, nan, %v3687_v34  ;;  %vm6235_vm11 = vcmp.le.f32.partialorder %v2655_v12, 0.7853982  ;;  %v2921_v11 = vadd.s32 1, %v6212_v53 }
 0x2aa   : > { %4188 = vst.msk [vmem:[%s5200_s29 + $0xc8] sm:$0xff] %vm253_vm0, %v2862_v23  ;;  %4190 = vst.msk [vmem:[%s5200_s29 + $0xd8] sm:$0xff] %vm253_vm0, %v3688_v13  ;;  %v2734_v47 = vor.u32 4788187, %v2733_v30  ;;  %v2253_v16 = vand.u32 31, %v2251_v36  ;;  %v2737_v32 = vcvt.s32.f32 %v2730_v21  ;;  %v2918_v37 = vmul.u32 %v6177_v22, %v2902_v14 }
 0x2ab   : > { %v6242_v3 = vmul.f32 %v548_v40, %v4871_v28  ;;  %v2744_v6 = vsel %vm6235_vm11, 0, %v2742_v2  ;;  %v2922_v19 = vsel %vm2920_vm12, %v2921_v11, %v6212_v53  ;;  %v2247_v63 = vor.u32 8388608, %v2246_v58 }
 0x2ac   : > { %v2735_v18 = vand.u32 2147483647, %v2734_v47  ;;  %v2254_v12 = vsub.s32 32, %v2253_v16  ;;  %v2923_v1 = vadd.s32 %v2922_v19, %v2918_v37  ;;  %v2252_v33 = vshrl.u32 %v2251_v36, 5 }
 0x2ad   : > { %v2256_v49 = vshll.u32 %v4616_v41, %v2253_v16  ;;  %v2259_v10 = vshll.u32 %v4617_v43, %v2253_v16  ;;  %v2265_v25 = vshll.u32 %v4619_v46, %v2253_v16  ;;  %v2262_v50 = vshll.u32 %v4618_v44, %v2253_v16 }
 0x2ae   : > { %v2738_v59 = vmul.f32 %v2737_v32, %v2735_v18  ;;  %v2257_v35 = vshrl.u32 %v4617_v43, %v2254_v12  ;;  %v2260_v22 = vshrl.u32 %v4618_v44, %v2254_v12  ;;  %v2263_v28 = vshrl.u32 %v4619_v46, %v2254_v12 }
 0x2af   : > { %v2924_v57 = vadd.s32 536870912, %v2923_v1  ;;  %v2266_v60 = vshrl.u32 %v4620_v48, %v2254_v12  ;;  %v2269_v29 = vshrl.u32 %v4621_v56, %v2254_v12  ;;  %v6258_v39 = vshll.u32 %v2247_v63, 8 }
 0x2b0   : > { %v2739_v31 = vxor.u32 2147483648, %v2738_v59  ;;  %v2258_v61 = vor.u32 %v2257_v35, %v2256_v49  ;;  %v2261_v62 = vor.u32 %v2260_v22, %v2259_v10  ;;  %v2264_v20 = vor.u32 %v2263_v28, %v2262_v50 }
 0x2b1   : > { %v2925_v7 = vshrl.u32 %v2924_v57, 30  ;;  %v2267_v5 = vor.u32 %v2266_v60, %v2265_v25  ;;  %v2268_v52 = vshll.u32 %v4620_v48, %v2253_v16  ;;  %v2450_v0 = vand.u32 2139095040, %v6242_v3 }
 0x2b2   : > { %v2740_v4 = vsel %vm2657_vm9, %v2739_v31, %v2738_v59  ;;  %v2748_v9 = vadd.s32 3, %v2744_v6  ;;  %vm2271_vm13 = vcmp.lt.s32.totalorder %v2252_v33, 1  ;;  %vm2274_vm1 = vcmp.lt.s32.totalorder %v2252_v33, 4 }
 0x2b3   : > { %v2743_v42 = vsel %vm6235_vm11, %v5910_v51, %v2740_v4  ;;  %v2926_v27 = vshll.u32 %v2925_v7, 30  ;;  %v2270_v8 = vor.u32 %v2269_v29, %v2268_v52  ;;  %v2279_v34 = vsel %vm2271_vm13, %v2258_v61, %v2261_v62 }
 0x2b4   : > { %4430 = vcosq.f32 %v2743_v42  ;;  %v3576_v53 = vand.u32 3, %v2744_v6  ;;  %vm2273_vm2 = vcmp.lt.s32.totalorder %v2252_v33, 3  ;;  %v2280_v13 = vsel %vm2274_vm1, %v2267_v5, 920167782 }
 0x2b5   : > { %4432 = vsinq.f32 %v2743_v42  ;;  %v6266_v23 = vsub.s32 %v2923_v1, %v2926_v27  ;;  %vm2272_vm3 = vcmp.lt.s32.totalorder %v2252_v33, 2  ;;  %v2276_v21 = vsel %vm2274_vm1, %v2264_v20, 2102212464 }
 0x2b6   : > { %v2281_v30 = vsel %vm2273_vm2, %v2264_v20, %v2280_v13  ;;  %v2451_v14 = vshrl.u32 %v2450_v0, 23  ;;  %vm2865_vm5 = vcmp.lt.s32.totalorder %v6013_v55, 0  ;;  %v2255_v40 = vshrl.u32 %v4616_v41, %v2254_v12 }
 0x2b7   : > { %v2929_v58 = vsub.s32 0, %v6266_v23  ;;  %v2282_v47 = vsel %vm2272_vm3, %v2279_v34, %v2281_v30  ;;  %v2749_v2 = vand.u32 3, %v2748_v9  ;;  %v2284_v36 = vsel %vm2274_vm1, %v2270_v8, 1326507024  ;;  %v573_v34 = vpop.permute.xlu1 %572 }
 0x2b8   : > { %v6274_v54 = vmul.u32.u64.low %v6258_v39, %v2282_v47  ;;  %v6275_v11 = vmul.u32.u64.high %v6258_v39, %v2282_v47, %v6274_v54  ;;  %v2275_v18 = vsel %vm2271_vm13, %v2255_v40, %v2258_v61  ;;  %v2277_v32 = vsel %vm2273_vm2, %v2261_v62, %v2276_v21 }
 0x2b9   : > { %v4140_v16 = vmin.u32 %v2929_v58, %v6266_v23  ;;  %v2283_v37 = vsel %vm2271_vm13, %v2261_v62, %v2264_v20  ;;  %vm2747_vm6 = vweird.f32 %v5910_v51  ;;  %vm3577_vm14 = vcmp.lt.s32.totalorder %v3576_v53, 2 }
 0x2ba   : > { %v2285_v6 = vsel %vm2273_vm2, %v2267_v5, %v2284_v36  ;;  %v2447_v19 = vand.u32 2147483647, %v6242_v3  ;;  %v4123_v63 = vadd.s32 4294967169, %v2451_v14  ;;  %vm3578_vm4 = vcmp.eq.s32.totalorder %v3576_v53, 0 }
 0x2bb   : > { %vm3581_vm8 = vcmp.eq.s32.totalorder %v3576_v53, 2  ;;  %v2931_v12 = vclz %v4140_v16  ;;  %v2949_v59 = vsub.s32 4, %v2925_v7  ;;  %vm2750_vm10 = vcmp.lt.s32.totalorder %v2749_v2, 2 }
 0x2bc   : > { %v2278_v1 = vsel %vm2272_vm3, %v2275_v18, %v2277_v32  ;;  %v2286_v49 = vsel %vm2272_vm3, %v2283_v37, %v2285_v6  ;;  %v2457_v35 = vadd.s32 1, %v4123_v63  ;;  %vm2751_vm7 = vcmp.eq.s32.totalorder %v2749_v2, 0 }
 0x2bd   : > { %v4141_v22 = vadd.s32 4294967294, %v2931_v12  ;;  %v6288_v28 = vmul.u32.u64.low %v6258_v39, %v2286_v49  ;;  %v6289_v31 = vmul.u32.u64.high %v6258_v39, %v2286_v49, %v6288_v28  ;;  %vm2754_vm9 = vcmp.eq.s32.totalorder %v2749_v2, 2 }
 0x2be   : > { %v4431_v10 = vpop.eup %4430  ;;  %v2919_v60 = vadd.s32 %v6211_v24, %v6200_v38  ;;  %vm2458_vm15 = vcmp.gt.s32.totalorder %v2457_v35, 0  ;;  %v2950_v33 = vsel %vm2865_vm5, %v2949_v59, %v2925_v7  ;;  %v2294_v62 = vmul.u32 %v6258_v39, %v2278_v1 }
 0x2bf   : > { %v4433_v57 = vpop.eup %4432  ;;  %v2755_v25 = vxor.u32 2147483648, %v4431_v10  ;;  %vm4142_vm12 = vcmp.lt.s32.totalorder %v4141_v22, 0  ;;  %v2297_v5 = vadd.s32 1, %v6275_v11  ;;  %v2459_v20 = vsel %vm2458_vm15, %v2457_v35, 0 }
 0x2c0   : > { %v2752_v61 = vxor.u32 2147483648, %v4433_v57  ;;  %v2934_v4 = vsel %vm4142_vm12, 0, %v4141_v22  ;;  %vm2296_vm11 = vc.u32 %v6289_v31, %v6274_v54  ;;  %vm6316_vm13 = vcmp.le.f32.partialorder %v2863_v17, 0.7853982 }
 0x2c1   : > { %v2756_v50 = vsel %vm2754_vm9, %v2755_v25, %v4433_v57  ;;  %v3583_v29 = vsel %vm3581_vm8, %v2755_v25, %v4433_v57  ;;  %v2935_v24 = vsub.s32 32, %v2934_v4  ;;  %v2936_v39 = vshll.u32 %v6266_v23, %v2934_v4 }
 0x2c2   : > { %v2753_v42 = vsel %vm2751_vm7, %v4431_v10, %v2752_v61  ;;  %v3580_v38 = vsel %vm3578_vm4, %v4431_v10, %v2752_v61  ;;  %v2939_v0 = vsub.s32 4294967266, %v2934_v4  ;;  %v2298_v13 = vsel %vm2296_vm11, %v2297_v5, %v6275_v11 }
 0x2c3   : > { %v2757_v52 = vsel %vm2750_vm10, %v2753_v42, %v2756_v50  ;;  %v3584_v7 = vsel %vm3577_vm14, %v3580_v38, %v3583_v29  ;;  %v2937_v8 = vshrl.u32 %v2919_v60, %v2935_v24  ;;  %v2461_v23 = vand.u32 31, %v2459_v20 }
 0x2c4   : > { %v2758_v9 = vsel %vm2747_vm6, nan, %v2757_v52  ;;  %v3585_v27 = vsel %vm2747_vm6, nan, %v3584_v7  ;;  %v2940_v53 = vadd.s32 127, %v2939_v0  ;;  %v2299_v30 = vadd.s32 %v2298_v13, %v2294_v62 }
 0x2c5   : > { %4187 = vst.msk [vmem:[%s5200_s29 + $0xc0] sm:$0xff] %vm253_vm0, %v2758_v9  ;;  %4189 = vst.msk [vmem:[%s5200_s29 + $0xd0] sm:$0xff] %vm253_vm0, %v3585_v27  ;;  %v2938_v51 = vor.u32 %v2937_v8, %v2936_v39  ;;  %v2454_v14 = vand.u32 8388607, %v2447_v19  ;;  %v2952_v40 = vsel %vm6316_vm13, 0, %v2950_v33  ;;  %v2462_v47 = vsub.s32 32, %v2461_v23 }
 0x2c6   : > { %v2941_v58 = vshll.u32 %v2940_v53, 23  ;;  %v6325_v2 = vmul.f32 %v4868_v26, %v573_v34  ;;  %v2300_v36 = vadd.s32 536870912, %v2299_v30  ;;  %v6327_v11 = vshrl.u32 %v2459_v20, 5 }
 0x2c7   : > { %v2464_v17 = vshll.u32 %v4616_v41, %v2461_v23  ;;  %v2467_v16 = vshll.u32 %v4617_v43, %v2461_v23  ;;  %v2945_v32 = vcvt.s32.f32 %v2938_v51  ;;  %v2465_v37 = vshrl.u32 %v4617_v43, %v2462_v47 }
 0x2c8   : > { %v2942_v18 = vor.u32 4788187, %v2941_v58  ;;  %v2468_v6 = vshrl.u32 %v4618_v44, %v2462_v47  ;;  %v6333_v63 = vshrl.u32 %v2300_v36, 30  ;;  %v2471_v12 = vshrl.u32 %v4619_v46, %v2462_v47 }
 0x2c9   : > { %v2473_v26 = vshll.u32 %v4619_v46, %v2461_v23  ;;  %v2474_v59 = vshrl.u32 %v4620_v48, %v2462_v47  ;;  %v2470_v49 = vshll.u32 %v4618_v44, %v2461_v23  ;;  %v2476_v35 = vshll.u32 %v4620_v48, %v2461_v23 }
 0x2ca   : > { %v2943_v1 = vand.u32 2147483647, %v2942_v18  ;;  %v2477_v10 = vshrl.u32 %v4621_v56, %v2462_v47  ;;  %v2302_v22 = vshll.u32 %v6333_v63, 30  ;;  %v2466_v28 = vor.u32 %v2465_v37, %v2464_v17 }
 0x2cb   : > { %v2469_v57 = vor.u32 %v2468_v6, %v2467_v16  ;;  %v2475_v25 = vor.u32 %v2474_v59, %v2473_v26  ;;  %v2472_v61 = vor.u32 %v2471_v12, %v2470_v49  ;;  %v2455_v62 = vor.u32 8388608, %v2454_v14 }
 0x2cc   : > { %v2946_v60 = vmul.f32 %v2945_v32, %v2943_v1  ;;  %v6342_v33 = vsub.s32 %v2299_v30, %v2302_v22  ;;  %v2478_v50 = vor.u32 %v2477_v10, %v2476_v35  ;;  %vm2482_vm1 = vcmp.lt.s32.totalorder %v6327_v11, 4 }
 0x2cd   : > { %v2956_v4 = vadd.s32 3, %v2952_v40  ;;  %vm2479_vm2 = vcmp.lt.s32.totalorder %v6327_v11, 1  ;;  %v2488_v5 = vsel %vm2482_vm1, %v2475_v25, 920167782  ;;  %vm2481_vm3 = vcmp.lt.s32.totalorder %v6327_v11, 3 }
 0x2ce   : > { %v2947_v29 = vxor.u32 2147483648, %v2946_v60  ;;  %v2305_v42 = vsub.s32 0, %v6342_v33  ;;  %v2487_v38 = vsel %vm2479_vm2, %v2466_v28, %v2469_v57  ;;  %v2970_v24 = vand.u32 2139095040, %v6325_v2 }
 0x2cf   : > { %v2463_v52 = vshrl.u32 %v4616_v41, %v2462_v47  ;;  %vm2480_vm6 = vcmp.lt.s32.totalorder %v6327_v11, 2  ;;  %v2489_v7 = vsel %vm2481_vm3, %v2472_v61, %v2488_v5  ;;  %v2484_v9 = vsel %vm2482_vm1, %v2472_v61, 2102212464 }
 0x2d0   : > { %v2948_v20 = vsel %vm2865_vm5, %v2947_v29, %v2946_v60  ;;  %v4116_v0 = vmin.u32 %v2305_v42, %v6342_v33  ;;  %v2492_v27 = vsel %vm2482_vm1, %v2478_v50, 1326507024  ;;  %v2490_v8 = vsel %vm2480_vm6, %v2487_v38, %v2489_v7 }
 0x2d1   : > { %v2951_v39 = vsel %vm6316_vm13, %v6013_v55, %v2948_v20  ;;  %v2491_v34 = vsel %vm2479_vm2, %v2469_v57, %v2472_v61  ;;  %v2495_v53 = vshll.u32 %v2455_v62, 8  ;;  %v3782_v13 = vand.u32 3, %v2952_v40 }
 0x2d2   : > { %4434 = vcosq.f32 %v2951_v39  ;;  %v2307_v23 = vclz %v4116_v0  ;;  %v2483_v21 = vsel %vm2479_vm2, %v2463_v52, %v2466_v28  ;;  %v2485_v51 = vsel %vm2481_vm3, %v2469_v57, %v2484_v9 }
 0x2d3   : > { %4436 = vsinq.f32 %v2951_v39  ;;  %v2493_v30 = vsel %vm2481_vm3, %v2475_v25, %v2492_v27  ;;  %v6377_v14 = vmul.u32.u64.low %v2495_v53, %v2490_v8  ;;  %v6378_v58 = vmul.u32.u64.high %v2495_v53, %v2490_v8, %v6377_v14 }
 0x2d4   : > { %vm2241_vm5 = vcmp.lt.s32.totalorder %v6138_v15, 0  ;;  %v4117_v47 = vadd.s32 4294967294, %v2307_v23  ;;  %v2494_v40 = vsel %vm2480_vm6, %v2491_v34, %v2493_v30  ;;  %v2971_v36 = vshrl.u32 %v2970_v24, 23 }
 0x2d5   : > { %v2957_v17 = vand.u32 3, %v2956_v4  ;;  %vm6386_vm14 = vcmp.le.f32.partialorder %v2239_v45, 0.7853982  ;;  %v6390_v18 = vmul.u32.u64.low %v2495_v53, %v2494_v40  ;;  %v6391_v32 = vmul.u32.u64.high %v2495_v53, %v2494_v40, %v6390_v18 }
 0x2d6   : > { %vm3784_vm4 = vcmp.eq.s32.totalorder %v3782_v13, 0  ;;  %vm4118_vm8 = vcmp.lt.s32.totalorder %v4117_v47, 0  ;;  %v2486_v37 = vsel %vm2480_vm6, %v2483_v21, %v2485_v51  ;;  %v4143_v6 = vadd.s32 4294967169, %v2971_v36 }
 0x2d7   : > { %vm3783_vm10 = vcmp.lt.s32.totalorder %v3782_v13, 2  ;;  %vm3787_vm7 = vcmp.eq.s32.totalorder %v3782_v13, 2  ;;  %v2310_v12 = vsel %vm4118_vm8, 0, %v4117_v47  ;;  %v2325_v26 = vsub.s32 4, %v6333_v63 }
 0x2d8   : > { %v2505_v59 = vadd.s32 1, %v6378_v58  ;;  %vm2955_vm9 = vweird.f32 %v6013_v55  ;;  %v2295_v45 = vadd.s32 %v6274_v54, %v6289_v31  ;;  %v2311_v1 = vsub.s32 32, %v2310_v12 }
 0x2d9   : > { %v2315_v49 = vsub.s32 4294967266, %v2310_v12  ;;  %v2977_v35 = vadd.s32 1, %v4143_v6  ;;  %vm2958_vm15 = vcmp.lt.s32.totalorder %v2957_v17, 2  ;;  %v2312_v11 = vshll.u32 %v6342_v33, %v2310_v12 }
 0x2da   : > { %v2502_v10 = vmul.u32 %v2495_v53, %v2486_v37  ;;  %vm2504_vm12 = vc.u32 %v6391_v32, %v6377_v14  ;;  %v2313_v22 = vshrl.u32 %v2295_v45, %v2311_v1  ;;  %vm2959_vm13 = vcmp.eq.s32.totalorder %v2957_v17, 0 }
 0x2db   : > { %v2316_v28 = vadd.s32 127, %v2315_v49  ;;  %v2506_v57 = vsel %vm2504_vm12, %v2505_v59, %v6378_v58  ;;  %vm2978_vm11 = vcmp.gt.s32.totalorder %v2977_v35, 0  ;;  %v2326_v54 = vsel %vm2241_vm5, %v2325_v26, %v6333_v63 }
 0x2dc   : > { %v4435_v25 = vpop.eup %4434  ;;  %v2507_v31 = vadd.s32 %v2506_v57, %v2502_v10  ;;  %v2979_v60 = vsel %vm2978_vm11, %v2977_v35, 0  ;;  %vm2962_vm1 = vcmp.eq.s32.totalorder %v2957_v17, 2  ;;  %v2314_v62 = vor.u32 %v2313_v22, %v2312_v11 }
 0x2dd   : > { %v4437_v61 = vpop.eup %4436  ;;  %v2963_v33 = vxor.u32 2147483648, %v4435_v25  ;;  %v2317_v50 = vshll.u32 %v2316_v28, 23  ;;  %v2967_v5 = vand.u32 2147483647, %v6325_v2  ;;  %v2981_v42 = vand.u32 31, %v2979_v60 }
 0x2de   : > { %v2960_v29 = vxor.u32 2147483648, %v4437_v61  ;;  %v2508_v4 = vadd.s32 536870912, %v2507_v31  ;;  %v2328_v63 = vsel %vm6386_vm14, 0, %v2326_v54  ;;  %v2321_v39 = vcvt.s32.f32 %v2314_v62 }
 0x2df   : > { %v2964_v38 = vsel %vm2962_vm1, %v2963_v33, %v4437_v61  ;;  %v3789_v24 = vsel %vm3787_vm7, %v2963_v33, %v4437_v61  ;;  %v2318_v20 = vor.u32 4788187, %v2317_v50  ;;  %v2982_v34 = vsub.s32 32, %v2981_v42 }
 0x2e0   : > { %v2961_v52 = vsel %vm2959_vm13, %v4435_v25, %v2960_v29  ;;  %v3786_v7 = vsel %vm3784_vm4, %v4435_v25, %v2960_v29  ;;  %v6413_v0 = vshrl.u32 %v2508_v4, 30  ;;  %v2974_v51 = vand.u32 8388607, %v2967_v5 }
 0x2e1   : > { %v2965_v9 = vsel %vm2958_vm15, %v2961_v52, %v2964_v38  ;;  %v3790_v27 = vsel %vm3783_vm10, %v3786_v7, %v3789_v24  ;;  %v2319_v8 = vand.u32 2147483647, %v2318_v20  ;;  %v2332_v13 = vadd.s32 3, %v2328_v63 }
 0x2e2   : > { %v2966_v53 = vsel %vm2955_vm9, nan, %v2965_v9  ;;  %v3791_v23 = vsel %vm2955_vm9, nan, %v3790_v27  ;;  %v2510_v21 = vshll.u32 %v6413_v0, 30  ;;  %v2985_v40 = vshrl.u32 %v4617_v43, %v2982_v34 }
 0x2e3   : > { %4191 = vst.msk [vmem:[%s5200_s29 + $0xe0] sm:$0xff] %vm253_vm0, %v2966_v53  ;;  %4193 = vst.msk [vmem:[%s5200_s29 + $0xf0] sm:$0xff] %vm253_vm0, %v3791_v23  ;;  %v2322_v30 = vmul.f32 %v2321_v39, %v2319_v8  ;;  %v2988_v36 = vshrl.u32 %v4618_v44, %v2982_v34  ;;  %v2991_v55 = vshrl.u32 %v4619_v46, %v2982_v34  ;;  %v6433_v17 = vand.u32 3, %v2328_v63 }
 0x2e4   : > { %v6428_v58 = vsub.s32 %v2507_v31, %v2510_v21  ;;  %v2975_v37 = vor.u32 8388608, %v2974_v51  ;;  %v2984_v6 = vshll.u32 %v4616_v41, %v2981_v42  ;;  %v2987_v26 = vshll.u32 %v4617_v43, %v2981_v42 }
 0x2e5   : > { %v2323_v47 = vxor.u32 2147483648, %v2322_v30  ;;  %v2990_v59 = vshll.u32 %v4618_v44, %v2981_v42  ;;  %v2994_v45 = vshrl.u32 %v4620_v48, %v2982_v34  ;;  %v2980_v35 = vshrl.u32 %v2979_v60, 5 }
 0x2e6   : > { %v2513_v18 = vsub.s32 0, %v6428_v58  ;;  %v2993_v11 = vshll.u32 %v4619_v46, %v2981_v42  ;;  %v2986_v10 = vor.u32 %v2985_v40, %v2984_v6  ;;  %v2989_v22 = vor.u32 %v2988_v36, %v2987_v26 }
 0x2e7   : > { %v2324_v12 = vsel %vm2241_vm5, %v2323_v47, %v2322_v30  ;;  %v2992_v28 = vor.u32 %v2991_v55, %v2990_v59  ;;  %v2333_v57 = vand.u32 3, %v2332_v13  ;;  %v2503_v44 = vadd.s32 %v6377_v14, %v6391_v32 }
 0x2e8   : > { %v2327_v1 = vsel %vm6386_vm14, %v6138_v15, %v2324_v12  ;;  %v4124_v49 = vmin.u32 %v2513_v18, %v6428_v58  ;;  %v2995_v25 = vor.u32 %v2994_v45, %v2993_v11  ;;  %v2996_v54 = vshll.u32 %v4620_v48, %v2981_v42 }
 0x2e9   : > { %4438 = vcosq.f32 %v2327_v1  ;;  %v2997_v16 = vshrl.u32 %v4621_v56, %v2982_v34  ;;  %v3015_v31 = vshll.u32 %v2975_v37, 8  ;;  %v2983_v60 = vshrl.u32 %v4616_v41, %v2982_v34 }
 0x2ea   : > { %4440 = vsinq.f32 %v2327_v1  ;;  %v2515_v43 = vclz %v4124_v49  ;;  %vm2999_vm2 = vcmp.lt.s32.totalorder %v2980_v35, 1  ;;  %vm3002_vm3 = vcmp.lt.s32.totalorder %v2980_v35, 4 }
 0x2eb   : > { %v2998_v46 = vor.u32 %v2997_v16, %v2996_v54  ;;  %vm3000_vm6 = vcmp.lt.s32.totalorder %v2980_v35, 2  ;;  %v3004_v33 = vsel %vm3002_vm3, %v2992_v28, 2102212464  ;;  %v3007_v62 = vsel %vm2999_vm2, %v2986_v10, %v2989_v22 }
 0x2ec   : > { %v4125_v61 = vadd.s32 4294967294, %v2515_v43  ;;  %vm3001_vm14 = vcmp.lt.s32.totalorder %v2980_v35, 3  ;;  %v3003_v50 = vsel %vm2999_vm2, %v2983_v60, %v2986_v10  ;;  %v3008_v29 = vsel %vm3002_vm3, %v2995_v25, 920167782 }
 0x2ed   : > { %vm3165_vm4 = vcmp.lt.s32.totalorder %v6433_v17, 2  ;;  %v3009_v48 = vsel %vm3001_vm14, %v2992_v28, %v3008_v29  ;;  %v3011_v32 = vsel %vm2999_vm2, %v2989_v22, %v2992_v28  ;;  %v3012_v56 = vsel %vm3002_vm3, %v2998_v46, 1326507024 }
 0x2ee   : > { %vm4126_vm5 = vcmp.lt.s32.totalorder %v4125_v61, 0  ;;  %vm2331_vm8 = vweird.f32 %v6138_v15  ;;  %v3005_v42 = vsel %vm3001_vm14, %v2989_v22, %v3004_v33  ;;  %v3010_v38 = vsel %vm3000_vm6, %v3007_v62, %v3009_v48 }
 0x2ef   : > { %v2518_v14 = vsel %vm4126_vm5, 0, %v4125_v61  ;;  %vm3166_vm10 = vcmp.eq.s32.totalorder %v6433_v17, 0  ;;  %v3013_v24 = vsel %vm3001_vm14, %v2995_v25, %v3012_v56  ;;  %vm3169_vm7 = vcmp.eq.s32.totalorder %v6433_v17, 2 }
 0x2f0   : > { %v2519_v4 = vsub.s32 32, %v2518_v14  ;;  %v2523_v41 = vsub.s32 4294967266, %v2518_v14  ;;  %v6456_v20 = vmul.u32.u64.low %v3015_v31, %v3010_v38  ;;  %v6457_v63 = vmul.u32.u64.high %v3015_v31, %v3010_v38, %v6456_v20 }
 0x2f1   : > { %v2520_v52 = vshll.u32 %v6428_v58, %v2518_v14  ;;  %v3014_v9 = vsel %vm3000_vm6, %v3011_v32, %v3013_v24  ;;  %v3006_v8 = vsel %vm3000_vm6, %v3003_v50, %v3005_v42  ;;  %vm2334_vm9 = vcmp.lt.s32.totalorder %v2333_v57, 2 }
 0x2f2   : > { %v2521_v7 = vshrl.u32 %v2503_v44, %v2519_v4  ;;  %v2524_v39 = vadd.s32 127, %v2523_v41  ;;  %v6464_v34 = vmul.u32.u64.low %v3015_v31, %v3014_v9  ;;  %v6465_v53 = vmul.u32.u64.high %v3015_v31, %v3014_v9, %v6464_v34 }
 0x2f3   : > { %v4439_v27 = vpop.eup %4438  ;;  %vm2335_vm15 = vcmp.eq.s32.totalorder %v2333_v57, 0  ;;  %vm2338_vm12 = vcmp.eq.s32.totalorder %v2333_v57, 2  ;;  %v3025_v58 = vadd.s32 1, %v6457_v63  ;;  %v3022_v55 = vmul.u32 %v3015_v31, %v3006_v8 }
 0x2f4   : > { %v4441_v23 = vpop.eup %4440  ;;  %v2339_v21 = vxor.u32 2147483648, %v4439_v27  ;;  %v2522_v51 = vor.u32 %v2521_v7, %v2520_v52  ;;  %v2525_v30 = vshll.u32 %v2524_v39, 23  ;;  %vm3024_vm11 = vc.u32 %v6465_v53, %v6456_v20 }
 0x2f5   : > { %v2336_v13 = vxor.u32 2147483648, %v4441_v23  ;;  %v3026_v45 = vsel %vm3024_vm11, %v3025_v58, %v6457_v63  ;;  %v2533_v10 = vsub.s32 4, %v6413_v0  ;;  %vm2449_vm13 = vcmp.lt.s32.totalorder %v6242_v3, 0 }
 0x2f6   : > { %v2340_v47 = vsel %vm2338_vm12, %v2339_v21, %v4441_v23  ;;  %v3171_v40 = vsel %vm3169_vm7, %v2339_v21, %v4441_v23  ;;  %v2526_v36 = vor.u32 4788187, %v2525_v30  ;;  %v2529_v6 = vcvt.s32.f32 %v2522_v51 }
 0x2f7   : > { %v2337_v18 = vsel %vm2335_vm15, %v4439_v27, %v2336_v13  ;;  %v3168_v37 = vsel %vm3166_vm10, %v4439_v27, %v2336_v13  ;;  %v3027_v35 = vadd.s32 %v3026_v45, %v3022_v55  ;;  %vm2448_vm1 = vcmp.le.f32.partialorder %v2447_v19, 0.7853982 }
 0x2f8   : > { %v2341_v12 = vsel %vm2334_vm9, %v2337_v18, %v2340_v47  ;;  %v3172_v26 = vsel %vm3165_vm4, %v3168_v37, %v3171_v40  ;;  %v2527_v59 = vand.u32 2147483647, %v2526_v36  ;;  %v2534_v15 = vsel %vm2449_vm13, %v2533_v10, %v6413_v0 }
 0x2f9   : > { %v2342_v1 = vsel %vm2331_vm8, nan, %v2341_v12  ;;  %v3173_v49 = vsel %vm2331_vm8, nan, %v3172_v26  ;;  %v3028_v22 = vadd.s32 536870912, %v3027_v35  ;;  %v2536_v44 = vsel %vm2448_vm1, 0, %v2534_v15 }
 0x2fa   : > { %4179 = vst.msk [vmem:[%s5200_s29 + $0x80] sm:$0xff] %vm253_vm0, %v2342_v1  ;;  %4181 = vst.msk [vmem:[%s5200_s29 + $0x90] sm:$0xff] %vm253_vm0, %v3173_v49  ;;  %v2530_v11 = vmul.f32 %v2529_v6, %v2527_v59  ;;  %v2540_v31 = vadd.s32 3, %v2536_v44  ;;  %v3370_v60 = vand.u32 3, %v2536_v44  ;;  %v3023_v56 = vadd.s32 %v6456_v20, %v6465_v53 }
 0x2fb   : > { %v3029_v28 = vshrl.u32 %v3028_v22, 30  ;;  %vm2539_vm10 = vweird.f32 %v6242_v3  ;;  %vm2969_vm7 = vcmp.lt.s32.totalorder %v6325_v2, 0  ;;  %vm2968_vm9 = vcmp.le.f32.partialorder %v2967_v5, 0.7853982 }
 0x2fc   : > { %v2531_v17 = vxor.u32 2147483648, %v2530_v11  ;;  %v2541_v33 = vand.u32 3, %v2540_v31  ;;  %vm3371_vm2 = vcmp.lt.s32.totalorder %v3370_v60, 2  ;;  %vm3372_vm3 = vcmp.eq.s32.totalorder %v3370_v60, 0 }
 0x2fd   : > { %v3030_v25 = vshll.u32 %v3029_v28, 30  ;;  %vm3375_vm6 = vcmp.eq.s32.totalorder %v3370_v60, 2  ;;  %v3053_v51 = vsub.s32 4, %v3029_v28 }
 0x2fe   : > { %v2532_v57 = vsel %vm2449_vm13, %v2531_v17, %v2530_v11  ;;  %vm2543_vm14 = vcmp.eq.s32.totalorder %v2541_v33, 0  ;;  %vm2546_vm4 = vcmp.eq.s32.totalorder %v2541_v33, 2  ;;  %vm2542_vm8 = vcmp.lt.s32.totalorder %v2541_v33, 2 }
 0x2ff   : > { %v2535_v43 = vsel %vm2448_vm1, %v6242_v3, %v2532_v57  ;;  %v3031_v54 = vsub.s32 %v3027_v35, %v3030_v25  ;;  %v3054_v13 = vsel %vm2969_vm7, %v3053_v51, %v3029_v28 }
 0x300   : > { %4442 = vcosq.f32 %v2535_v43  ;;  %v3056_v47 = vsel %vm2968_vm9, 0, %v3054_v13 }
 0x301   : > { %4444 = vsinq.f32 %v2535_v43  ;;  %v3033_v16 = vsub.s32 0, %v3031_v54  ;;  %v3060_v40 = vadd.s32 3, %v3056_v47  ;;  %v3885_v55 = vand.u32 3, %v3056_v47 }
 0x303   : > { %v4144_v61 = vmin.u32 %v3033_v16, %v3031_v54  ;;  %v3061_v36 = vand.u32 3, %v3060_v40  ;;  %vm3890_vm12 = vcmp.eq.s32.totalorder %v3885_v55, 2  ;;  %vm3887_vm13 = vcmp.eq.s32.totalorder %v3885_v55, 0 }
 0x305   : > { %v3035_v46 = vclz %v4144_v61  ;;  %vm3066_vm15 = vcmp.eq.s32.totalorder %v3061_v36, 2  ;;  %vm3063_vm11 = vcmp.eq.s32.totalorder %v3061_v36, 0  ;;  %vm3062_vm1 = vcmp.lt.s32.totalorder %v3061_v36, 2 }
 0x307   : > { %v4145_v62 = vadd.s32 4294967294, %v3035_v46 }
 0x309   : > { %vm4146_vm5 = vcmp.lt.s32.totalorder %v4145_v62, 0 }
 0x30a   : > { %v4443_v50 = vpop.eup %4442  ;;  %v3038_v14 = vsel %vm4146_vm5, 0, %v4145_v62 }
 0x30b   : > { %v4445_v19 = vpop.eup %4444  ;;  %v2547_v29 = vxor.u32 2147483648, %v4443_v50  ;;  %v3039_v4 = vsub.s32 32, %v3038_v14  ;;  %v3043_v38 = vsub.s32 4294967266, %v3038_v14  ;;  %v3040_v9 = vshll.u32 %v3031_v54, %v3038_v14 }
 0x30c   : > { %v2544_v0 = vxor.u32 2147483648, %v4445_v19 }
 0x30d   : > { %v2548_v48 = vsel %vm2546_vm4, %v2547_v29, %v4445_v19  ;;  %v3377_v32 = vsel %vm3375_vm6, %v2547_v29, %v4445_v19  ;;  %v3041_v52 = vshrl.u32 %v3023_v56, %v3039_v4  ;;  %v3044_v27 = vadd.s32 127, %v3043_v38 }
 0x30e   : > { %v2545_v41 = vsel %vm2543_vm14, %v4443_v50, %v2544_v0  ;;  %v3374_v42 = vsel %vm3372_vm3, %v4443_v50, %v2544_v0  ;;  %vm3059_vm3 = vweird.f32 %v6325_v2 }
 0x30f   : > { %v2549_v24 = vsel %vm2542_vm8, %v2545_v41, %v2548_v48  ;;  %v3378_v63 = vsel %vm3371_vm2, %v3374_v42, %v3377_v32  ;;  %v3042_v20 = vor.u32 %v3041_v52, %v3040_v9  ;;  %v3045_v8 = vshll.u32 %v3044_v27, 23 }
 0x310   : > { %v2550_v7 = vsel %vm2539_vm10, nan, %v2549_v24  ;;  %v3379_v39 = vsel %vm2539_vm10, nan, %v3378_v63  ;;  %vm3886_vm2 = vcmp.lt.s32.totalorder %v3885_v55, 2 }
 0x311   : > { %4183 = vst.msk [vmem:[%s5200_s29 + $0xa0] sm:$0xff] %vm253_vm0, %v2550_v7  ;;  %4185 = vst.msk [vmem:[%s5200_s29 + $0xb0] sm:$0xff] %vm253_vm0, %v3379_v39  ;;  %v3046_v34 = vor.u32 4788187, %v3045_v8  ;;  %v3049_v23 = vcvt.s32.f32 %v3042_v20 }
 0x313   : > { %v3047_v53 = vand.u32 2147483647, %v3046_v34 }
 0x315   : > { %v3050_v21 = vmul.f32 %v3049_v23, %v3047_v53 }
 0x317   : > { %v3051_v3 = vxor.u32 2147483648, %v3050_v21 }
 0x319   : > { %v3052_v30 = vsel %vm2969_vm7, %v3051_v3, %v3050_v21 }
 0x31a   : > { %v3055_v58 = vsel %vm2968_vm9, %v6325_v2, %v3052_v30 }
 0x31b   : > { %4446 = vcosq.f32 %v3055_v58 }
 0x31c   : > { %4448 = vsinq.f32 %v3055_v58 }
 0x325   : > { %v4447_v18 = vpop.eup %4446 }
 0x326   : > { %v4449_v37 = vpop.eup %4448  ;;  %v3067_v6 = vxor.u32 2147483648, %v4447_v18 }
 0x327   : > { %v3064_v12 = vxor.u32 2147483648, %v4449_v37 }
 0x328   : > { %v3068_v5 = vsel %vm3066_vm15, %v3067_v6, %v4449_v37  ;;  %v3892_v26 = vsel %vm3890_vm12, %v3067_v6, %v4449_v37 }
 0x329   : > { %v3065_v59 = vsel %vm3063_vm11, %v4447_v18, %v3064_v12  ;;  %v3889_v45 = vsel %vm3887_vm13, %v4447_v18, %v3064_v12 }
 0x32a   : > { %v3069_v1 = vsel %vm3062_vm1, %v3065_v59, %v3068_v5  ;;  %v3893_v49 = vsel %vm3886_vm2, %v3889_v45, %v3892_v26 }
 0x32b   : > { %v3070_v35 = vsel %vm3059_vm3, nan, %v3069_v1  ;;  %v3894_v11 = vsel %vm3059_vm3, nan, %v3893_v49 }
 0x32c   : > { %4192 = vst.msk [vmem:[%s5200_s29 + $0xe8] sm:$0xff] %vm253_vm0, %v3070_v35  ;;  %4194 = vst.msk [vmem:[%s5200_s29 + $0xf8] sm:$0xff] %vm253_vm0, %v3894_v11 }
 0x32d   : > { %4549 = shalt.err (!%p4546_p1)
}
 0x32e   : > { %s4550_s30 = scalar_lea.hbm %s6507_s19, 4096  ;;  %s4554_s7 = scalar_lea.hbm %s6562_s4, 8192 }
 0x32f   : > { %p4551_p13 = scmp.ne.s32.totalorder %s6507_s19, %s4550_s30  ;;  %p4555_p4 = scmp.lt.u32.totalorder %s6507_s19, %s6562_s4 }
 0x330   : > { %p4556_p5 = scmp.lt.u32.totalorder %s4554_s7, %s4550_s30  ;;  %p4558_p8 = scmp.lt.u32.totalorder %s4550_s30, %s6507_s19 }
 0x331   : > { %p4552_p6 = pnand %p4551_p13, %p6607_p0 }
 0x332   : > { %p4557_p11 = por %p4556_p5, %p4555_p4 }
 0x333   : > { %p4553_p10 = pneg %p4552_p6 }
 0x334   : > { %p4559_p2 = por %p4558_p8, %p4557_p11 }
 0x336   : > { %p4560_p3 = pnand %p4559_p2, %p4553_p10 }
 0x338   : > { %4563 = shalt.err (!%p4560_p3)
}
 0x339   : > { %s4623_s29 = smov 128   ;;  %s4624_s5 = smov 8  }
 0x33a   : > { %4306 = dma.vmem_to_hbm [thread:$0]  (%p6607_p0), %s6509_s9, 4096, %s6507_s19, %s3929_s28, %s4623_s29, %s4623_s29, %s4624_s5  }
 0x33b PF: > { %s3957_s10 = sand.u32 1, %s4594_s15   ;;  %p6608_p7 = scmp.ne.s32.totalorder %s6567_s22, 0 }
 0x33c   : > { %p6609_p9 = scmp.ge.s32.totalorder %s4606_s18, 2  ;;  %s3958_s24 = scalar_lea.sflag [#allocation4], %s3957_s10 }
 0x33e   : > { %p4320_p12 = pnand %p6609_p9, %p6608_p7 }
 0x340   : > { %4589 = dma.done.wait (!%p4320_p12), %s3958_s24, 4096  }
 0x341   : > { %4591 = vsyncadd (!%p4320_p12), %s3958_s24, 4294963200  ;;  %p18_p1 = scmp.ge.s32.totalorder %s4766_s26, 4   ;;  %s6610_s15 = smov %s4598_s16 }
 0x342   : > { %s6611_s16 = smov %s4602_s17  ;;  %s6612_s17 = smov %s4782_s14 }
 0x343   : > { %s6613_s18 = smov %s4766_s26  ;;  %20 = sbr.rel (!%p18_p1) target bundleno = 6 (0x6), region = 90 }
 0x34a   :  { %3963 = vsyncpa [#allocation3], 1 }
 0x34b   :  { %3965 = vsyncpa [#allocation3 + $0x1], 1 }
 0x34c   :  { %3966 = vsyncpa [#allocation6], 1 }
 0x34d   :  { %3967 = vsyncpa [#allocation4], 1 }
 0x34e   :  { %3969 = vsyncpa [#allocation4 + $0x1], 1 }

</bundles_post_ra>
